<compile_context>
chip_gen: v6e
topology: v6e:2x2x1
jax: 0.10.0
libtpu: 0.0.40
codegen_flags: <defaults>
</compile_context>

<pallas_src>
import numpy as np
import jax
import jax.numpy as jnp
from jax.experimental import pallas as pl
from jax.experimental.pallas import tpu as pltpu

# ---------------- synthetic config (small shapes) ----------------
USER_LEN = 5
IDNUM = 3
VOCAB_CFG = 120            # config.vocab_size before the +8 token resize
VOCAB = VOCAB_CFG + 8      # 128 after resize_token_embeddings(... + 8)
HIDDEN = 32                # emsize
N_LAYERS = 2
N_HEADS = 4
HEAD_DIM = HIDDEN // N_HEADS
INTER = 64
RMS_EPS = 1e-6
ROPE_THETA = 10000.0
ALPHA = 0.1
ENABLE_CONTRAST = True
IGNORE_INDEX = -100

_VMEM = pl.BlockSpec(memory_space=pltpu.MemorySpace.VMEM)
_SMEM = pl.BlockSpec(memory_space=pltpu.MemorySpace.SMEM)


# ====================== in-kernel helpers ======================

def _rms_norm(x, w):
    """x: [N, H] f32, w: [1, H] f32 -> [N, H] f32 (HF LlamaRMSNorm)."""
    var = jnp.mean(x * x, axis=-1, keepdims=True)
    return x * jax.lax.rsqrt(var + RMS_EPS) * w


# ====================== the fused forward kernel ======================

def _fused_kernel(src_ref, pad_ref, cos_ref, sin_ref,
                  ln1_ref, wattn_ref, wo_ref, ln2_ref, wgu_ref, wd_ref,
                  fnorm_ref, lm_ref, w1_ref, b1_ref, w2_ref, b2_ref, sty_ref,
                  lab_ref, val_ref,
                  loss_ref, smean_ref):
    BT, H = src_ref.shape          # [B*T, H]
    B, T = pad_ref.shape
    nH, Dh = N_HEADS, HEAD_DIM
    qw = nH * Dh                   # width of one q/k/v slab (== H)

    # ----- attention bias from pad mask + causal iota (layer invariant) -----
    rows = jax.lax.broadcasted_iota(jnp.int32, (T, T), 0)
    cols = jax.lax.broadcasted_iota(jnp.int32, (T, T), 1)
    causal = rows >= cols
    pad = pad_ref[...]                                        # [B, T] f32 (1/0)
    bias_blocks = []
    for b in range(B):
        allowed = jnp.logical_and(causal, pad[b:b + 1, :] > 0.5)   # [T, T]
        bias_b = jnp.where(allowed, 0.0, -1e9).astype(jnp.float32)
        bias_blocks.extend([bias_b] * nH)                     # same bias for every head
    bias_stacked = jnp.concatenate(bias_blocks, axis=0)       # [B*nH*T, T]

    cos = cos_ref[...]                                        # [BT, nH*Dh]
    sin = sin_ref[...]
    h = src_ref[...]                                          # residual stream, f32 [BT, H]

    # ---------------- transformer layers (static unrolled loop) ----------------
    for l in range(N_LAYERS):
        # ---- self-attention ----
        hn = _rms_norm(h, ln1_ref[l]).astype(jnp.bfloat16)                       # [BT, H]
        qkv = jnp.dot(hn, wattn_ref[l], preferred_element_type=jnp.float32)      # [BT, 5*H]
        # column layout: [ q | q@R | k | k@R | v ], RoPE = q*cos + rot_half(q)*sin
        q = qkv[:, 0 * qw:1 * qw] * cos + qkv[:, 1 * qw:2 * qw] * sin
        k = qkv[:, 2 * qw:3 * qw] * cos + qkv[:, 3 * qw:4 * qw] * sin
        v = qkv[:, 4 * qw:5 * qw]
        qb = q.astype(jnp.bfloat16)
        kb = k.astype(jnp.bfloat16)
        vb = v.astype(jnp.bfloat16)

        # per-(batch, head) scores, stacked on sublanes -> single softmax pass
        score_blocks = []
        for b in range(B):
            for hd in range(nH):
                qbh = qb[b * T:(b + 1) * T, hd * Dh:(hd + 1) * Dh]               # [T, Dh]
                kbh = kb[b * T:(b + 1) * T, hd * Dh:(hd + 1) * Dh]
                score_blocks.append(jax.lax.dot_general(
                    qbh, kbh, (((1,), (1,)), ((), ())),
                    preferred_element_type=jnp.float32))                         # [T, T]
        s = jnp.concatenate(score_blocks, axis=0) + bias_stacked                 # [B*nH*T, T]
        s = s - jnp.max(s, axis=-1, keepdims=True)
        p = jnp.exp(s)
        p = (p / jnp.sum(p, axis=-1, keepdims=True)).astype(jnp.bfloat16)        # exact softmax

        o_blocks = []
        for b in range(B):
            head_outs = []
            for hd in range(nH):
                r0 = (b * nH + hd) * T
                pbh = p[r0:r0 + T, :]                                            # [T, T]
                vbh = vb[b * T:(b + 1) * T, hd * Dh:(hd + 1) * Dh]               # [T, Dh]
                head_outs.append(jnp.dot(pbh, vbh,
                                         preferred_element_type=jnp.float32))    # [T, Dh]
            o_blocks.append(jnp.concatenate(head_outs, axis=1))                  # [T, H]
        o_all = jnp.concatenate(o_blocks, axis=0).astype(jnp.bfloat16)           # [BT, H]
        h = h + jnp.dot(o_all, wo_ref[l], preferred_element_type=jnp.float32)

        # ---- SwiGLU MLP (gate/up fused into one 128-lane matmul) ----
        hn2 = _rms_norm(h, ln2_ref[l]).astype(jnp.bfloat16)
        gu = jnp.dot(hn2, wgu_ref[l], preferred_element_type=jnp.float32)        # [BT, 2*INTER]
        g = gu[:, :INTER]
        u = gu[:, INTER:]
        act = (g * jax.nn.sigmoid(g) * u).astype(jnp.bfloat16)                   # SiLU(g)*u
        h = h + jnp.dot(act, wd_ref[l], preferred_element_type=jnp.float32)

    # ---------------- head: final norm, lm_head, style MLP, mixture NLL ----------------
    hn = _rms_norm(h, fnorm_ref[...])                                            # [BT, H]
    hnb = hn.astype(jnp.bfloat16)
    base = jnp.dot(hnb, lm_ref[...], preferred_element_type=jnp.float32)         # [BT, V]
    h1 = jnp.dot(hnb, w1_ref[...], preferred_element_type=jnp.float32) + b1_ref[...]
    sty_h = jnp.dot(h1.astype(jnp.bfloat16), w2_ref[...],
                    preferred_element_type=jnp.float32) + b2_ref[...]            # [BT, H]
    sty_logits = jnp.dot(sty_h.astype(jnp.bfloat16), sty_ref[...],
                         preferred_element_type=jnp.float32)                     # [BT, V]

    pb = jnp.exp(base - jnp.max(base, axis=-1, keepdims=True))
    pb = pb / jnp.sum(pb, axis=-1, keepdims=True)                 # softmax(base_logits)
    ps = jnp.exp(sty_logits - jnp.max(sty_logits, axis=-1, keepdims=True))
    ps = ps / jnp.sum(ps, axis=-1, keepdims=True)                 # softmax(style_logits)

    val = val_ref[0, 0]                                           # sigmoid(para)
    pm = pb * (1.0 - val) + val * ps
    pm = pm / jnp.sum(pm, axis=-1, keepdims=True)                 # renormalize (as in spec)
    logp = jnp.log(pm)                                            # unclamped, like reference

    # NLLLoss(ignore_index=-100) over shifted labels (select-then-sum gather)
    lab = lab_ref[...]                                            # [BT, 1] int32
    colv = jax.lax.broadcasted_iota(jnp.int32, logp.shape, 1)
    picked = jnp.sum(jnp.where(colv == lab, logp, 0.0), axis=-1, keepdims=True)  # [BT, 1]
    valid = (lab != IGNORE_INDEX).astype(jnp.float32)
    num = jnp.sum(-picked * valid, axis=0, keepdims=True)
    den = jnp.sum(valid, axis=0, keepdims=True)
    loss_ref[...] = num / jnp.maximum(den, 1.0)

    # per-batch mean of style hidden states over ALL T rows (matches reference)
    smean_blocks = [jnp.mean(sty_h[b * T:(b + 1) * T, :], axis=0, keepdims=True)
                    for b in range(B)]
    smean_ref[...] = jnp.concatenate(smean_blocks, axis=0)        # [B, H]


def fused_forward(params, src_flat, pad_mask, cos_t, sin_t, shift_labels_flat, val):
    BT, H = src_flat.shape
    B = pad_mask.shape[0]
    loss, smean = pl.pallas_call(
        _fused_kernel,
        in_specs=[_VMEM] * 18 + [_SMEM],
        out_specs=(_VMEM, _VMEM),
        out_shape=(jax.ShapeDtypeStruct((1, 1), jnp.float32),
                   jax.ShapeDtypeStruct((B, H), jnp.float32)),
    )(src_flat, pad_mask, cos_t, sin_t,
      params["ln1"], params["w_attn"], params["wo"],
      params["ln2"], params["wgu"], params["wd"],
      params["final_norm"], params["lm_head"],
      params["mlp_w1"], params["mlp_b1"], params["mlp_w2"], params["mlp_b2"],
      params["style_head"],
      shift_labels_flat.astype(jnp.int32),
      jnp.reshape(val, (1, 1)).astype(jnp.float32))
    return loss[0, 0], smean


# ====================== plain-JAX glue ======================

def rope_tables(T):
    inv_freq = 1.0 / (ROPE_THETA ** (jnp.arange(0, HEAD_DIM, 2, dtype=jnp.float32)
                                     / HEAD_DIM))
    t = jnp.arange(T, dtype=jnp.float32)
    freqs = jnp.outer(t, inv_freq)                               # [T, Dh/2]
    emb = jnp.concatenate([freqs, freqs], axis=-1)               # [T, Dh]
    return jnp.cos(emb), jnp.sin(emb)                            # constant-folded under jit


def contrast_loss(features_q, features_p, labels, temperature=0.5,
                  scale_by_temperature=True):
    # Reference ContrastLoss normalizes ONLY features_q; features_p stays raw.
    fq = features_q / jnp.maximum(
        jnp.linalg.norm(features_q, axis=1, keepdims=True), 1e-12)
    mask = (labels[:, None] == labels[None, :]).astype(jnp.float32)
    adc = (fq @ features_p.T) / temperature
    logits = adc - jnp.max(adc, axis=1, keepdims=True)
    exp_logits = jnp.exp(logits)
    positives = mask
    negatives = 1.0 - mask
    num_pos = jnp.sum(positives, axis=1)                         # >= 1 (diagonal)
    denom = (jnp.sum(exp_logits * negatives, axis=1, keepdims=True)
             + jnp.sum(exp_logits * positives, axis=1, keepdims=True))
    log_probs = logits - jnp.log(denom)
    lp = jnp.sum(log_probs * positives, axis=1) / num_pos
    loss = -lp
    if scale_by_temperature:
        loss = loss * temperature
    return jnp.mean(loss)


def prefer_aug_forward(params, user_id, input_ids, attention_mask):
    B, S = input_ids.shape
    T = USER_LEN + S

    user_id_scaled = user_id * USER_LEN
    id_sql = user_id_scaled[:, None] + jnp.arange(USER_LEN)[None, :]   # [B, user_len]
    u_emd = params["user_embeddings"][id_sql]                          # [B, user_len, H]
    w_emd = params["embed_tokens"][input_ids]                          # [B, S, H]
    src_emd = jnp.concatenate([u_emd, w_emd], axis=1)                  # [B, T, H] f32

    pad_left = jnp.ones((B, USER_LEN), jnp.float32)
    pad_mask = jnp.concatenate(
        [pad_left, attention_mask.astype(jnp.float32)], axis=1)        # [B, T]

    pred_left = jnp.full((B, USER_LEN), IGNORE_INDEX, jnp.int32)
    pred_right = jnp.where(attention_mask == 1, input_ids,
                           IGNORE_INDEX).astype(jnp.int32)
    newlabels = jnp.concatenate([pred_left, pred_right], axis=1)       # [B, T]
    # labels[t] pairs with logits row t-1 -> pre-shift + pad last row with IGNORE
    shift_labels = jnp.concatenate(
        [newlabels[:, 1:], jnp.full((B, 1), IGNORE_INDEX, jnp.int32)], axis=1)

    cos, sin = rope_tables(T)                                          # [T, Dh]
    cos_t = jnp.tile(jnp.tile(cos, (1, N_HEADS)), (B, 1))              # [B*T, nH*Dh]
    sin_t = jnp.tile(jnp.tile(sin, (1, N_HEADS)), (B, 1))

    val = jax.nn.sigmoid(params["para"])[0]

    story_loss, style_mean = fused_forward(
        params, src_emd.reshape(B * T, HIDDEN), pad_mask, cos_t, sin_t,
        shift_labels.reshape(B * T, 1), val)

    if ENABLE_CONTRAST:
        # TODO(synk): single-device run; torch.distributed all_gather == identity.
        u_prompt = jnp.mean(u_emd, axis=1)                             # [B, H]
        c_loss = contrast_loss(u_prompt, style_mean, user_id_scaled, temperature=0.5)
        story_loss = story_loss + ALPHA * c_loss

    return {"loss": story_loss, "para": val}


# ====================== deterministic parameter init ======================

def _rot_half_matrix(d):
    """R such that x @ R == rotate_half(x) == concat([-x2, x1]) for one head."""
    half = d // 2
    R = np.zeros((d, d), np.float32)
    for i in range(half):
        R[half + i, i] = -1.0
        R[i, half + i] = 1.0
    return jnp.asarray(R)


def init_params(key):
    keys = iter(jax.random.split(key, 64))

    def nrm(shape, scale=0.02):
        return scale * jax.random.normal(next(keys), shape, jnp.float32)

    R = _rot_half_matrix(HEAD_DIM)
    attn_scale = 1.0 / (HEAD_DIM ** 0.5)

    wattn_l, wo_l, wgu_l, wd_l, ln1_l, ln2_l = [], [], [], [], [], []
    for _ in range(N_LAYERS):
        wq = nrm((HIDDEN, HIDDEN))
        wk = nrm((HIDDEN, HIDDEN))
        wv = nrm((HIDDEN, HIDDEN))
        q_cols, qr_cols, k_cols, kr_cols, v_cols = [], [], [], [], []
        for hd in range(N_HEADS):
            sl = slice(hd * HEAD_DIM, (hd + 1) * HEAD_DIM)
            wq_h = wq[:, sl] * attn_scale          # fold 1/sqrt(Dh) into Wq
            q_cols.append(wq_h)
            qr_cols.append(wq_h @ R)               # fold rotate_half into the weight
            k_cols.append(wk[:, sl])
            kr_cols.append(wk[:, sl] @ R)
            v_cols.append(wv[:, sl])
        wattn_l.append(jnp.concatenate(q_cols + qr_cols + k_cols + kr_cols + v_cols,
                                       axis=1))    # [H, 5*nH*Dh] = [H, 160]
        wo_l.append(nrm((HIDDEN, HIDDEN)))
        wgu_l.append(jnp.concatenate([nrm((HIDDEN, INTER)), nrm((HIDDEN, INTER))],
                                     axis=1))      # [H, 2*INTER] = [H, 128]
        wd_l.append(nrm((INTER, HIDDEN)))
        ln1_l.append(jnp.ones((1, HIDDEN), jnp.float32))
        ln2_l.append(jnp.ones((1, HIDDEN), jnp.float32))

    return dict(
        embed_tokens=nrm((VOCAB, HIDDEN)),
        user_embeddings=jax.random.uniform(
            next(keys), (IDNUM * USER_LEN, HIDDEN), jnp.float32, -0.1, 0.1),
        ln1=jnp.stack(ln1_l),                                    # [L, 1, H] f32
        ln2=jnp.stack(ln2_l),
        w_attn=jnp.stack(wattn_l).astype(jnp.bfloat16),          # [L, H, 160]
        wo=jnp.stack(wo_l).astype(jnp.bfloat16),                 # [L, H, H]
        wgu=jnp.stack(wgu_l).astype(jnp.bfloat16),               # [L, H, 2*INTER]
        wd=jnp.stack(wd_l).astype(jnp.bfloat16),                 # [L, INTER, H]
        final_norm=jnp.ones((1, HIDDEN), jnp.float32),
        lm_head=nrm((HIDDEN, VOCAB)).astype(jnp.bfloat16),
        mlp_w1=nrm((HIDDEN, HIDDEN // 2)).astype(jnp.bfloat16),  # MLP has no activation (matches spec)
        mlp_b1=jnp.zeros((1, HIDDEN // 2), jnp.float32),
        mlp_w2=nrm((HIDDEN // 2, HIDDEN)).astype(jnp.bfloat16),
        mlp_b2=jnp.zeros((1, HIDDEN), jnp.float32),
        style_head=nrm((HIDDEN, VOCAB)).astype(jnp.bfloat16),
        para=jnp.array([-2.0], jnp.float32),
    )


if __name__ == "__main__":
    key = jax.random.PRNGKey(0)
    pkey, k1, k2 = jax.random.split(key, 3)
    params = init_params(pkey)

    B, S = 2, 11                                   # total sequence = USER_LEN + S = 16
    user_id = jax.random.randint(k1, (B,), 0, IDNUM, dtype=jnp.int32)
    input_ids = jax.random.randint(k2, (B, S), 0, VOCAB_CFG, dtype=jnp.int32)
    attention_mask = jnp.ones((B, S), jnp.int32).at[1, -3:].set(0)

    fwd = jax.jit(prefer_aug_forward)
    out = jax.block_until_ready(fwd(params, user_id, input_ids, attention_mask))
    assert bool(jnp.isfinite(out["loss"])), "loss is not finite"
    print("KERNEL_OK")
</pallas_src>

<mosaic_0001>
module attributes {stable_mosaic.version = 11 : i64} {
  func.func @_fused_kernel(%arg0: memref<32x32xf32, #tpu.memory_space<vmem>>, %arg1: memref<2x16xf32, #tpu.memory_space<vmem>>, %arg2: memref<32x32xf32, #tpu.memory_space<vmem>>, %arg3: memref<32x32xf32, #tpu.memory_space<vmem>>, %arg4: memref<2x1x32xf32, #tpu.memory_space<vmem>>, %arg5: memref<2x32x160xbf16, #tpu.memory_space<vmem>>, %arg6: memref<2x32x32xbf16, #tpu.memory_space<vmem>>, %arg7: memref<2x1x32xf32, #tpu.memory_space<vmem>>, %arg8: memref<2x32x128xbf16, #tpu.memory_space<vmem>>, %arg9: memref<2x64x32xbf16, #tpu.memory_space<vmem>>, %arg10: memref<1x32xf32, #tpu.memory_space<vmem>>, %arg11: memref<32x128xbf16, #tpu.memory_space<vmem>>, %arg12: memref<32x16xbf16, #tpu.memory_space<vmem>>, %arg13: memref<1x16xf32, #tpu.memory_space<vmem>>, %arg14: memref<16x32xbf16, #tpu.memory_space<vmem>>, %arg15: memref<1x32xf32, #tpu.memory_space<vmem>>, %arg16: memref<32x128xbf16, #tpu.memory_space<vmem>>, %arg17: memref<32x1xi32, #tpu.memory_space<vmem>>, %arg18: memref<1x1xf32, #tpu.memory_space<smem>>, %arg19: memref<1x1xf32, #tpu.memory_space<vmem>>, %arg20: memref<2x32xf32, #tpu.memory_space<vmem>>) attributes {dimension_semantics = [], scalar_prefetch = 0 : i64, scratch_operands = 0 : i64, tpu.core_type = #tpu.core_type<tc>} {
    %0 = tpu.iota {dimensions = array<i32: 0>} : vector<16x16xi32>
    %1 = tpu.iota {dimensions = array<i32: 1>} : vector<16x16xi32>
    %2 = arith.cmpi sge, %0, %1 : vector<16x16xi32>
    %c0 = arith.constant 0 : index
    %c0_0 = arith.constant 0 : index
    %3 = vector.load %arg1[%c0, %c0_0] : memref<2x16xf32, #tpu.memory_space<vmem>>, vector<2x16xf32>
    %4 = vector.extract_strided_slice %3 {offsets = [0, 0], sizes = [1, 16], strides = [1, 1]} : vector<2x16xf32> to vector<1x16xf32>
    %cst = arith.constant 5.000000e-01 : f32
    %5 = vector.broadcast %cst : f32 to vector<1x16xf32>
    %6 = arith.cmpf ogt, %4, %5 : vector<1x16xf32>
    %7 = vector.broadcast %6 : vector<1x16xi1> to vector<16x16xi1>
    %8 = arith.andi %2, %7 : vector<16x16xi1>
    %cst_1 = arith.constant 0.000000e+00 : f32
    %cst_2 = arith.constant -1.000000e+09 : f32
    %9 = vector.broadcast %cst_1 : f32 to vector<16x16xf32>
    %10 = vector.broadcast %cst_2 : f32 to vector<16x16xf32>
    %11 = arith.select %8, %9, %10 : vector<16x16xi1>, vector<16x16xf32>
    %12 = vector.extract_strided_slice %3 {offsets = [1, 0], sizes = [1, 16], strides = [1, 1]} : vector<2x16xf32> to vector<1x16xf32>
    %cst_3 = arith.constant 5.000000e-01 : f32
    %13 = vector.broadcast %cst_3 : f32 to vector<1x16xf32>
    %14 = arith.cmpf ogt, %12, %13 : vector<1x16xf32>
    %15 = vector.broadcast %14 : vector<1x16xi1> to vector<16x16xi1>
    %16 = arith.andi %2, %15 : vector<16x16xi1>
    %cst_4 = arith.constant 0.000000e+00 : f32
    %cst_5 = arith.constant -1.000000e+09 : f32
    %17 = vector.broadcast %cst_4 : f32 to vector<16x16xf32>
    %18 = vector.broadcast %cst_5 : f32 to vector<16x16xf32>
    %19 = arith.select %16, %17, %18 : vector<16x16xi1>, vector<16x16xf32>
    %20 = tpu.concatenate %11, %11, %11, %11, %19, %19, %19, %19 in 0 : vector<16x16xf32>, vector<16x16xf32>, vector<16x16xf32>, vector<16x16xf32>, vector<16x16xf32>, vector<16x16xf32>, vector<16x16xf32>, vector<16x16xf32> -> vector<128x16xf32>
    %c0_6 = arith.constant 0 : index
    %c0_7 = arith.constant 0 : index
    %21 = vector.load %arg2[%c0_6, %c0_7] : memref<32x32xf32, #tpu.memory_space<vmem>>, vector<32x32xf32>
    %c0_8 = arith.constant 0 : index
    %c0_9 = arith.constant 0 : index
    %22 = vector.load %arg3[%c0_8, %c0_9] : memref<32x32xf32, #tpu.memory_space<vmem>>, vector<32x32xf32>
    %c0_10 = arith.constant 0 : index
    %c0_11 = arith.constant 0 : index
    %23 = vector.load %arg0[%c0_10, %c0_11] : memref<32x32xf32, #tpu.memory_space<vmem>>, vector<32x32xf32>
    %c0_12 = arith.constant 0 : index
    %c0_13 = arith.constant 0 : index
    %c0_14 = arith.constant 0 : index
    %24 = vector.load %arg4[%c0_12, %c0_13, %c0_14] : memref<2x1x32xf32, #tpu.memory_space<vmem>>, vector<1x1x32xf32>
    %25 = vector.shape_cast %24 : vector<1x1x32xf32> to vector<1x32xf32>
    %26 = arith.mulf %23, %23 : vector<32x32xf32>
    %cst_15 = arith.constant dense<0.000000e+00> : vector<32xf32>
    %27 = vector.multi_reduction <add>, %26, %cst_15 [1] : vector<32x32xf32> to vector<32xf32>
    %28 = vector.shape_cast %27 : vector<32xf32> to vector<32x1xf32>
    %cst_16 = arith.constant 3.200000e+01 : f32
    %29 = vector.broadcast %cst_16 : f32 to vector<32x1xf32>
    %30 = arith.divf %28, %29 : vector<32x1xf32>
    %cst_17 = arith.constant 9.99999997E-7 : f32
    %31 = vector.broadcast %cst_17 : f32 to vector<32x1xf32>
    %32 = arith.addf %30, %31 : vector<32x1xf32>
    %33 = math.rsqrt %32 : vector<32x1xf32>
    %34 = vector.broadcast %33 : vector<32x1xf32> to vector<32x32xf32>
    %35 = arith.mulf %23, %34 : vector<32x32xf32>
    %36 = vector.broadcast %25 : vector<1x32xf32> to vector<32x32xf32>
    %37 = arith.mulf %35, %36 : vector<32x32xf32>
    %38 = arith.truncf %37 : vector<32x32xf32> to vector<32x32xbf16>
    %c0_18 = arith.constant 0 : index
    %c0_19 = arith.constant 0 : index
    %c0_20 = arith.constant 0 : index
    %39 = vector.load %arg5[%c0_18, %c0_19, %c0_20] : memref<2x32x160xbf16, #tpu.memory_space<vmem>>, vector<1x32x160xbf16>
    %40 = vector.shape_cast %39 : vector<1x32x160xbf16> to vector<32x160xbf16>
    %cst_21 = arith.constant dense<0.000000e+00> : vector<32x160xf32>
    %41 = tpu.matmul %38, %40, %cst_21 {dimension_numbers = #tpu.dot_dimension_numbers<[1], [0], [0], [1], [0, 0, 1, 1], [], []>} : vector<32x32xbf16>, vector<32x160xbf16>, vector<32x160xf32> -> vector<32x160xf32>
    %42 = vector.extract_strided_slice %41 {offsets = [0, 0], sizes = [32, 32], strides = [1, 1]} : vector<32x160xf32> to vector<32x32xf32>
    %43 = arith.mulf %42, %21 : vector<32x32xf32>
    %44 = vector.extract_strided_slice %41 {offsets = [0, 32], sizes = [32, 32], strides = [1, 1]} : vector<32x160xf32> to vector<32x32xf32>
    %45 = arith.mulf %44, %22 : vector<32x32xf32>
    %46 = arith.addf %43, %45 : vector<32x32xf32>
    %47 = vector.extract_strided_slice %41 {offsets = [0, 64], sizes = [32, 32], strides = [1, 1]} : vector<32x160xf32> to vector<32x32xf32>
    %48 = arith.mulf %47, %21 : vector<32x32xf32>
    %49 = vector.extract_strided_slice %41 {offsets = [0, 96], sizes = [32, 32], strides = [1, 1]} : vector<32x160xf32> to vector<32x32xf32>
    %50 = arith.mulf %49, %22 : vector<32x32xf32>
    %51 = arith.addf %48, %50 : vector<32x32xf32>
    %52 = vector.extract_strided_slice %41 {offsets = [0, 128], sizes = [32, 32], strides = [1, 1]} : vector<32x160xf32> to vector<32x32xf32>
    %53 = arith.truncf %46 : vector<32x32xf32> to vector<32x32xbf16>
    %54 = arith.truncf %51 : vector<32x32xf32> to vector<32x32xbf16>
    %55 = arith.truncf %52 : vector<32x32xf32> to vector<32x32xbf16>
    %56 = vector.extract_strided_slice %53 {offsets = [0, 0], sizes = [16, 8], strides = [1, 1]} : vector<32x32xbf16> to vector<16x8xbf16>
    %57 = vector.extract_strided_slice %54 {offsets = [0, 0], sizes = [16, 8], strides = [1, 1]} : vector<32x32xbf16> to vector<16x8xbf16>
    %cst_22 = arith.constant dense<0.000000e+00> : vector<16x16xf32>
    %58 = tpu.matmul %56, %57, %cst_22 {dimension_numbers = #tpu.dot_dimension_numbers<[1], [1], [0], [0], [0, 0, 1, 0], [], []>} : vector<16x8xbf16>, vector<16x8xbf16>, vector<16x16xf32> -> vector<16x16xf32>
    %59 = vector.extract_strided_slice %53 {offsets = [0, 8], sizes = [16, 8], strides = [1, 1]} : vector<32x32xbf16> to vector<16x8xbf16>
    %60 = vector.extract_strided_slice %54 {offsets = [0, 8], sizes = [16, 8], strides = [1, 1]} : vector<32x32xbf16> to vector<16x8xbf16>
    %cst_23 = arith.constant dense<0.000000e+00> : vector<16x16xf32>
    %61 = tpu.matmul %59, %60, %cst_23 {dimension_numbers = #tpu.dot_dimension_numbers<[1], [1], [0], [0], [0, 0, 1, 0], [], []>} : vector<16x8xbf16>, vector<16x8xbf16>, vector<16x16xf32> -> vector<16x16xf32>
    %62 = vector.extract_strided_slice %53 {offsets = [0, 16], sizes = [16, 8], strides = [1, 1]} : vector<32x32xbf16> to vector<16x8xbf16>
    %63 = vector.extract_strided_slice %54 {offsets = [0, 16], sizes = [16, 8], strides = [1, 1]} : vector<32x32xbf16> to vector<16x8xbf16>
    %cst_24 = arith.constant dense<0.000000e+00> : vector<16x16xf32>
    %64 = tpu.matmul %62, %63, %cst_24 {dimension_numbers = #tpu.dot_dimension_numbers<[1], [1], [0], [0], [0, 0, 1, 0], [], []>} : vector<16x8xbf16>, vector<16x8xbf16>, vector<16x16xf32> -> vector<16x16xf32>
    %65 = vector.extract_strided_slice %53 {offsets = [0, 24], sizes = [16, 8], strides = [1, 1]} : vector<32x32xbf16> to vector<16x8xbf16>
    %66 = vector.extract_strided_slice %54 {offsets = [0, 24], sizes = [16, 8], strides = [1, 1]} : vector<32x32xbf16> to vector<16x8xbf16>
    %cst_25 = arith.constant dense<0.000000e+00> : vector<16x16xf32>
    %67 = tpu.matmul %65, %66, %cst_25 {dimension_numbers = #tpu.dot_dimension_numbers<[1], [1], [0], [0], [0, 0, 1, 0], [], []>} : vector<16x8xbf16>, vector<16x8xbf16>, vector<16x16xf32> -> vector<16x16xf32>
    %68 = vector.extract_strided_slice %53 {offsets = [16, 0], sizes = [16, 8], strides = [1, 1]} : vector<32x32xbf16> to vector<16x8xbf16>
    %69 = vector.extract_strided_slice %54 {offsets = [16, 0], sizes = [16, 8], strides = [1, 1]} : vector<32x32xbf16> to vector<16x8xbf16>
    %cst_26 = arith.constant dense<0.000000e+00> : vector<16x16xf32>
    %70 = tpu.matmul %68, %69, %cst_26 {dimension_numbers = #tpu.dot_dimension_numbers<[1], [1], [0], [0], [0, 0, 1, 0], [], []>} : vector<16x8xbf16>, vector<16x8xbf16>, vector<16x16xf32> -> vector<16x16xf32>
    %71 = vector.extract_strided_slice %53 {offsets = [16, 8], sizes = [16, 8], strides = [1, 1]} : vector<32x32xbf16> to vector<16x8xbf16>
    %72 = vector.extract_strided_slice %54 {offsets = [16, 8], sizes = [16, 8], strides = [1, 1]} : vector<32x32xbf16> to vector<16x8xbf16>
    %cst_27 = arith.constant dense<0.000000e+00> : vector<16x16xf32>
    %73 = tpu.matmul %71, %72, %cst_27 {dimension_numbers = #tpu.dot_dimension_numbers<[1], [1], [0], [0], [0, 0, 1, 0], [], []>} : vector<16x8xbf16>, vector<16x8xbf16>, vector<16x16xf32> -> vector<16x16xf32>
    %74 = vector.extract_strided_slice %53 {offsets = [16, 16], sizes = [16, 8], strides = [1, 1]} : vector<32x32xbf16> to vector<16x8xbf16>
    %75 = vector.extract_strided_slice %54 {offsets = [16, 16], sizes = [16, 8], strides = [1, 1]} : vector<32x32xbf16> to vector<16x8xbf16>
    %cst_28 = arith.constant dense<0.000000e+00> : vector<16x16xf32>
    %76 = tpu.matmul %74, %75, %cst_28 {dimension_numbers = #tpu.dot_dimension_numbers<[1], [1], [0], [0], [0, 0, 1, 0], [], []>} : vector<16x8xbf16>, vector<16x8xbf16>, vector<16x16xf32> -> vector<16x16xf32>
    %77 = vector.extract_strided_slice %53 {offsets = [16, 24], sizes = [16, 8], strides = [1, 1]} : vector<32x32xbf16> to vector<16x8xbf16>
    %78 = vector.extract_strided_slice %54 {offsets = [16, 24], sizes = [16, 8], strides = [1, 1]} : vector<32x32xbf16> to vector<16x8xbf16>
    %cst_29 = arith.constant dense<0.000000e+00> : vector<16x16xf32>
    %79 = tpu.matmul %77, %78, %cst_29 {dimension_numbers = #tpu.dot_dimension_numbers<[1], [1], [0], [0], [0, 0, 1, 0], [], []>} : vector<16x8xbf16>, vector<16x8xbf16>, vector<16x16xf32> -> vector<16x16xf32>
    %80 = tpu.concatenate %58, %61, %64, %67, %70, %73, %76, %79 in 0 : vector<16x16xf32>, vector<16x16xf32>, vector<16x16xf32>, vector<16x16xf32>, vector<16x16xf32>, vector<16x16xf32>, vector<16x16xf32>, vector<16x16xf32> -> vector<128x16xf32>
    %81 = arith.addf %80, %20 : vector<128x16xf32>
    %cst_30 = arith.constant dense<0xFF800000> : vector<128xf32>
    %82 = vector.multi_reduction <maximumf>, %81, %cst_30 [1] : vector<128x16xf32> to vector<128xf32>
    %83 = vector.shape_cast %82 : vector<128xf32> to vector<128x1xf32>
    %84 = vector.broadcast %83 : vector<128x1xf32> to vector<128x16xf32>
    %85 = arith.subf %81, %84 : vector<128x16xf32>
    %86 = math.exp %85 : vector<128x16xf32>
    %cst_31 = arith.constant dense<0.000000e+00> : vector<128xf32>
    %87 = vector.multi_reduction <add>, %86, %cst_31 [1] : vector<128x16xf32> to vector<128xf32>
    %88 = vector.shape_cast %87 : vector<128xf32> to vector<128x1xf32>
    %89 = vector.broadcast %88 : vector<128x1xf32> to vector<128x16xf32>
    %90 = arith.divf %86, %89 : vector<128x16xf32>
    %91 = arith.truncf %90 : vector<128x16xf32> to vector<128x16xbf16>
    %92 = vector.extract_strided_slice %91 {offsets = [0, 0], sizes = [16, 16], strides = [1, 1]} : vector<128x16xbf16> to vector<16x16xbf16>
    %93 = vector.extract_strided_slice %55 {offsets = [0, 0], sizes = [16, 8], strides = [1, 1]} : vector<32x32xbf16> to vector<16x8xbf16>
    %cst_32 = arith.constant dense<0.000000e+00> : vector<16x8xf32>
    %94 = tpu.matmul %92, %93, %cst_32 {dimension_numbers = #tpu.dot_dimension_numbers<[1], [0], [0], [1], [0, 0, 1, 1], [], []>} : vector<16x16xbf16>, vector<16x8xbf16>, vector<16x8xf32> -> vector<16x8xf32>
    %95 = vector.extract_strided_slice %91 {offsets = [16, 0], sizes = [16, 16], strides = [1, 1]} : vector<128x16xbf16> to vector<16x16xbf16>
    %96 = vector.extract_strided_slice %55 {offsets = [0, 8], sizes = [16, 8], strides = [1, 1]} : vector<32x32xbf16> to vector<16x8xbf16>
    %cst_33 = arith.constant dense<0.000000e+00> : vector<16x8xf32>
    %97 = tpu.matmul %95, %96, %cst_33 {dimension_numbers = #tpu.dot_dimension_numbers<[1], [0], [0], [1], [0, 0, 1, 1], [], []>} : vector<16x16xbf16>, vector<16x8xbf16>, vector<16x8xf32> -> vector<16x8xf32>
    %98 = vector.extract_strided_slice %91 {offsets = [32, 0], sizes = [16, 16], strides = [1, 1]} : vector<128x16xbf16> to vector<16x16xbf16>
    %99 = vector.extract_strided_slice %55 {offsets = [0, 16], sizes = [16, 8], strides = [1, 1]} : vector<32x32xbf16> to vector<16x8xbf16>
    %cst_34 = arith.constant dense<0.000000e+00> : vector<16x8xf32>
    %100 = tpu.matmul %98, %99, %cst_34 {dimension_numbers = #tpu.dot_dimension_numbers<[1], [0], [0], [1], [0, 0, 1, 1], [], []>} : vector<16x16xbf16>, vector<16x8xbf16>, vector<16x8xf32> -> vector<16x8xf32>
    %101 = vector.extract_strided_slice %91 {offsets = [48, 0], sizes = [16, 16], strides = [1, 1]} : vector<128x16xbf16> to vector<16x16xbf16>
    %102 = vector.extract_strided_slice %55 {offsets = [0, 24], sizes = [16, 8], strides = [1, 1]} : vector<32x32xbf16> to vector<16x8xbf16>
    %cst_35 = arith.constant dense<0.000000e+00> : vector<16x8xf32>
    %103 = tpu.matmul %101, %102, %cst_35 {dimension_numbers = #tpu.dot_dimension_numbers<[1], [0], [0], [1], [0, 0, 1, 1], [], []>} : vector<16x16xbf16>, vector<16x8xbf16>, vector<16x8xf32> -> vector<16x8xf32>
    %104 = tpu.concatenate %94, %97, %100, %103 in 1 : vector<16x8xf32>, vector<16x8xf32>, vector<16x8xf32>, vector<16x8xf32> -> vector<16x32xf32>
    %105 = vector.extract_strided_slice %91 {offsets = [64, 0], sizes = [16, 16], strides = [1, 1]} : vector<128x16xbf16> to vector<16x16xbf16>
    %106 = vector.extract_strided_slice %55 {offsets = [16, 0], sizes = [16, 8], strides = [1, 1]} : vector<32x32xbf16> to vector<16x8xbf16>
    %cst_36 = arith.constant dense<0.000000e+00> : vector<16x8xf32>
    %107 = tpu.matmul %105, %106, %cst_36 {dimension_numbers = #tpu.dot_dimension_numbers<[1], [0], [0], [1], [0, 0, 1, 1], [], []>} : vector<16x16xbf16>, vector<16x8xbf16>, vector<16x8xf32> -> vector<16x8xf32>
    %108 = vector.extract_strided_slice %91 {offsets = [80, 0], sizes = [16, 16], strides = [1, 1]} : vector<128x16xbf16> to vector<16x16xbf16>
    %109 = vector.extract_strided_slice %55 {offsets = [16, 8], sizes = [16, 8], strides = [1, 1]} : vector<32x32xbf16> to vector<16x8xbf16>
    %cst_37 = arith.constant dense<0.000000e+00> : vector<16x8xf32>
    %110 = tpu.matmul %108, %109, %cst_37 {dimension_numbers = #tpu.dot_dimension_numbers<[1], [0], [0], [1], [0, 0, 1, 1], [], []>} : vector<16x16xbf16>, vector<16x8xbf16>, vector<16x8xf32> -> vector<16x8xf32>
    %111 = vector.extract_strided_slice %91 {offsets = [96, 0], sizes = [16, 16], strides = [1, 1]} : vector<128x16xbf16> to vector<16x16xbf16>
    %112 = vector.extract_strided_slice %55 {offsets = [16, 16], sizes = [16, 8], strides = [1, 1]} : vector<32x32xbf16> to vector<16x8xbf16>
    %cst_38 = arith.constant dense<0.000000e+00> : vector<16x8xf32>
    %113 = tpu.matmul %111, %112, %cst_38 {dimension_numbers = #tpu.dot_dimension_numbers<[1], [0], [0], [1], [0, 0, 1, 1], [], []>} : vector<16x16xbf16>, vector<16x8xbf16>, vector<16x8xf32> -> vector<16x8xf32>
    %114 = vector.extract_strided_slice %91 {offsets = [112, 0], sizes = [16, 16], strides = [1, 1]} : vector<128x16xbf16> to vector<16x16xbf16>
    %115 = vector.extract_strided_slice %55 {offsets = [16, 24], sizes = [16, 8], strides = [1, 1]} : vector<32x32xbf16> to vector<16x8xbf16>
    %cst_39 = arith.constant dense<0.000000e+00> : vector<16x8xf32>
    %116 = tpu.matmul %114, %115, %cst_39 {dimension_numbers = #tpu.dot_dimension_numbers<[1], [0], [0], [1], [0, 0, 1, 1], [], []>} : vector<16x16xbf16>, vector<16x8xbf16>, vector<16x8xf32> -> vector<16x8xf32>
    %117 = tpu.concatenate %107, %110, %113, %116 in 1 : vector<16x8xf32>, vector<16x8xf32>, vector<16x8xf32>, vector<16x8xf32> -> vector<16x32xf32>
    %118 = tpu.concatenate %104, %117 in 0 : vector<16x32xf32>, vector<16x32xf32> -> vector<32x32xf32>
    %119 = arith.truncf %118 : vector<32x32xf32> to vector<32x32xbf16>
    %c0_40 = arith.constant 0 : index
    %c0_41 = arith.constant 0 : index
    %c0_42 = arith.constant 0 : index
    %120 = vector.load %arg6[%c0_40, %c0_41, %c0_42] : memref<2x32x32xbf16, #tpu.memory_space<vmem>>, vector<1x32x32xbf16>
    %121 = vector.shape_cast %120 : vector<1x32x32xbf16> to vector<32x32xbf16>
    %cst_43 = arith.constant dense<0.000000e+00> : vector<32x32xf32>
    %122 = tpu.matmul %119, %121, %cst_43 {dimension_numbers = #tpu.dot_dimension_numbers<[1], [0], [0], [1], [0, 0, 1, 1], [], []>} : vector<32x32xbf16>, vector<32x32xbf16>, vector<32x32xf32> -> vector<32x32xf32>
    %123 = arith.addf %23, %122 : vector<32x32xf32>
    %c0_44 = arith.constant 0 : index
    %c0_45 = arith.constant 0 : index
    %c0_46 = arith.constant 0 : index
    %124 = vector.load %arg7[%c0_44, %c0_45, %c0_46] : memref<2x1x32xf32, #tpu.memory_space<vmem>>, vector<1x1x32xf32>
    %125 = vector.shape_cast %124 : vector<1x1x32xf32> to vector<1x32xf32>
    %126 = arith.mulf %123, %123 : vector<32x32xf32>
    %cst_47 = arith.constant dense<0.000000e+00> : vector<32xf32>
    %127 = vector.multi_reduction <add>, %126, %cst_47 [1] : vector<32x32xf32> to vector<32xf32>
    %128 = vector.shape_cast %127 : vector<32xf32> to vector<32x1xf32>
    %cst_48 = arith.constant 3.200000e+01 : f32
    %129 = vector.broadcast %cst_48 : f32 to vector<32x1xf32>
    %130 = arith.divf %128, %129 : vector<32x1xf32>
    %cst_49 = arith.constant 9.99999997E-7 : f32
    %131 = vector.broadcast %cst_49 : f32 to vector<32x1xf32>
    %132 = arith.addf %130, %131 : vector<32x1xf32>
    %133 = math.rsqrt %132 : vector<32x1xf32>
    %134 = vector.broadcast %133 : vector<32x1xf32> to vector<32x32xf32>
    %135 = arith.mulf %123, %134 : vector<32x32xf32>
    %136 = vector.broadcast %125 : vector<1x32xf32> to vector<32x32xf32>
    %137 = arith.mulf %135, %136 : vector<32x32xf32>
    %138 = arith.truncf %137 : vector<32x32xf32> to vector<32x32xbf16>
    %c0_50 = arith.constant 0 : index
    %c0_51 = arith.constant 0 : index
    %c0_52 = arith.constant 0 : index
    %139 = vector.load %arg8[%c0_50, %c0_51, %c0_52] : memref<2x32x128xbf16, #tpu.memory_space<vmem>>, vector<1x32x128xbf16>
    %140 = vector.shape_cast %139 : vector<1x32x128xbf16> to vector<32x128xbf16>
    %cst_53 = arith.constant dense<0.000000e+00> : vector<32x128xf32>
    %141 = tpu.matmul %138, %140, %cst_53 {dimension_numbers = #tpu.dot_dimension_numbers<[1], [0], [0], [1], [0, 0, 1, 1], [], []>} : vector<32x32xbf16>, vector<32x128xbf16>, vector<32x128xf32> -> vector<32x128xf32>
    %142 = vector.extract_strided_slice %141 {offsets = [0, 0], sizes = [32, 64], strides = [1, 1]} : vector<32x128xf32> to vector<32x64xf32>
    %143 = vector.extract_strided_slice %141 {offsets = [0, 64], sizes = [32, 64], strides = [1, 1]} : vector<32x128xf32> to vector<32x64xf32>
    %144 = arith.negf %142 : vector<32x64xf32>
    %145 = math.exp %144 : vector<32x64xf32>
    %cst_54 = arith.constant 1.000000e+00 : f32
    %146 = vector.broadcast %cst_54 : f32 to vector<32x64xf32>
    %147 = arith.addf %146, %145 : vector<32x64xf32>
    %148 = arith.divf %146, %147 : vector<32x64xf32>
    %149 = arith.mulf %142, %148 : vector<32x64xf32>
    %150 = arith.mulf %149, %143 : vector<32x64xf32>
    %151 = arith.truncf %150 : vector<32x64xf32> to vector<32x64xbf16>
    %c0_55 = arith.constant 0 : index
    %c0_56 = arith.constant 0 : index
    %c0_57 = arith.constant 0 : index
    %152 = vector.load %arg9[%c0_55, %c0_56, %c0_57] : memref<2x64x32xbf16, #tpu.memory_space<vmem>>, vector<1x64x32xbf16>
    %153 = vector.shape_cast %152 : vector<1x64x32xbf16> to vector<64x32xbf16>
    %cst_58 = arith.constant dense<0.000000e+00> : vector<32x32xf32>
    %154 = tpu.matmul %151, %153, %cst_58 {dimension_numbers = #tpu.dot_dimension_numbers<[1], [0], [0], [1], [0, 0, 1, 1], [], []>} : vector<32x64xbf16>, vector<64x32xbf16>, vector<32x32xf32> -> vector<32x32xf32>
    %155 = arith.addf %123, %154 : vector<32x32xf32>
    %c1 = arith.constant 1 : index
    %c0_59 = arith.constant 0 : index
    %c0_60 = arith.constant 0 : index
    %156 = vector.load %arg4[%c1, %c0_59, %c0_60] : memref<2x1x32xf32, #tpu.memory_space<vmem>>, vector<1x1x32xf32>
    %157 = vector.shape_cast %156 : vector<1x1x32xf32> to vector<1x32xf32>
    %158 = arith.mulf %155, %155 : vector<32x32xf32>
    %cst_61 = arith.constant dense<0.000000e+00> : vector<32xf32>
    %159 = vector.multi_reduction <add>, %158, %cst_61 [1] : vector<32x32xf32> to vector<32xf32>
    %160 = vector.shape_cast %159 : vector<32xf32> to vector<32x1xf32>
    %cst_62 = arith.constant 3.200000e+01 : f32
    %161 = vector.broadcast %cst_62 : f32 to vector<32x1xf32>
    %162 = arith.divf %160, %161 : vector<32x1xf32>
    %cst_63 = arith.constant 9.99999997E-7 : f32
    %163 = vector.broadcast %cst_63 : f32 to vector<32x1xf32>
    %164 = arith.addf %162, %163 : vector<32x1xf32>
    %165 = math.rsqrt %164 : vector<32x1xf32>
    %166 = vector.broadcast %165 : vector<32x1xf32> to vector<32x32xf32>
    %167 = arith.mulf %155, %166 : vector<32x32xf32>
    %168 = vector.broadcast %157 : vector<1x32xf32> to vector<32x32xf32>
    %169 = arith.mulf %167, %168 : vector<32x32xf32>
    %170 = arith.truncf %169 : vector<32x32xf32> to vector<32x32xbf16>
    %c1_64 = arith.constant 1 : index
    %c0_65 = arith.constant 0 : index
    %c0_66 = arith.constant 0 : index
    %171 = vector.load %arg5[%c1_64, %c0_65, %c0_66] : memref<2x32x160xbf16, #tpu.memory_space<vmem>>, vector<1x32x160xbf16>
    %172 = vector.shape_cast %171 : vector<1x32x160xbf16> to vector<32x160xbf16>
    %cst_67 = arith.constant dense<0.000000e+00> : vector<32x160xf32>
    %173 = tpu.matmul %170, %172, %cst_67 {dimension_numbers = #tpu.dot_dimension_numbers<[1], [0], [0], [1], [0, 0, 1, 1], [], []>} : vector<32x32xbf16>, vector<32x160xbf16>, vector<32x160xf32> -> vector<32x160xf32>
    %174 = vector.extract_strided_slice %173 {offsets = [0, 0], sizes = [32, 32], strides = [1, 1]} : vector<32x160xf32> to vector<32x32xf32>
    %175 = arith.mulf %174, %21 : vector<32x32xf32>
    %176 = vector.extract_strided_slice %173 {offsets = [0, 32], sizes = [32, 32], strides = [1, 1]} : vector<32x160xf32> to vector<32x32xf32>
    %177 = arith.mulf %176, %22 : vector<32x32xf32>
    %178 = arith.addf %175, %177 : vector<32x32xf32>
    %179 = vector.extract_strided_slice %173 {offsets = [0, 64], sizes = [32, 32], strides = [1, 1]} : vector<32x160xf32> to vector<32x32xf32>
    %180 = arith.mulf %179, %21 : vector<32x32xf32>
    %181 = vector.extract_strided_slice %173 {offsets = [0, 96], sizes = [32, 32], strides = [1, 1]} : vector<32x160xf32> to vector<32x32xf32>
    %182 = arith.mulf %181, %22 : vector<32x32xf32>
    %183 = arith.addf %180, %182 : vector<32x32xf32>
    %184 = vector.extract_strided_slice %173 {offsets = [0, 128], sizes = [32, 32], strides = [1, 1]} : vector<32x160xf32> to vector<32x32xf32>
    %185 = arith.truncf %178 : vector<32x32xf32> to vector<32x32xbf16>
    %186 = arith.truncf %183 : vector<32x32xf32> to vector<32x32xbf16>
    %187 = arith.truncf %184 : vector<32x32xf32> to vector<32x32xbf16>
    %188 = vector.extract_strided_slice %185 {offsets = [0, 0], sizes = [16, 8], strides = [1, 1]} : vector<32x32xbf16> to vector<16x8xbf16>
    %189 = vector.extract_strided_slice %186 {offsets = [0, 0], sizes = [16, 8], strides = [1, 1]} : vector<32x32xbf16> to vector<16x8xbf16>
    %cst_68 = arith.constant dense<0.000000e+00> : vector<16x16xf32>
    %190 = tpu.matmul %188, %189, %cst_68 {dimension_numbers = #tpu.dot_dimension_numbers<[1], [1], [0], [0], [0, 0, 1, 0], [], []>} : vector<16x8xbf16>, vector<16x8xbf16>, vector<16x16xf32> -> vector<16x16xf32>
    %191 = vector.extract_strided_slice %185 {offsets = [0, 8], sizes = [16, 8], strides = [1, 1]} : vector<32x32xbf16> to vector<16x8xbf16>
    %192 = vector.extract_strided_slice %186 {offsets = [0, 8], sizes = [16, 8], strides = [1, 1]} : vector<32x32xbf16> to vector<16x8xbf16>
    %cst_69 = arith.constant dense<0.000000e+00> : vector<16x16xf32>
    %193 = tpu.matmul %191, %192, %cst_69 {dimension_numbers = #tpu.dot_dimension_numbers<[1], [1], [0], [0], [0, 0, 1, 0], [], []>} : vector<16x8xbf16>, vector<16x8xbf16>, vector<16x16xf32> -> vector<16x16xf32>
    %194 = vector.extract_strided_slice %185 {offsets = [0, 16], sizes = [16, 8], strides = [1, 1]} : vector<32x32xbf16> to vector<16x8xbf16>
    %195 = vector.extract_strided_slice %186 {offsets = [0, 16], sizes = [16, 8], strides = [1, 1]} : vector<32x32xbf16> to vector<16x8xbf16>
    %cst_70 = arith.constant dense<0.000000e+00> : vector<16x16xf32>
    %196 = tpu.matmul %194, %195, %cst_70 {dimension_numbers = #tpu.dot_dimension_numbers<[1], [1], [0], [0], [0, 0, 1, 0], [], []>} : vector<16x8xbf16>, vector<16x8xbf16>, vector<16x16xf32> -> vector<16x16xf32>
    %197 = vector.extract_strided_slice %185 {offsets = [0, 24], sizes = [16, 8], strides = [1, 1]} : vector<32x32xbf16> to vector<16x8xbf16>
    %198 = vector.extract_strided_slice %186 {offsets = [0, 24], sizes = [16, 8], strides = [1, 1]} : vector<32x32xbf16> to vector<16x8xbf16>
    %cst_71 = arith.constant dense<0.000000e+00> : vector<16x16xf32>
    %199 = tpu.matmul %197, %198, %cst_71 {dimension_numbers = #tpu.dot_dimension_numbers<[1], [1], [0], [0], [0, 0, 1, 0], [], []>} : vector<16x8xbf16>, vector<16x8xbf16>, vector<16x16xf32> -> vector<16x16xf32>
    %200 = vector.extract_strided_slice %185 {offsets = [16, 0], sizes = [16, 8], strides = [1, 1]} : vector<32x32xbf16> to vector<16x8xbf16>
    %201 = vector.extract_strided_slice %186 {offsets = [16, 0], sizes = [16, 8], strides = [1, 1]} : vector<32x32xbf16> to vector<16x8xbf16>
    %cst_72 = arith.constant dense<0.000000e+00> : vector<16x16xf32>
    %202 = tpu.matmul %200, %201, %cst_72 {dimension_numbers = #tpu.dot_dimension_numbers<[1], [1], [0], [0], [0, 0, 1, 0], [], []>} : vector<16x8xbf16>, vector<16x8xbf16>, vector<16x16xf32> -> vector<16x16xf32>
    %203 = vector.extract_strided_slice %185 {offsets = [16, 8], sizes = [16, 8], strides = [1, 1]} : vector<32x32xbf16> to vector<16x8xbf16>
    %204 = vector.extract_strided_slice %186 {offsets = [16, 8], sizes = [16, 8], strides = [1, 1]} : vector<32x32xbf16> to vector<16x8xbf16>
    %cst_73 = arith.constant dense<0.000000e+00> : vector<16x16xf32>
    %205 = tpu.matmul %203, %204, %cst_73 {dimension_numbers = #tpu.dot_dimension_numbers<[1], [1], [0], [0], [0, 0, 1, 0], [], []>} : vector<16x8xbf16>, vector<16x8xbf16>, vector<16x16xf32> -> vector<16x16xf32>
    %206 = vector.extract_strided_slice %185 {offsets = [16, 16], sizes = [16, 8], strides = [1, 1]} : vector<32x32xbf16> to vector<16x8xbf16>
    %207 = vector.extract_strided_slice %186 {offsets = [16, 16], sizes = [16, 8], strides = [1, 1]} : vector<32x32xbf16> to vector<16x8xbf16>
    %cst_74 = arith.constant dense<0.000000e+00> : vector<16x16xf32>
    %208 = tpu.matmul %206, %207, %cst_74 {dimension_numbers = #tpu.dot_dimension_numbers<[1], [1], [0], [0], [0, 0, 1, 0], [], []>} : vector<16x8xbf16>, vector<16x8xbf16>, vector<16x16xf32> -> vector<16x16xf32>
    %209 = vector.extract_strided_slice %185 {offsets = [16, 24], sizes = [16, 8], strides = [1, 1]} : vector<32x32xbf16> to vector<16x8xbf16>
    %210 = vector.extract_strided_slice %186 {offsets = [16, 24], sizes = [16, 8], strides = [1, 1]} : vector<32x32xbf16> to vector<16x8xbf16>
    %cst_75 = arith.constant dense<0.000000e+00> : vector<16x16xf32>
    %211 = tpu.matmul %209, %210, %cst_75 {dimension_numbers = #tpu.dot_dimension_numbers<[1], [1], [0], [0], [0, 0, 1, 0], [], []>} : vector<16x8xbf16>, vector<16x8xbf16>, vector<16x16xf32> -> vector<16x16xf32>
    %212 = tpu.concatenate %190, %193, %196, %199, %202, %205, %208, %211 in 0 : vector<16x16xf32>, vector<16x16xf32>, vector<16x16xf32>, vector<16x16xf32>, vector<16x16xf32>, vector<16x16xf32>, vector<16x16xf32>, vector<16x16xf32> -> vector<128x16xf32>
    %213 = arith.addf %212, %20 : vector<128x16xf32>
    %cst_76 = arith.constant dense<0xFF800000> : vector<128xf32>
    %214 = vector.multi_reduction <maximumf>, %213, %cst_76 [1] : vector<128x16xf32> to vector<128xf32>
    %215 = vector.shape_cast %214 : vector<128xf32> to vector<128x1xf32>
    %216 = vector.broadcast %215 : vector<128x1xf32> to vector<128x16xf32>
    %217 = arith.subf %213, %216 : vector<128x16xf32>
    %218 = math.exp %217 : vector<128x16xf32>
    %cst_77 = arith.constant dense<0.000000e+00> : vector<128xf32>
    %219 = vector.multi_reduction <add>, %218, %cst_77 [1] : vector<128x16xf32> to vector<128xf32>
    %220 = vector.shape_cast %219 : vector<128xf32> to vector<128x1xf32>
    %221 = vector.broadcast %220 : vector<128x1xf32> to vector<128x16xf32>
    %222 = arith.divf %218, %221 : vector<128x16xf32>
    %223 = arith.truncf %222 : vector<128x16xf32> to vector<128x16xbf16>
    %224 = vector.extract_strided_slice %223 {offsets = [0, 0], sizes = [16, 16], strides = [1, 1]} : vector<128x16xbf16> to vector<16x16xbf16>
    %225 = vector.extract_strided_slice %187 {offsets = [0, 0], sizes = [16, 8], strides = [1, 1]} : vector<32x32xbf16> to vector<16x8xbf16>
    %cst_78 = arith.constant dense<0.000000e+00> : vector<16x8xf32>
    %226 = tpu.matmul %224, %225, %cst_78 {dimension_numbers = #tpu.dot_dimension_numbers<[1], [0], [0], [1], [0, 0, 1, 1], [], []>} : vector<16x16xbf16>, vector<16x8xbf16>, vector<16x8xf32> -> vector<16x8xf32>
    %227 = vector.extract_strided_slice %223 {offsets = [16, 0], sizes = [16, 16], strides = [1, 1]} : vector<128x16xbf16> to vector<16x16xbf16>
    %228 = vector.extract_strided_slice %187 {offsets = [0, 8], sizes = [16, 8], strides = [1, 1]} : vector<32x32xbf16> to vector<16x8xbf16>
    %cst_79 = arith.constant dense<0.000000e+00> : vector<16x8xf32>
    %229 = tpu.matmul %227, %228, %cst_79 {dimension_numbers = #tpu.dot_dimension_numbers<[1], [0], [0], [1], [0, 0, 1, 1], [], []>} : vector<16x16xbf16>, vector<16x8xbf16>, vector<16x8xf32> -> vector<16x8xf32>
    %230 = vector.extract_strided_slice %223 {offsets = [32, 0], sizes = [16, 16], strides = [1, 1]} : vector<128x16xbf16> to vector<16x16xbf16>
    %231 = vector.extract_strided_slice %187 {offsets = [0, 16], sizes = [16, 8], strides = [1, 1]} : vector<32x32xbf16> to vector<16x8xbf16>
    %cst_80 = arith.constant dense<0.000000e+00> : vector<16x8xf32>
    %232 = tpu.matmul %230, %231, %cst_80 {dimension_numbers = #tpu.dot_dimension_numbers<[1], [0], [0], [1], [0, 0, 1, 1], [], []>} : vector<16x16xbf16>, vector<16x8xbf16>, vector<16x8xf32> -> vector<16x8xf32>
    %233 = vector.extract_strided_slice %223 {offsets = [48, 0], sizes = [16, 16], strides = [1, 1]} : vector<128x16xbf16> to vector<16x16xbf16>
    %234 = vector.extract_strided_slice %187 {offsets = [0, 24], sizes = [16, 8], strides = [1, 1]} : vector<32x32xbf16> to vector<16x8xbf16>
    %cst_81 = arith.constant dense<0.000000e+00> : vector<16x8xf32>
    %235 = tpu.matmul %233, %234, %cst_81 {dimension_numbers = #tpu.dot_dimension_numbers<[1], [0], [0], [1], [0, 0, 1, 1], [], []>} : vector<16x16xbf16>, vector<16x8xbf16>, vector<16x8xf32> -> vector<16x8xf32>
    %236 = tpu.concatenate %226, %229, %232, %235 in 1 : vector<16x8xf32>, vector<16x8xf32>, vector<16x8xf32>, vector<16x8xf32> -> vector<16x32xf32>
    %237 = vector.extract_strided_slice %223 {offsets = [64, 0], sizes = [16, 16], strides = [1, 1]} : vector<128x16xbf16> to vector<16x16xbf16>
    %238 = vector.extract_strided_slice %187 {offsets = [16, 0], sizes = [16, 8], strides = [1, 1]} : vector<32x32xbf16> to vector<16x8xbf16>
    %cst_82 = arith.constant dense<0.000000e+00> : vector<16x8xf32>
    %239 = tpu.matmul %237, %238, %cst_82 {dimension_numbers = #tpu.dot_dimension_numbers<[1], [0], [0], [1], [0, 0, 1, 1], [], []>} : vector<16x16xbf16>, vector<16x8xbf16>, vector<16x8xf32> -> vector<16x8xf32>
    %240 = vector.extract_strided_slice %223 {offsets = [80, 0], sizes = [16, 16], strides = [1, 1]} : vector<128x16xbf16> to vector<16x16xbf16>
    %241 = vector.extract_strided_slice %187 {offsets = [16, 8], sizes = [16, 8], strides = [1, 1]} : vector<32x32xbf16> to vector<16x8xbf16>
    %cst_83 = arith.constant dense<0.000000e+00> : vector<16x8xf32>
    %242 = tpu.matmul %240, %241, %cst_83 {dimension_numbers = #tpu.dot_dimension_numbers<[1], [0], [0], [1], [0, 0, 1, 1], [], []>} : vector<16x16xbf16>, vector<16x8xbf16>, vector<16x8xf32> -> vector<16x8xf32>
    %243 = vector.extract_strided_slice %223 {offsets = [96, 0], sizes = [16, 16], strides = [1, 1]} : vector<128x16xbf16> to vector<16x16xbf16>
    %244 = vector.extract_strided_slice %187 {offsets = [16, 16], sizes = [16, 8], strides = [1, 1]} : vector<32x32xbf16> to vector<16x8xbf16>
    %cst_84 = arith.constant dense<0.000000e+00> : vector<16x8xf32>
    %245 = tpu.matmul %243, %244, %cst_84 {dimension_numbers = #tpu.dot_dimension_numbers<[1], [0], [0], [1], [0, 0, 1, 1], [], []>} : vector<16x16xbf16>, vector<16x8xbf16>, vector<16x8xf32> -> vector<16x8xf32>
    %246 = vector.extract_strided_slice %223 {offsets = [112, 0], sizes = [16, 16], strides = [1, 1]} : vector<128x16xbf16> to vector<16x16xbf16>
    %247 = vector.extract_strided_slice %187 {offsets = [16, 24], sizes = [16, 8], strides = [1, 1]} : vector<32x32xbf16> to vector<16x8xbf16>
    %cst_85 = arith.constant dense<0.000000e+00> : vector<16x8xf32>
    %248 = tpu.matmul %246, %247, %cst_85 {dimension_numbers = #tpu.dot_dimension_numbers<[1], [0], [0], [1], [0, 0, 1, 1], [], []>} : vector<16x16xbf16>, vector<16x8xbf16>, vector<16x8xf32> -> vector<16x8xf32>
    %249 = tpu.concatenate %239, %242, %245, %248 in 1 : vector<16x8xf32>, vector<16x8xf32>, vector<16x8xf32>, vector<16x8xf32> -> vector<16x32xf32>
    %250 = tpu.concatenate %236, %249 in 0 : vector<16x32xf32>, vector<16x32xf32> -> vector<32x32xf32>
    %251 = arith.truncf %250 : vector<32x32xf32> to vector<32x32xbf16>
    %c1_86 = arith.constant 1 : index
    %c0_87 = arith.constant 0 : index
    %c0_88 = arith.constant 0 : index
    %252 = vector.load %arg6[%c1_86, %c0_87, %c0_88] : memref<2x32x32xbf16, #tpu.memory_space<vmem>>, vector<1x32x32xbf16>
    %253 = vector.shape_cast %252 : vector<1x32x32xbf16> to vector<32x32xbf16>
    %cst_89 = arith.constant dense<0.000000e+00> : vector<32x32xf32>
    %254 = tpu.matmul %251, %253, %cst_89 {dimension_numbers = #tpu.dot_dimension_numbers<[1], [0], [0], [1], [0, 0, 1, 1], [], []>} : vector<32x32xbf16>, vector<32x32xbf16>, vector<32x32xf32> -> vector<32x32xf32>
    %255 = arith.addf %155, %254 : vector<32x32xf32>
    %c1_90 = arith.constant 1 : index
    %c0_91 = arith.constant 0 : index
    %c0_92 = arith.constant 0 : index
    %256 = vector.load %arg7[%c1_90, %c0_91, %c0_92] : memref<2x1x32xf32, #tpu.memory_space<vmem>>, vector<1x1x32xf32>
    %257 = vector.shape_cast %256 : vector<1x1x32xf32> to vector<1x32xf32>
    %258 = arith.mulf %255, %255 : vector<32x32xf32>
    %cst_93 = arith.constant dense<0.000000e+00> : vector<32xf32>
    %259 = vector.multi_reduction <add>, %258, %cst_93 [1] : vector<32x32xf32> to vector<32xf32>
    %260 = vector.shape_cast %259 : vector<32xf32> to vector<32x1xf32>
    %cst_94 = arith.constant 3.200000e+01 : f32
    %261 = vector.broadcast %cst_94 : f32 to vector<32x1xf32>
    %262 = arith.divf %260, %261 : vector<32x1xf32>
    %cst_95 = arith.constant 9.99999997E-7 : f32
    %263 = vector.broadcast %cst_95 : f32 to vector<32x1xf32>
    %264 = arith.addf %262, %263 : vector<32x1xf32>
    %265 = math.rsqrt %264 : vector<32x1xf32>
    %266 = vector.broadcast %265 : vector<32x1xf32> to vector<32x32xf32>
    %267 = arith.mulf %255, %266 : vector<32x32xf32>
    %268 = vector.broadcast %257 : vector<1x32xf32> to vector<32x32xf32>
    %269 = arith.mulf %267, %268 : vector<32x32xf32>
    %270 = arith.truncf %269 : vector<32x32xf32> to vector<32x32xbf16>
    %c1_96 = arith.constant 1 : index
    %c0_97 = arith.constant 0 : index
    %c0_98 = arith.constant 0 : index
    %271 = vector.load %arg8[%c1_96, %c0_97, %c0_98] : memref<2x32x128xbf16, #tpu.memory_space<vmem>>, vector<1x32x128xbf16>
    %272 = vector.shape_cast %271 : vector<1x32x128xbf16> to vector<32x128xbf16>
    %cst_99 = arith.constant dense<0.000000e+00> : vector<32x128xf32>
    %273 = tpu.matmul %270, %272, %cst_99 {dimension_numbers = #tpu.dot_dimension_numbers<[1], [0], [0], [1], [0, 0, 1, 1], [], []>} : vector<32x32xbf16>, vector<32x128xbf16>, vector<32x128xf32> -> vector<32x128xf32>
    %274 = vector.extract_strided_slice %273 {offsets = [0, 0], sizes = [32, 64], strides = [1, 1]} : vector<32x128xf32> to vector<32x64xf32>
    %275 = vector.extract_strided_slice %273 {offsets = [0, 64], sizes = [32, 64], strides = [1, 1]} : vector<32x128xf32> to vector<32x64xf32>
    %276 = arith.negf %274 : vector<32x64xf32>
    %277 = math.exp %276 : vector<32x64xf32>
    %cst_100 = arith.constant 1.000000e+00 : f32
    %278 = vector.broadcast %cst_100 : f32 to vector<32x64xf32>
    %279 = arith.addf %278, %277 : vector<32x64xf32>
    %280 = arith.divf %278, %279 : vector<32x64xf32>
    %281 = arith.mulf %274, %280 : vector<32x64xf32>
    %282 = arith.mulf %281, %275 : vector<32x64xf32>
    %283 = arith.truncf %282 : vector<32x64xf32> to vector<32x64xbf16>
    %c1_101 = arith.constant 1 : index
    %c0_102 = arith.constant 0 : index
    %c0_103 = arith.constant 0 : index
    %284 = vector.load %arg9[%c1_101, %c0_102, %c0_103] : memref<2x64x32xbf16, #tpu.memory_space<vmem>>, vector<1x64x32xbf16>
    %285 = vector.shape_cast %284 : vector<1x64x32xbf16> to vector<64x32xbf16>
    %cst_104 = arith.constant dense<0.000000e+00> : vector<32x32xf32>
    %286 = tpu.matmul %283, %285, %cst_104 {dimension_numbers = #tpu.dot_dimension_numbers<[1], [0], [0], [1], [0, 0, 1, 1], [], []>} : vector<32x64xbf16>, vector<64x32xbf16>, vector<32x32xf32> -> vector<32x32xf32>
    %287 = arith.addf %255, %286 : vector<32x32xf32>
    %c0_105 = arith.constant 0 : index
    %c0_106 = arith.constant 0 : index
    %288 = vector.load %arg10[%c0_105, %c0_106] : memref<1x32xf32, #tpu.memory_space<vmem>>, vector<1x32xf32>
    %289 = arith.mulf %287, %287 : vector<32x32xf32>
    %cst_107 = arith.constant dense<0.000000e+00> : vector<32xf32>
    %290 = vector.multi_reduction <add>, %289, %cst_107 [1] : vector<32x32xf32> to vector<32xf32>
    %291 = vector.shape_cast %290 : vector<32xf32> to vector<32x1xf32>
    %cst_108 = arith.constant 3.200000e+01 : f32
    %292 = vector.broadcast %cst_108 : f32 to vector<32x1xf32>
    %293 = arith.divf %291, %292 : vector<32x1xf32>
    %cst_109 = arith.constant 9.99999997E-7 : f32
    %294 = vector.broadcast %cst_109 : f32 to vector<32x1xf32>
    %295 = arith.addf %293, %294 : vector<32x1xf32>
    %296 = math.rsqrt %295 : vector<32x1xf32>
    %297 = vector.broadcast %296 : vector<32x1xf32> to vector<32x32xf32>
    %298 = arith.mulf %287, %297 : vector<32x32xf32>
    %299 = vector.broadcast %288 : vector<1x32xf32> to vector<32x32xf32>
    %300 = arith.mulf %298, %299 : vector<32x32xf32>
    %301 = arith.truncf %300 : vector<32x32xf32> to vector<32x32xbf16>
    %c0_110 = arith.constant 0 : index
    %c0_111 = arith.constant 0 : index
    %302 = vector.load %arg11[%c0_110, %c0_111] : memref<32x128xbf16, #tpu.memory_space<vmem>>, vector<32x128xbf16>
    %cst_112 = arith.constant dense<0.000000e+00> : vector<32x128xf32>
    %303 = tpu.matmul %301, %302, %cst_112 {dimension_numbers = #tpu.dot_dimension_numbers<[1], [0], [0], [1], [0, 0, 1, 1], [], []>} : vector<32x32xbf16>, vector<32x128xbf16>, vector<32x128xf32> -> vector<32x128xf32>
    %c0_113 = arith.constant 0 : index
    %c0_114 = arith.constant 0 : index
    %304 = vector.load %arg12[%c0_113, %c0_114] : memref<32x16xbf16, #tpu.memory_space<vmem>>, vector<32x16xbf16>
    %cst_115 = arith.constant dense<0.000000e+00> : vector<32x16xf32>
    %305 = tpu.matmul %301, %304, %cst_115 {dimension_numbers = #tpu.dot_dimension_numbers<[1], [0], [0], [1], [0, 0, 1, 1], [], []>} : vector<32x32xbf16>, vector<32x16xbf16>, vector<32x16xf32> -> vector<32x16xf32>
    %c0_116 = arith.constant 0 : index
    %c0_117 = arith.constant 0 : index
    %306 = vector.load %arg13[%c0_116, %c0_117] : memref<1x16xf32, #tpu.memory_space<vmem>>, vector<1x16xf32>
    %307 = vector.broadcast %306 : vector<1x16xf32> to vector<32x16xf32>
    %308 = arith.addf %305, %307 : vector<32x16xf32>
    %309 = arith.truncf %308 : vector<32x16xf32> to vector<32x16xbf16>
    %c0_118 = arith.constant 0 : index
    %c0_119 = arith.constant 0 : index
    %310 = vector.load %arg14[%c0_118, %c0_119] : memref<16x32xbf16, #tpu.memory_space<vmem>>, vector<16x32xbf16>
    %cst_120 = arith.constant dense<0.000000e+00> : vector<32x32xf32>
    %311 = tpu.matmul %309, %310, %cst_120 {dimension_numbers = #tpu.dot_dimension_numbers<[1], [0], [0], [1], [0, 0, 1, 1], [], []>} : vector<32x16xbf16>, vector<16x32xbf16>, vector<32x32xf32> -> vector<32x32xf32>
    %c0_121 = arith.constant 0 : index
    %c0_122 = arith.constant 0 : index
    %312 = vector.load %arg15[%c0_121, %c0_122] : memref<1x32xf32, #tpu.memory_space<vmem>>, vector<1x32xf32>
    %313 = vector.broadcast %312 : vector<1x32xf32> to vector<32x32xf32>
    %314 = arith.addf %311, %313 : vector<32x32xf32>
    %315 = arith.truncf %314 : vector<32x32xf32> to vector<32x32xbf16>
    %c0_123 = arith.constant 0 : index
    %c0_124 = arith.constant 0 : index
    %316 = vector.load %arg16[%c0_123, %c0_124] : memref<32x128xbf16, #tpu.memory_space<vmem>>, vector<32x128xbf16>
    %cst_125 = arith.constant dense<0.000000e+00> : vector<32x128xf32>
    %317 = tpu.matmul %315, %316, %cst_125 {dimension_numbers = #tpu.dot_dimension_numbers<[1], [0], [0], [1], [0, 0, 1, 1], [], []>} : vector<32x32xbf16>, vector<32x128xbf16>, vector<32x128xf32> -> vector<32x128xf32>
    %cst_126 = arith.constant dense<0xFF800000> : vector<32xf32>
    %318 = vector.multi_reduction <maximumf>, %303, %cst_126 [1] : vector<32x128xf32> to vector<32xf32>
    %319 = vector.shape_cast %318 : vector<32xf32> to vector<32x1xf32>
    %320 = vector.broadcast %319 : vector<32x1xf32> to vector<32x128xf32>
    %321 = arith.subf %303, %320 : vector<32x128xf32>
    %322 = math.exp %321 : vector<32x128xf32>
    %cst_127 = arith.constant dense<0.000000e+00> : vector<32xf32>
    %323 = vector.multi_reduction <add>, %322, %cst_127 [1] : vector<32x128xf32> to vector<32xf32>
    %324 = vector.shape_cast %323 : vector<32xf32> to vector<32x1xf32>
    %325 = vector.broadcast %324 : vector<32x1xf32> to vector<32x128xf32>
    %326 = arith.divf %322, %325 : vector<32x128xf32>
    %cst_128 = arith.constant dense<0xFF800000> : vector<32xf32>
    %327 = vector.multi_reduction <maximumf>, %317, %cst_128 [1] : vector<32x128xf32> to vector<32xf32>
    %328 = vector.shape_cast %327 : vector<32xf32> to vector<32x1xf32>
    %329 = vector.broadcast %328 : vector<32x1xf32> to vector<32x128xf32>
    %330 = arith.subf %317, %329 : vector<32x128xf32>
    %331 = math.exp %330 : vector<32x128xf32>
    %cst_129 = arith.constant dense<0.000000e+00> : vector<32xf32>
    %332 = vector.multi_reduction <add>, %331, %cst_129 [1] : vector<32x128xf32> to vector<32xf32>
    %333 = vector.shape_cast %332 : vector<32xf32> to vector<32x1xf32>
    %334 = vector.broadcast %333 : vector<32x1xf32> to vector<32x128xf32>
    %335 = arith.divf %331, %334 : vector<32x128xf32>
    %c0_130 = arith.constant 0 : index
    %c0_131 = arith.constant 0 : index
    %336 = memref.load %arg18[%c0_130, %c0_131] : memref<1x1xf32, #tpu.memory_space<smem>>
    %cst_132 = arith.constant 1.000000e+00 : f32
    %337 = arith.subf %cst_132, %336 : f32
    %338 = vector.broadcast %337 : f32 to vector<32x128xf32>
    %339 = arith.mulf %326, %338 : vector<32x128xf32>
    %340 = vector.broadcast %336 : f32 to vector<32x128xf32>
    %341 = arith.mulf %340, %335 : vector<32x128xf32>
    %342 = arith.addf %339, %341 : vector<32x128xf32>
    %cst_133 = arith.constant dense<0.000000e+00> : vector<32xf32>
    %343 = vector.multi_reduction <add>, %342, %cst_133 [1] : vector<32x128xf32> to vector<32xf32>
    %344 = vector.shape_cast %343 : vector<32xf32> to vector<32x1xf32>
    %345 = vector.broadcast %344 : vector<32x1xf32> to vector<32x128xf32>
    %346 = arith.divf %342, %345 : vector<32x128xf32>
    %347 = math.log %346 : vector<32x128xf32>
    %c0_134 = arith.constant 0 : index
    %c0_135 = arith.constant 0 : index
    %348 = vector.load %arg17[%c0_134, %c0_135] : memref<32x1xi32, #tpu.memory_space<vmem>>, vector<32x1xi32>
    %349 = tpu.iota {dimensions = array<i32: 1>} : vector<32x128xi32>
    %350 = vector.broadcast %348 : vector<32x1xi32> to vector<32x128xi32>
    %351 = arith.cmpi eq, %349, %350 : vector<32x128xi32>
    %cst_136 = arith.constant 0.000000e+00 : f32
    %352 = vector.broadcast %cst_136 : f32 to vector<32x128xf32>
    %353 = arith.select %351, %347, %352 : vector<32x128xi1>, vector<32x128xf32>
    %cst_137 = arith.constant dense<0.000000e+00> : vector<32xf32>
    %354 = vector.multi_reduction <add>, %353, %cst_137 [1] : vector<32x128xf32> to vector<32xf32>
    %355 = vector.shape_cast %354 : vector<32xf32> to vector<32x1xf32>
    %c-100_i32 = arith.constant -100 : i32
    %356 = vector.broadcast %c-100_i32 : i32 to vector<32x1xi32>
    %357 = arith.cmpi ne, %348, %356 : vector<32x1xi32>
    %358 = arith.extui %357 : vector<32x1xi1> to vector<32x1xi32>
    %359 = arith.sitofp %358 : vector<32x1xi32> to vector<32x1xf32>
    %cst_138 = arith.constant 0.000000e+00 : f32
    %360 = vector.broadcast %cst_138 : f32 to vector<32x1xf32>
    %361 = arith.subf %360, %355 : vector<32x1xf32>
    %362 = arith.mulf %361, %359 : vector<32x1xf32>
    %cst_139 = arith.constant dense<0.000000e+00> : vector<1xf32>
    %363 = vector.multi_reduction <add>, %362, %cst_139 [0] : vector<32x1xf32> to vector<1xf32>
    %364 = vector.shape_cast %363 : vector<1xf32> to vector<1x1xf32>
    %cst_140 = arith.constant dense<0.000000e+00> : vector<1xf32>
    %365 = vector.multi_reduction <add>, %359, %cst_140 [0] : vector<32x1xf32> to vector<1xf32>
    %366 = vector.shape_cast %365 : vector<1xf32> to vector<1x1xf32>
    %cst_141 = arith.constant 1.000000e+00 : f32
    %367 = vector.broadcast %cst_141 : f32 to vector<1x1xf32>
    %368 = arith.maximumf %366, %367 : vector<1x1xf32>
    %369 = arith.divf %364, %368 : vector<1x1xf32>
    %c0_142 = arith.constant 0 : index
    %c0_143 = arith.constant 0 : index
    %370 = vector.load %arg19[%c0_142, %c0_143] : memref<1x1xf32, #tpu.memory_space<vmem>>, vector<1x1xf32>
    tpu.vector_store %arg19[%c0_142, %c0_143], %369 {strides = array<i32>} : memref<1x1xf32, #tpu.memory_space<vmem>>, vector<1x1xf32>,
    %371 = vector.extract_strided_slice %314 {offsets = [0, 0], sizes = [16, 32], strides = [1, 1]} : vector<32x32xf32> to vector<16x32xf32>
    %cst_144 = arith.constant dense<0.000000e+00> : vector<32xf32>
    %372 = vector.multi_reduction <add>, %371, %cst_144 [0] : vector<16x32xf32> to vector<32xf32>
    %373 = vector.shape_cast %372 : vector<32xf32> to vector<1x32xf32>
    %cst_145 = arith.constant 1.600000e+01 : f32
    %374 = vector.broadcast %cst_145 : f32 to vector<1x32xf32>
    %375 = arith.divf %373, %374 : vector<1x32xf32>
    %376 = vector.extract_strided_slice %314 {offsets = [16, 0], sizes = [16, 32], strides = [1, 1]} : vector<32x32xf32> to vector<16x32xf32>
    %cst_146 = arith.constant dense<0.000000e+00> : vector<32xf32>
    %377 = vector.multi_reduction <add>, %376, %cst_146 [0] : vector<16x32xf32> to vector<32xf32>
    %378 = vector.shape_cast %377 : vector<32xf32> to vector<1x32xf32>
    %cst_147 = arith.constant 1.600000e+01 : f32
    %379 = vector.broadcast %cst_147 : f32 to vector<1x32xf32>
    %380 = arith.divf %378, %379 : vector<1x32xf32>
    %381 = tpu.concatenate %375, %380 in 0 : vector<1x32xf32>, vector<1x32xf32> -> vector<2x32xf32>
    %c0_148 = arith.constant 0 : index
    %c0_149 = arith.constant 0 : index
    %382 = vector.load %arg20[%c0_148, %c0_149] : memref<2x32xf32, #tpu.memory_space<vmem>>, vector<2x32xf32>
    tpu.vector_store %arg20[%c0_148, %c0_149], %381 {strides = array<i32>} : memref<2x32xf32, #tpu.memory_space<vmem>>, vector<2x32xf32>,
    return
  }
}

</mosaic_0001>

<bundles_post_ra>
// kernel: prefer_aug_forward.1
= control target key start
LH: loop header
LB: loop body
LE: loop exit
PB: predicated region body
PF: predicated region fallthrough
CT: control target
= control target key end

     0   :  { %s6016_s0 = inlined_call_operand.vmem [shape: f32[32,32], index: 0, kind: input, shape index: {}]   ;;  %s6017_s1 = inlined_call_operand.vmem [shape: f32[2,16], index: 1, kind: input, shape index: {}]   ;;  %s6018_s2 = inlined_call_operand.vmem [shape: f32[32,32], index: 2, kind: input, shape index: {}]   ;;  %s6019_s3 = inlined_call_operand.vmem [shape: f32[32,32], index: 3, kind: input, shape index: {}]   ;;  %s6020_s4 = inlined_call_operand.vmem [shape: f32[2,1,32], index: 4, kind: input, shape index: {}]   ;;  %s6021_s5 = inlined_call_operand.vmem [shape: bf16[2,32,160], index: 5, kind: input, shape index: {}]   ;;  %s6022_s6 = inlined_call_operand.vmem [shape: bf16[2,32,32], index: 6, kind: input, shape index: {}]   ;;  %s6023_s7 = inlined_call_operand.vmem [shape: f32[2,1,32], index: 7, kind: input, shape index: {}]   ;;  %s6024_s8 = inlined_call_operand.vmem [shape: bf16[2,32,128], index: 8, kind: input, shape index: {}]   ;;  %s6025_s9 = inlined_call_operand.vmem [shape: bf16[2,64,32], index: 9, kind: input, shape index: {}]   ;;  %s6026_s10 = inlined_call_operand.vmem [shape: f32[1,32], index: 10, kind: input, shape index: {}]   ;;  %s6027_s11 = inlined_call_operand.vmem [shape: bf16[32,128], index: 11, kind: input, shape index: {}]   ;;  %s6028_s12 = inlined_call_operand.vmem [shape: bf16[32,16], index: 12, kind: input, shape index: {}]   ;;  %s6029_s13 = inlined_call_operand.vmem [shape: f32[1,16], index: 13, kind: input, shape index: {}]   ;;  %s6030_s14 = inlined_call_operand.vmem [shape: bf16[16,32], index: 14, kind: input, shape index: {}]   ;;  %s6031_s15 = inlined_call_operand.vmem [shape: f32[1,32], index: 15, kind: input, shape index: {}]   ;;  %s6032_s16 = inlined_call_operand.vmem [shape: bf16[32,128], index: 16, kind: input, shape index: {}]   ;;  %s6033_s17 = inlined_call_operand.vmem [shape: s32[32,1], index: 17, kind: input, shape index: {}]   ;;  %s6034_s18 = inlined_call_operand.<no memory space> [shape: f32[1,1], index: 18, kind: input, shape index: {}]   ;;  %s6035_s19 = inlined_call_operand.hbm [shape: f32[1,1], index: 19, kind: output, shape index: {0}]   ;;  %s6036_s20 = inlined_call_operand.vmem [shape: f32[2,32], index: 20, kind: output, shape index: {1}]  }
   0x1   :  { %6053 = sst [smem:[#allocation6_spill]] %s6016_s0 }
   0x2   :  { %6054 = sst [smem:[#allocation7_spill]] %s6017_s1 }
   0x3   :  { %6055 = sst [smem:[#allocation8_spill]] %s6018_s2 }
   0x4   :  { %6056 = sst [smem:[#allocation9_spill]] %s6019_s3 }
   0x5   :  { %6057 = sst [smem:[#allocation10_spill]] %s6020_s4 }
   0x6   :  { %s6058_s23 = sld [smem:[#allocation6_spill]]  ;;  %vm112_vm0 = vcmask 261120  }
   0xc   :  { %v4895_v0 = vld [vmem:[%s6058_s23] sm:$0xff]  ;;  %v4900_v1 = vld [vmem:[%s6058_s23 + $0x8] sm:$0xff]  ;;  %v4905_v2 = vld [vmem:[%s6058_s23 + $0x10] sm:$0xff] }
   0xd   :  { %v108_v3 = vmul.f32 %v4895_v0, %v4895_v0  ;;  %v109_v4 = vmul.f32 %v4900_v1, %v4900_v1  ;;  %v110_v5 = vmul.f32 %v4905_v2, %v4905_v2  ;;  %v4916_v6 = vld [vmem:[%s6058_s23 + $0x18] sm:$0xff] }
   0xe   :  { %v111_v7 = vmul.f32 %v4916_v6, %v4916_v6 }
   0xf   :  { %v113_v8 = vsel %vm112_vm0, %v108_v3, 0.0  ;;  %v116_v9 = vsel %vm112_vm0, %v109_v4, 0.0  ;;  %v119_v10 = vsel %vm112_vm0, %v110_v5, 0.0 }
  0x10   :  { %114 = vadd.xlane.f32.xlu0 %v113_v8  ;;  %120 = vadd.xlane.f32.xlu1 %v119_v10  ;;  %v122_v11 = vsel %vm112_vm0, %v111_v7, 0.0 }
  0x14   :  { %117 = vadd.xlane.f32.xlu0 %v116_v9  ;;  %123 = vadd.xlane.f32.xlu1 %v122_v11 }
  0x15   :  { %27 = vsyncpa [#allocation4], 0  ;;  %v4455_v12 = vld [vmem:[%s6021_s5 + $0x14] ss:$8 sps:$4 sm:$0xff]   ;;  %v4457_v13 = vld [vmem:[%s6021_s5 + $0x10] ss:$8 sps:$4 sm:$0xff]  }
  0x16   :  { %v4458_v14 = vld [vmem:[%s6021_s5 + $0x4] ss:$8 sps:$4 sm:$0xff]   ;;  %196 = vmatprep.subr.bf16.mxu0 %v4455_v12  ;;  %v4770_v15 = vmov 0   ;;  %v4460_v16 = vld [vmem:[%s6021_s5] ss:$8 sps:$4 sm:$0xff]   ;;  %s6059_s25 = sld [smem:[#allocation9_spill]] }
  0x17   :  { %216 = vmatprep.mubr.bf16.mxu0 %v4770_v15  ;;  %197 = vmatpush1.bf16.msra.mxu0 %v4457_v13  ;;  %s4771_s27 = smov 96   ;;  %s4772_s29 = smov 32   ;;  %v4774_v13 = vmov 0.0   ;;  %vm4775_vm1 = vmmov 0   ;;  %vm346_vm2 = vcmask 64512   ;;  %vm768_vm9 = vcmask 130048  }
  0x18   :  { %4454 = vset.pattern.permute.xlu1 %v4770_v15  ;;  %198 = vmatprep.subr.bf16.mxu0 %v4458_v14  ;;  %s6060_s22 = sld [smem:[#allocation8_spill]]  ;;  %s4773_s24 = smov 64   ;;  %vm1167_vm13 = vcmask 195584   ;;  %vm1661_vm14 = vcmask 523264   ;;  %vm3841_vm15 = vcmask 1040384  }
  0x19   :  { %4453 = vset.pattern.permute.xlu0 %v4770_v15  ;;  %s6061_s28 = sld [smem:[#allocation10_spill]]  ;;  %4098 = vmatprep.subr.bf16.mxu1 %v4774_v13  ;;  %s4776_s21 = smov 56  }
  0x1a   :  { %4100 = vmatprep.mubr.msk.bf16.mxu1 %vm4775_vm1, %v4774_v13  ;;  %s4777_s1 = smov 48   ;;  %s6045_s2 = smov 120  }
  0x1b   :  { %199 = vmatpush1.bf16.msra.mxu0 %v4460_v16  ;;  %s4779_s3 = smov 40   ;;  %s6041_s26 = smov 104  }
  0x1c   :  { %v100_v17 = vld [vmem:[%s6059_s25 + $0x8] sm:$0xff]  ;;  %v99_v18 = vld [vmem:[%s6059_s25] sm:$0xff]  ;;  %v101_v19 = vld [vmem:[%s6059_s25 + $0x10] sm:$0xff]  ;;  %4110 = vmatprep.subr.bf16.mxu0 %v4774_v13  ;;  %s6062_s30 = sld [smem:[#allocation7_spill]]  ;;  %s6049_s0 = smov 16  }
  0x1d   :  { %v102_v20 = vld [vmem:[%s6059_s25 + $0x18] sm:$0xff]  ;;  %s6043_s25 = smov 112   ;;  %s6051_s4 = smov 8  }
  0x1e   :  { %v4957_v21 = vld [vmem:[%s6060_s22] sm:$0xff]  ;;  %v4965_v22 = vld [vmem:[%s6060_s22 + $0x8] sm:$0xff] }
  0x1f   :  { %v3863_v39 = vld [vmem:[%s6061_s28] ss:$0 sm:$0xff] }
  0x25   :  { %303 = vrot.lane.b32.xlu1 %v100_v17, %s4771_s27 }
  0x29   :  { %245 = vrot.lane.b32.xlu1 %v99_v18, %s4772_s29 }
  0x2a   :  { %301 = vrot.lane.b32.xlu0 %v99_v18, %s4771_s27 }
  0x2d   :  { %247 = vrot.lane.b32.xlu1 %v100_v17, %s4772_s29 }
  0x2e   :  { %305 = vrot.lane.b32.xlu0 %v101_v19, %s4771_s27 }
  0x31   :  { %307 = vrot.lane.b32.xlu1 %v102_v20, %s4771_s27 }
  0x32   :  { %249 = vrot.lane.b32.xlu0 %v101_v19, %s4772_s29 }
  0x35   :  { %251 = vrot.lane.b32.xlu1 %v102_v20, %s4772_s29  ;;  %s6047_s29 = smov 24  }
  0x36   :  { %285 = vrot.lane.b32.xlu0 %v4957_v21, %s4773_s24 }
  0x39   :  { %287 = vrot.lane.b32.xlu1 %v4965_v22, %s4773_s24 }
  0x99   :  { %v115_v23 = vpop.xlane.xlu0 %114  ;;  %v121_v24 = vpop.xlane.xlu1 %120 }
  0x9a   :  { %v126_v25 = vmul.f32 0.03125, %v115_v23  ;;  %v128_v26 = vmul.f32 0.03125, %v121_v24 }
  0x9c   :  { %v130_v27 = vadd.f32 1e-06, %v126_v25  ;;  %v132_v29 = vadd.f32 1e-06, %v128_v26 }
  0x9d   :  { %v118_v28 = vpop.xlane.xlu0 %117  ;;  %v124_v30 = vpop.xlane.xlu1 %123 }
  0x9e   :  { %4490 = vrsqrt.f32 %v130_v27  ;;  %v127_v31 = vmul.f32 0.03125, %v118_v28  ;;  %v129_v32 = vmul.f32 0.03125, %v124_v30 }
  0x9f   :  { %4492 = vrsqrt.f32 %v132_v29 }
  0xa0   :  { %v131_v33 = vadd.f32 1e-06, %v127_v31  ;;  %v133_v34 = vadd.f32 1e-06, %v129_v32 }
  0xa1   :  { %v4979_v50 = vpop.permute.xlu1 %303  ;;  %v4981_v51 = vpop.permute.xlu0 %301 }
  0xa2   :  { %4494 = vrsqrt.f32 %v131_v33 }
  0xa3   :  { %4496 = vrsqrt.f32 %v133_v34 }
  0xa5   :  { %v4984_v54 = vpop.permute.xlu1 %245 }
  0xa9   :  { %v4993_v61 = vpop.permute.xlu1 %247 }
  0xab   :  { %v4491_v35 = vpop.eup %4490 }
  0xac   :  { %v4493_v36 = vpop.eup %4492  ;;  %v138_v37 = vmul.f32 %v4491_v35, %v4895_v0  ;;  %v4998_v0 = vpop.permute.xlu0 %305 }
  0xad   :  { %v140_v44 = vmul.f32 %v4493_v36, %v4905_v2  ;;  %v5005_v2 = vld [vmem:[%s6060_s22 + $0x10] sm:$0xff]  ;;  %v5012_v4 = vpop.permute.xlu1 %307 }
  0xae   :  { %v148_v42 = vmul.f32 %v3863_v39, %v138_v37 }
  0xaf   :  { %v4495_v38 = vpop.eup %4494  ;;  %v150_v47 = vmul.f32 %v3863_v39, %v140_v44 }
  0xb0   :  { %v4497_v40 = vpop.eup %4496  ;;  %v139_v41 = vmul.f32 %v4495_v38, %v4900_v1  ;;  %v5019_v7 = vpop.permute.xlu0 %249 }
  0xb1   :  { %v141_v45 = vmul.f32 %v4497_v40, %v4916_v6  ;;  %v98_v6 = vld [vmem:[%s6060_s22 + $0x18] sm:$0xff]  ;;  %v5026_v10 = vpop.permute.xlu1 %251 }
  0xb2   :  { %v149_v43 = vmul.f32 %v3863_v39, %v139_v41 }
  0xb3   :  { %v151_v48 = vmul.f32 %v3863_v39, %v141_v45 }
  0xb4   :  { %v152_v46 = vpack.c.bf16 %v149_v43, %v148_v42  ;;  %v5030_v12 = vpop.permute.xlu0 %285 }
  0xb5   :  { %v153_v49 = vpack.c.bf16 %v151_v48, %v150_v47  ;;  %v5034_v14 = vpop.permute.xlu1 %287 }
  0xb6   :  { %3868 = vmatmul.mubr.msk.bf16.vlgmr.msra.gmra.mxu0 %vm112_vm0, %v152_v46 }
  0xb7   :  { %226 = vmatprep.mubr.bf16.mxu0 %v4770_v15 }
  0xbe   :  { %3869 = vmatmul.mubr.msk.bf16.gmra.mxu0 %vm112_vm0, %v153_v49 }
  0xbf   :  { %4112 = vmatprep.mubr.msk.bf16.mxu0 %vm4775_vm1, %v4774_v13 }
 0x176   :  { %v218_v52 = vpop.f32.mrf.mxu0 }
 0x177   :  { %v313_v53 = vmul.f32 %v4981_v51, %v218_v52  ;;  %v257_v57 = vmul.f32 %v4984_v54, %v218_v52  ;;  %v297_v17 = vmul.f32 %v5030_v12, %v218_v52  ;;  %v237_v25 = vmul.f32 %v218_v52, %v4957_v21 }
 0x178   :  { %v220_v55 = vpop.f32.mrf.mxu0 }
 0x179   :  { %321 = vrot.lane.b32.xlu0 %v313_v53, %s4771_s27 }
 0x17a   :  { %v222_v56 = vpop.f32.mrf.mxu0 }
 0x17b   :  { %v314_v58 = vmul.f32 %v4979_v50, %v222_v56  ;;  %v258_v63 = vmul.f32 %v4993_v61, %v222_v56  ;;  %v298_v18 = vmul.f32 %v5034_v14, %v222_v56  ;;  %v238_v27 = vmul.f32 %v222_v56, %v4965_v22 }
 0x17c   :  { %v224_v59 = vpop.f32.mrf.mxu0 }
 0x17d   :  { %v4989_v60 = vpack.c.bf16 %v224_v59, %v220_v55  ;;  %265 = vrot.lane.b32.xlu0 %v257_v57, %s4771_s27  ;;  %323 = vrot.lane.b32.xlu1 %v314_v58, %s4771_s27 }
 0x17e   :  { %v4995_v62 = vpop.f32.mrf.mxu0 }
 0x17f   :  { %v315_v3 = vmul.f32 %v4998_v0, %v4995_v62  ;;  %v259_v8 = vmul.f32 %v5019_v7, %v4995_v62  ;;  %v239_v42 = vmul.f32 %v4995_v62, %v5005_v2 }
 0x180   :  { %v5000_v1 = vpop.f32.mrf.mxu0 }
 0x181   :  { %289 = vrot.lane.b32.xlu0 %v5005_v2, %s4773_s24  ;;  %267 = vrot.lane.b32.xlu1 %v258_v63, %s4771_s27 }
 0x182   :  { %v232_v5 = vpop.f32.mrf.mxu0 }
 0x183   :  { %v316_v9 = vmul.f32 %v5012_v4, %v232_v5  ;;  %v260_v11 = vmul.f32 %v5026_v10, %v232_v5  ;;  %v240_v40 = vmul.f32 %v232_v5, %v98_v6 }
 0x185   :  { %291 = vrot.lane.b32.xlu1 %v98_v6, %s4773_s24  ;;  %325 = vrot.lane.b32.xlu0 %v315_v3, %s4771_s27 }
 0x189   :  { %269 = vrot.lane.b32.xlu0 %v259_v8, %s4771_s27  ;;  %327 = vrot.lane.b32.xlu1 %v316_v9, %s4771_s27 }
 0x18d   :  { %271 = vrot.lane.b32.xlu1 %v260_v11, %s4771_s27 }
 0x1eb   :  { %v322_v16 = vpop.permute.xlu0 %321 }
 0x1ec   :  { %v333_v23 = vadd.f32 %v322_v16, %v297_v17 }
 0x1ef   :  { %v266_v19 = vpop.permute.xlu0 %265  ;;  %v324_v20 = vpop.permute.xlu1 %323 }
 0x1f0   :  { %v334_v24 = vadd.f32 %v324_v20, %v298_v18  ;;  %v277_v30 = vadd.f32 %v266_v19, %v237_v25  ;;  %v67_v18 = vlaneseq  ;;  %v74_v19 = vld [vmem:[%s6062_s30] sm:$0x3] }
 0x1f1   :  { %vm75_vm3 = vcmp.gt.f32.partialorder %v74_v19, 0.5 }
 0x1f2   :  { %v339_v26 = vpack.c.bf16 %v334_v24, %v333_v23  ;;  %v68_v20 = vshrl.u32 %v67_v18, 7  ;;  %v76_v24 = vsel %vm75_vm3, 1, %v4770_v15  ;;  %v5113_v25 = vand.u32 127, %v67_v18 }
 0x1f3   :  { %v5044_v28 = vpop.permute.xlu0 %289  ;;  %v268_v29 = vpop.permute.xlu1 %267 }
 0x1f4   :  { %v278_v31 = vadd.f32 %v268_v29, %v238_v27  ;;  %344 = vrot.lane.b32.xlu0 %v339_v26, %s4773_s24  ;;  %397 = vrot.lane.b32.xlu1 %v339_v26, %s4776_s21  ;;  %v299_v22 = vmul.f32 %v5044_v28, %v4995_v62  ;;  %v79_v23 = vsub.s32 0, %v68_v20  ;;  %vm72_vm4 = vcmp.ge.s32.totalorder %v68_v20, %v5113_v25 }
 0x1f5   :  { %v69_v27 = vadd.s32 8, %v68_v20  ;;  %v4782_v29 = vmov -1e+09  }
 0x1f6   :  { %v337_v32 = vpack.c.bf16 %v278_v31, %v277_v30 }
 0x1f7   :  { %v5048_v33 = vpop.permute.xlu1 %291  ;;  %v326_v21 = vpop.permute.xlu0 %325  ;;  %vm73_vm7 = vcmp.ge.s32.totalorder %v69_v27, %v5113_v25 }
 0x1f8   :  { %448 = vrot.lane.b32.xlu0 %v339_v26, %s4777_s1  ;;  %395 = vrot.lane.b32.xlu1 %v337_v32, %s6045_s2  ;;  %v300_v34 = vmul.f32 %v5048_v33, %v232_v5  ;;  %v335_v36 = vadd.f32 %v326_v21, %v299_v22  ;;  %v5126_v21 = vpop.f32.mrf.mxu0 }
 0x1fb   :  { %v328_v35 = vpop.permute.xlu1 %327  ;;  %v270_v41 = vpop.permute.xlu0 %269 }
 0x1fc   :  { %v336_v37 = vadd.f32 %v328_v35, %v300_v34  ;;  %499 = vrot.lane.b32.xlu0 %v339_v26, %s4779_s3  ;;  %446 = vrot.lane.b32.xlu1 %v337_v32, %s6043_s25  ;;  %v279_v44 = vadd.f32 %v270_v41, %v239_v42  ;;  %v80_v26 = vrot.slane %v76_v24, %v79_v23  ;;  %v88_v35 = vsub.s32 1, %v68_v20 }
 0x1fe   :  { %v340_v38 = vpack.c.bf16 %v336_v37, %v335_v36  ;;  %vm81_vm5 = vcmp.eq.s32.totalorder %v80_v26, 1  ;;  %v89_v42 = vrot.slane %v76_v24, %v88_v35 }
 0x1ff   :  { %v272_v39 = vpop.permute.xlu1 %271  ;;  %vm82_vm6 = vmand %vm72_vm4, %vm81_vm5 }
 0x200   :  { %549 = vrot.lane.b32.xlu0 %v340_v38, %s4773_s24  ;;  %497 = vrot.lane.b32.xlu1 %v337_v32, %s6041_s26  ;;  %v280_v43 = vadd.f32 %v272_v39, %v240_v40  ;;  %v5119_v30 = vsel %vm82_vm6, 0.0, %v4782_v29  ;;  %vm83_vm8 = vmand %vm73_vm7, %vm81_vm5  ;;  %vm90_vm10 = vcmp.eq.s32.totalorder %v89_v42, 1 }
 0x201   :  { %v5128_v34 = vsel %vm83_vm8, 0.0, %v4782_v29  ;;  %vm92_vm11 = vmand %vm73_vm7, %vm90_vm10  ;;  %vm3788_vm7 = vcmask 7168  }
 0x202   :  { %v338_v45 = vpack.c.bf16 %v280_v43, %v279_v44  ;;  %vm91_vm12 = vmand %vm72_vm4, %vm90_vm10  ;;  %vm3818_vm10 = vcmask 0  }
 0x203   :  { %v5173_v18 = vsel %vm91_vm12, 0.0, %v4782_v29 }
 0x204   :  { %601 = vrot.lane.b32.xlu0 %v340_v38, %s4776_s21  ;;  %652 = vrot.lane.b32.xlu1 %v340_v38, %s4777_s1 }
 0x208   :  { %703 = vrot.lane.b32.xlu1 %v340_v38, %s4779_s3  ;;  %599 = vrot.lane.b32.xlu0 %v338_v45, %s6045_s2 }
 0x20c   :  { %701 = vrot.lane.b32.xlu1 %v338_v45, %s6041_s26  ;;  %650 = vrot.lane.b32.xlu0 %v338_v45, %s6043_s25 }
 0x266   :  { %v345_v46 = vpop.permute.xlu0 %344  ;;  %v398_v47 = vpop.permute.xlu1 %397 }
 0x267   :  { %v351_v48 = vsel %vm346_vm2, %v345_v46, 0  ;;  %v403_v57 = vsel %vm346_vm2, %v398_v47, 0 }
 0x268   :  { %4099 = vmatpush3.bf16.xpose.msra.mxu1 %v351_v48 }
 0x269   :  { %4104 = vmatprep.subr.bf16.mxu1 %v4774_v13 }
 0x26a   :  { %v449_v49 = vpop.permute.xlu0 %448  ;;  %v396_v52 = vpop.permute.xlu1 %395 }
 0x26b   :  { %v454_v53 = vsel %vm346_vm2, %v449_v49, 0 }
 0x26c   :  { %4111 = vmatpush3.bf16.xpose.msra.mxu0 %v454_v53 }
 0x26d   :  { %4122 = vmatprep.subr.bf16.mxu0 %v4774_v13 }
 0x26e   :  { %v500_v55 = vpop.permute.xlu0 %499  ;;  %v447_v56 = vpop.permute.xlu1 %446 }
 0x26f   :  { %4101 = vmatmul.mubr.msk.bf16.vlgmr.msra.gmra.mxu1 %vm346_vm2, %v337_v32  ;;  %v505_v2 = vsel %vm346_vm2, %v500_v55, 0 }
 0x270   :  { %4105 = vmatpush3.bf16.xpose.msra.mxu1 %v403_v57  ;;  %4106 = vmatprep.mubr.msk.bf16.mxu1 %vm4775_vm1, %v4774_v13 }
 0x271   :  { %4116 = vmatprep.subr.bf16.mxu1 %v4774_v13 }
 0x272   :  { %v550_v58 = vpop.permute.xlu0 %549  ;;  %v498_v59 = vpop.permute.xlu1 %497 }
 0x273   :  { %v555_v62 = vsel %vm346_vm2, %v550_v58, 0  ;;  %4113 = vmatmul.mubr.msk.bf16.vlgmr.msra.gmra.mxu0 %vm346_vm2, %v447_v56 }
 0x274   :  { %4123 = vmatpush3.bf16.xpose.msra.mxu0 %v555_v62  ;;  %4124 = vmatprep.mubr.msk.bf16.mxu0 %vm4775_vm1, %v4774_v13  ;;  %v5153_v62 = vsel %vm92_vm11, 0.0, %v4782_v29 }
 0x275   :  { %4134 = vmatprep.subr.bf16.mxu0 %v4774_v13 }
 0x276   :  { %v602_v63 = vpop.permute.xlu0 %601  ;;  %v653_v3 = vpop.permute.xlu1 %652 }
 0x277   :  { %4107 = vmatmul.mubr.msk.bf16.vlgmr.msra.gmra.mxu1 %vm346_vm2, %v396_v52  ;;  %v658_v5 = vsel %vm346_vm2, %v653_v3, 0  ;;  %v607_v8 = vsel %vm346_vm2, %v602_v63, 0 }
 0x278   :  { %4117 = vmatpush3.bf16.xpose.msra.mxu1 %v505_v2  ;;  %4118 = vmatprep.mubr.msk.bf16.mxu1 %vm4775_vm1, %v4774_v13 }
 0x279   :  { %4128 = vmatprep.subr.bf16.mxu1 %v4774_v13 }
 0x27a   :  { %v600_v6 = vpop.permute.xlu0 %599  ;;  %v704_v11 = vpop.permute.xlu1 %703 }
 0x27b   :  { %4125 = vmatmul.mubr.msk.bf16.vlgmr.msra.gmra.mxu0 %vm346_vm2, %v338_v45  ;;  %v709_v16 = vsel %vm346_vm2, %v704_v11, 0 }
 0x27c   :  { %4135 = vmatpush3.bf16.xpose.msra.mxu0 %v658_v5  ;;  %4136 = vmatprep.mubr.msk.bf16.mxu0 %vm4775_vm1, %v4774_v13 }
 0x27d   :  { %4146 = vmatprep.subr.bf16.mxu0 %v4774_v13 }
 0x27e   :  { %v651_v9 = vpop.permute.xlu0 %650  ;;  %v702_v17 = vpop.permute.xlu1 %701 }
 0x27f   :  { %4119 = vmatmul.mubr.msk.bf16.vlgmr.msra.gmra.mxu1 %vm346_vm2, %v498_v59 }
 0x280   :  { %4129 = vmatpush3.bf16.xpose.msra.mxu1 %v607_v8  ;;  %4130 = vmatprep.mubr.msk.bf16.mxu1 %vm4775_vm1, %v4774_v13 }
 0x281   :  { %4140 = vmatprep.subr.bf16.mxu1 %v4774_v13 }
 0x283   :  { %4137 = vmatmul.mubr.msk.bf16.vlgmr.msra.gmra.mxu0 %vm346_vm2, %v651_v9 }
 0x284   :  { %4147 = vmatpush3.bf16.msra.mxu0 %v4989_v60  ;;  %4148 = vmatprep.mubr.msk.bf16.mxu0 %vm4775_vm1, %v4774_v13 }
 0x285   :  { %4158 = vmatprep.subr.bf16.mxu0 %v4774_v13 }
 0x287   :  { %4131 = vmatmul.mubr.msk.bf16.vlgmr.msra.gmra.mxu1 %vm346_vm2, %v600_v6 }
 0x288   :  { %4141 = vmatpush3.bf16.xpose.msra.mxu1 %v709_v16  ;;  %4142 = vmatprep.mubr.msk.bf16.mxu1 %vm4775_vm1, %v4774_v13 }
 0x289   :  { %4152 = vmatprep.subr.bf16.mxu1 %v4774_v13 }
 0x28f   :  { %4143 = vmatmul.mubr.msk.bf16.vlgmr.msra.gmra.mxu1 %vm346_vm2, %v702_v17 }
 0x290   :  { %4154 = vmatprep.mubr.msk.bf16.mxu1 %vm4775_vm1, %v4774_v13 }
 0x32f   :  { %v387_v31 = vpop.f32.mrf.mxu1 }
 0x330   :  { %v5124_v32 = vadd.f32 %v387_v31, %v5119_v30 }
 0x331   :  { %v4102_v22 = vpop.f32.mrf.mxu1 }
 0x332   :  { %v769_v36 = vsel %vm768_vm9, %v5124_v32, -inf }
 0x333   :  { %v390_v37 = vpop.f32.mrf.mxu1  ;;  %v490_v38 = vpop.f32.mrf.mxu0  ;;  %770 = vmax.xlane.f32.xlu0 %v769_v36 }
 0x334   :  { %v5133_v39 = vadd.f32 %v390_v37, %v5128_v34  ;;  %v5156_v63 = vadd.f32 %v490_v38, %v5119_v30 }
 0x335   :  { %v4103_v40 = vpop.f32.mrf.mxu1  ;;  %v4114_v41 = vpop.f32.mrf.mxu0 }
 0x336   :  { %v772_v43 = vsel %vm768_vm9, %v5133_v39, -inf  ;;  %v781_v16 = vsel %vm768_vm9, %v5156_v63, -inf }
 0x337   :  { %v439_v44 = vpop.f32.mrf.mxu1  ;;  %v493_v45 = vpop.f32.mrf.mxu0  ;;  %773 = vmax.xlane.f32.xlu1 %v772_v43 }
 0x338   :  { %v5138_v46 = vadd.f32 %v439_v44, %v5119_v30  ;;  %v5141_v47 = vadd.f32 %v493_v45, %v5128_v34 }
 0x339   :  { %v4108_v48 = vpop.f32.mrf.mxu1  ;;  %v4115_v49 = vpop.f32.mrf.mxu0 }
 0x33a   :  { %v775_v52 = vsel %vm768_vm9, %v5138_v46, -inf  ;;  %v784_v53 = vsel %vm768_vm9, %v5141_v47, -inf }
 0x33b   :  { %v442_v55 = vpop.f32.mrf.mxu1  ;;  %v591_v56 = vpop.f32.mrf.mxu0  ;;  %776 = vmax.xlane.f32.xlu0 %v775_v52  ;;  %785 = vmax.xlane.f32.xlu1 %v784_v53 }
 0x33c   :  { %v5151_v57 = vadd.f32 %v442_v55, %v5128_v34  ;;  %v5179_v27 = vadd.f32 %v591_v56, %v5173_v18 }
 0x33d   :  { %v4109_v58 = vpop.f32.mrf.mxu1  ;;  %v4126_v59 = vpop.f32.mrf.mxu0 }
 0x33e   :  { %v778_v2 = vsel %vm768_vm9, %v5151_v57, -inf  ;;  %v793_v41 = vsel %vm768_vm9, %v5179_v27, -inf }
 0x33f   :  { %v541_v3 = vpop.f32.mrf.mxu1  ;;  %v594_v5 = vpop.f32.mrf.mxu0  ;;  %779 = vmax.xlane.f32.xlu0 %v778_v2 }
 0x340   :  { %v5164_v6 = vadd.f32 %v594_v5, %v5153_v62  ;;  %v5167_v11 = vadd.f32 %v541_v3, %v5119_v30 }
 0x341   :  { %v4120_v8 = vpop.f32.mrf.mxu1  ;;  %v4127_v9 = vpop.f32.mrf.mxu0 }
 0x342   :  { %v796_v17 = vsel %vm768_vm9, %v5164_v6, -inf  ;;  %v787_v31 = vsel %vm768_vm9, %v5167_v11, -inf  ;;  %v5225_v9 = vpack.c.bf16 %v5126_v21, %v5000_v1 }
 0x343   :  { %v544_v19 = vpop.f32.mrf.mxu1  ;;  %v694_v23 = vpop.f32.mrf.mxu0  ;;  %782 = vmax.xlane.f32.xlu0 %v781_v16  ;;  %797 = vmax.xlane.f32.xlu1 %v796_v17 }
 0x344   :  { %v5176_v20 = vadd.f32 %v544_v19, %v5128_v34  ;;  %v5199_v48 = vadd.f32 %v694_v23, %v5173_v18 }
 0x345   :  { %v4121_v24 = vpop.f32.mrf.mxu1  ;;  %v4138_v26 = vpop.f32.mrf.mxu0 }
 0x346   :  { %v790_v22 = vsel %vm768_vm9, %v5176_v20, -inf  ;;  %v805_v58 = vsel %vm768_vm9, %v5199_v48, -inf }
 0x347   :  { %v643_v29 = vpop.f32.mrf.mxu1  ;;  %v697_v35 = vpop.f32.mrf.mxu0  ;;  %788 = vmax.xlane.f32.xlu0 %v787_v31  ;;  %791 = vmax.xlane.f32.xlu1 %v790_v22 }
 0x348   :  { %v5186_v36 = vadd.f32 %v697_v35, %v5153_v62  ;;  %v5189_v40 = vadd.f32 %v643_v29, %v5173_v18 }
 0x349   :  { %v4132_v37 = vpop.f32.mrf.mxu1  ;;  %v4139_v38 = vpop.f32.mrf.mxu0 }
 0x34a   :  { %v808_v42 = vsel %vm768_vm9, %v5186_v36, -inf  ;;  %v799_v49 = vsel %vm768_vm9, %v5189_v40, -inf }
 0x34b   :  { %v646_v43 = vpop.f32.mrf.mxu1  ;;  %794 = vmax.xlane.f32.xlu0 %v793_v41  ;;  %809 = vmax.xlane.f32.xlu1 %v808_v42 }
 0x34c   :  { %v5196_v44 = vadd.f32 %v646_v43, %v5153_v62 }
 0x34d   :  { %v4133_v45 = vpop.f32.mrf.mxu1 }
 0x34e   :  { %v802_v52 = vsel %vm768_vm9, %v5196_v44, -inf }
 0x34f   :  { %v745_v53 = vpop.f32.mrf.mxu1  ;;  %800 = vmax.xlane.f32.xlu0 %v799_v49  ;;  %803 = vmax.xlane.f32.xlu1 %v802_v52 }
 0x350   :  { %v5206_v56 = vadd.f32 %v745_v53, %v5173_v18 }
 0x351   :  { %v4144_v55 = vpop.f32.mrf.mxu1 }
 0x352   :  { %v811_v3 = vsel %vm768_vm9, %v5206_v56, -inf }
 0x353   :  { %v748_v59 = vpop.f32.mrf.mxu1  ;;  %806 = vmax.xlane.f32.xlu0 %v805_v58 }
 0x354   :  { %v5219_v5 = vadd.f32 %v748_v59, %v5153_v62 }
 0x355   :  { %v4145_v2 = vpop.f32.mrf.mxu1 }
 0x356   :  { %v814_v8 = vsel %vm768_vm9, %v5219_v5, -inf }
 0x357   :  { %812 = vmax.xlane.f32.xlu0 %v811_v3 }
 0x360   :  { %1045 = vrot.lane.b32.xlu1 %v4989_v60, %s6043_s25 }
 0x364   :  { %1092 = vrot.lane.b32.xlu1 %v4989_v60, %s6041_s26 }
 0x36d   :  { %998 = vrot.lane.b32.xlu0 %v4989_v60, %s6045_s2 }
 0x388   :  { %815 = vmax.xlane.f32.xlu1 %v814_v8 }
 0x399   :  { %1215 = vrot.lane.b32.xlu1 %v5225_v9, %s6045_s2 }
 0x3bc   :  { %v771_v16 = vpop.xlane.xlu0 %770 }
 0x3bd   :  { %v817_v17 = vsub.f32 %v5124_v32, %v771_v16 }
 0x3bf   :  { %v833_v19 = vmul.f32 1.442695, %v817_v17 }
 0x3c0   :  { %v774_v23 = vpop.xlane.xlu1 %773 }
 0x3c1   :  { %4498 = vpow2.f32 %v833_v19  ;;  %v818_v60 = vsub.f32 %v5133_v39, %v774_v23 }
 0x3c3   :  { %v835_v24 = vmul.f32 1.442695, %v818_v60 }
 0x3c4   :  { %v777_v26 = vpop.xlane.xlu0 %776  ;;  %v786_v31 = vpop.xlane.xlu1 %785 }
 0x3c5   :  { %4500 = vpow2.f32 %v835_v24  ;;  %v822_v22 = vsub.f32 %v5141_v47, %v786_v31  ;;  %v819_v35 = vsub.f32 %v5138_v46, %v777_v26 }
 0x3c7   :  { %v843_v29 = vmul.f32 1.442695, %v822_v22  ;;  %v837_v43 = vmul.f32 1.442695, %v819_v35 }
 0x3c8   :  { %v780_v1 = vpop.xlane.xlu0 %779 }
 0x3c9   :  { %v820_v21 = vsub.f32 %v5151_v57, %v780_v1  ;;  %4502 = vpow2.f32 %v843_v29 }
 0x3cb   :  { %v839_v37 = vmul.f32 1.442695, %v820_v21 }
 0x3cc   :  { %v783_v32 = vpop.xlane.xlu0 %782  ;;  %v798_v38 = vpop.xlane.xlu1 %797 }
 0x3cd   :  { %4504 = vpow2.f32 %v839_v37  ;;  %v821_v41 = vsub.f32 %v5156_v63, %v783_v32  ;;  %v826_v39 = vsub.f32 %v5164_v6, %v798_v38 }
 0x3ce   :  { %v5236_v42 = vpop.eup %4498 }
 0x3cf   :  { %v841_v45 = vmul.f32 1.442695, %v821_v41  ;;  %v851_v47 = vmul.f32 1.442695, %v826_v39  ;;  %v865_v49 = vsel %vm768_vm9, %v5236_v42, 0.0 }
 0x3d0   :  { %866 = vadd.xlane.f32.xlu0 %v865_v49  ;;  %v789_v57 = vpop.xlane.xlu0 %788  ;;  %v792_v46 = vpop.xlane.xlu1 %791 }
 0x3d1   :  { %4506 = vpow2.f32 %v841_v45  ;;  %v824_v52 = vsub.f32 %v5176_v20, %v792_v46  ;;  %v823_v63 = vsub.f32 %v5167_v11, %v789_v57 }
 0x3d2   :  { %v5241_v53 = vpop.eup %4500  ;;  %4508 = vpow2.f32 %v851_v47 }
 0x3d3   :  { %4510 = vpow2.f32 %v837_v43  ;;  %v847_v6 = vmul.f32 1.442695, %v824_v52  ;;  %v868_v55 = vsel %vm768_vm9, %v5241_v53, 0.0  ;;  %v845_v20 = vmul.f32 1.442695, %v823_v63 }
 0x3d4   :  { %v795_v58 = vpop.xlane.xlu0 %794  ;;  %869 = vadd.xlane.f32.xlu1 %v868_v55  ;;  %v810_v59 = vpop.xlane.xlu1 %809 }
 0x3d5   :  { %v825_v2 = vsub.f32 %v5179_v27, %v795_v58  ;;  %v830_v3 = vsub.f32 %v5186_v36, %v810_v59  ;;  %4512 = vpow2.f32 %v847_v6 }
 0x3d6   :  { %v5248_v8 = vpop.eup %4502 }
 0x3d7   :  { %v849_v16 = vmul.f32 1.442695, %v825_v2  ;;  %v859_v17 = vmul.f32 1.442695, %v830_v3  ;;  %v880_v11 = vsel %vm768_vm9, %v5248_v8, 0.0 }
 0x3d8   :  { %v801_v19 = vpop.xlane.xlu0 %800  ;;  %v804_v23 = vpop.xlane.xlu1 %803  ;;  %881 = vadd.xlane.f32.xlu1 %v880_v11 }
 0x3d9   :  { %4514 = vpow2.f32 %v849_v16  ;;  %v828_v60 = vsub.f32 %v5196_v44, %v804_v23  ;;  %v827_v27 = vsub.f32 %v5189_v40, %v801_v19 }
 0x3da   :  { %v5253_v24 = vpop.eup %4504  ;;  %4516 = vpow2.f32 %v859_v17 }
 0x3db   :  { %4518 = vpow2.f32 %v845_v20  ;;  %v855_v36 = vmul.f32 1.442695, %v828_v60  ;;  %v874_v26 = vsel %vm768_vm9, %v5253_v24, 0.0  ;;  %v853_v44 = vmul.f32 1.442695, %v827_v27 }
 0x3dc   :  { %v807_v31 = vpop.xlane.xlu0 %806  ;;  %875 = vadd.xlane.f32.xlu1 %v874_v26  ;;  %v1046_v16 = vpop.permute.xlu1 %1045 }
 0x3dd   :  { %v829_v22 = vsub.f32 %v5199_v48, %v807_v31  ;;  %4520 = vpow2.f32 %v855_v36 }
 0x3de   :  { %v5259_v29 = vpop.eup %4506 }
 0x3df   :  { %v5261_v1 = vpop.eup %4508  ;;  %v857_v21 = vmul.f32 1.442695, %v829_v22  ;;  %v877_v35 = vsel %vm768_vm9, %v5259_v29, 0.0 }
 0x3e0   :  { %v5265_v37 = vpop.eup %4510  ;;  %878 = vadd.xlane.f32.xlu0 %v877_v35  ;;  %v813_v40 = vpop.xlane.xlu0 %812  ;;  %v892_v32 = vsel %vm768_vm9, %v5261_v1, 0.0 }
 0x3e1   :  { %4522 = vpow2.f32 %v857_v21  ;;  %v831_v48 = vsub.f32 %v5206_v56, %v813_v40  ;;  %893 = vadd.xlane.f32.xlu1 %v892_v32  ;;  %v871_v39 = vsel %vm768_vm9, %v5265_v37, 0.0  ;;  %v5305_v17 = vpop.permute.xlu1 %1092 }
 0x3e2   :  { %v5270_v38 = vpop.eup %4512  ;;  %4524 = vpow2.f32 %v853_v44 }
 0x3e3   :  { %v861_v41 = vmul.f32 1.442695, %v831_v48  ;;  %v886_v45 = vsel %vm768_vm9, %v5270_v38, 0.0 }
 0x3e4   :  { %872 = vadd.xlane.f32.xlu0 %v871_v39  ;;  %v999_v43 = vpop.permute.xlu0 %998 }
 0x3e5   :  { %887 = vadd.xlane.f32.xlu1 %v886_v45  ;;  %4153 = vmatpush3.bf16.msra.mxu1 %v999_v43  ;;  %4526 = vpow2.f32 %v861_v41 }
 0x3e6   :  { %v5276_v47 = vpop.eup %4514  ;;  %4164 = vmatprep.subr.bf16.mxu1 %v4774_v13 }
 0x3e7   :  { %v5279_v56 = vpop.eup %4516  ;;  %v889_v49 = vsel %vm768_vm9, %v5276_v47, 0.0 }
 0x3e8   :  { %v5283_v57 = vpop.eup %4518  ;;  %890 = vadd.xlane.f32.xlu0 %v889_v49  ;;  %v904_v46 = vsel %vm768_vm9, %v5279_v56, 0.0 }
 0x3e9   :  { %905 = vadd.xlane.f32.xlu1 %v904_v46  ;;  %v883_v63 = vsel %vm768_vm9, %v5283_v57, 0.0 }
 0x3ea   :  { %v5287_v52 = vpop.eup %4520 }
 0x3eb   :  { %v898_v6 = vsel %vm768_vm9, %v5287_v52, 0.0 }
 0x3ec   :  { %884 = vadd.xlane.f32.xlu0 %v883_v63 }
 0x3ed   :  { %899 = vadd.xlane.f32.xlu1 %v898_v6 }
 0x3ee   :  { %v5293_v55 = vpop.eup %4522 }
 0x3ef   :  { %v901_v58 = vsel %vm768_vm9, %v5293_v55, 0.0  ;;  %v5297_v59 = vpop.eup %4524 }
 0x3f0   :  { %902 = vadd.xlane.f32.xlu0 %v901_v58  ;;  %v895_v2 = vsel %vm768_vm9, %v5297_v59, 0.0 }
 0x3f2   :  { %v5301_v3 = vpop.eup %4526 }
 0x3f3   :  { %v907_v20 = vsel %vm768_vm9, %v5301_v3, 0.0 }
 0x3f4   :  { %896 = vadd.xlane.f32.xlu0 %v895_v2 }
 0x3f8   :  { %908 = vadd.xlane.f32.xlu0 %v907_v20 }
 0x40e   :  { %1262 = vrot.lane.b32.xlu0 %v5225_v9, %s6043_s25 }
 0x411   :  { %v816_v19 = vpop.xlane.xlu1 %815 }
 0x412   :  { %v832_v11 = vsub.f32 %v5219_v5, %v816_v19 }
 0x414   :  { %v863_v23 = vmul.f32 1.442695, %v832_v11 }
 0x415   :  { %v5316_v36 = vpop.permute.xlu1 %1215 }
 0x416   :  { %4528 = vpow2.f32 %v863_v23 }
 0x423   :  { %v5310_v60 = vpop.eup %4528 }
 0x424   :  { %v910_v27 = vsel %vm768_vm9, %v5310_v60, 0.0 }
 0x425   :  { %911 = vadd.xlane.f32.xlu1 %v910_v27 }
 0x436   :  { %1309 = vrot.lane.b32.xlu1 %v5225_v9, %s6041_s26 }
 0x459   :  { %v867_v26 = vpop.xlane.xlu0 %866 }
 0x45a   :  { %4530 = vrcp.f32 %v867_v26 }
 0x45d   :  { %v870_v31 = vpop.xlane.xlu1 %869 }
 0x45e   :  { %4532 = vrcp.f32 %v870_v31 }
 0x461   :  { %v882_v22 = vpop.xlane.xlu1 %881 }
 0x462   :  { %4534 = vrcp.f32 %v882_v22 }
 0x465   :  { %v876_v44 = vpop.xlane.xlu1 %875 }
 0x467   :  { %v4531_v5 = vpop.eup %4530 }
 0x468   :  { %v914_v32 = vmul.f32 %v4531_v5, %v5236_v42 }
 0x469   :  { %v879_v21 = vpop.xlane.xlu0 %878 }
 0x46a   :  { %4536 = vrcp.f32 %v879_v21  ;;  %v894_v35 = vpop.xlane.xlu1 %893 }
 0x46b   :  { %v4533_v40 = vpop.eup %4532  ;;  %4538 = vrcp.f32 %v876_v44 }
 0x46c   :  { %v916_v48 = vmul.f32 %v4533_v40, %v5241_v53 }
 0x46d   :  { %v873_v41 = vpop.xlane.xlu0 %872 }
 0x46e   :  { %4540 = vrcp.f32 %v873_v41  ;;  %v888_v39 = vpop.xlane.xlu1 %887  ;;  %v945_v43 = vpack.c.bf16 %v916_v48, %v914_v32 }
 0x46f   :  { %4542 = vrcp.f32 %v894_v35  ;;  %v4535_v42 = vpop.eup %4534 }
 0x470   :  { %4149 = vmatmul.mubr.msk.bf16.vlgmr.msra.gmra.mxu0 %vm768_vm9, %v945_v43  ;;  %v924_v6 = vmul.f32 %v4535_v42, %v5248_v8 }
 0x471   :  { %4159 = vmatpush3.bf16.msra.mxu0 %v1046_v16  ;;  %v891_v45 = vpop.xlane.xlu0 %890  ;;  %4160 = vmatprep.mubr.msk.bf16.mxu0 %vm4775_vm1, %v4774_v13 }
 0x472   :  { %4544 = vrcp.f32 %v891_v45  ;;  %4170 = vmatprep.subr.bf16.mxu0 %v4774_v13  ;;  %v906_v49 = vpop.xlane.xlu1 %905 }
 0x473   :  { %4546 = vrcp.f32 %v888_v39 }
 0x475   :  { %v885_v46 = vpop.xlane.xlu0 %884 }
 0x476   :  { %4548 = vrcp.f32 %v885_v46  ;;  %v900_v2 = vpop.xlane.xlu1 %899 }
 0x477   :  { %v4537_v53 = vpop.eup %4536  ;;  %4550 = vrcp.f32 %v906_v49 }
 0x478   :  { %v922_v63 = vmul.f32 %v4537_v53, %v5259_v29  ;;  %v4539_v58 = vpop.eup %4538 }
 0x479   :  { %v903_v20 = vpop.xlane.xlu0 %902  ;;  %v920_v23 = vmul.f32 %v4539_v58, %v5253_v24 }
 0x47a   :  { %4552 = vrcp.f32 %v903_v20  ;;  %v947_v16 = vpack.c.bf16 %v924_v6, %v922_v63 }
 0x47b   :  { %v4541_v19 = vpop.eup %4540  ;;  %4554 = vrcp.f32 %v900_v2 }
 0x47c   :  { %4161 = vmatmul.mubr.msk.bf16.vlgmr.msra.gmra.mxu0 %vm768_vm9, %v947_v16  ;;  %v918_v11 = vmul.f32 %v4541_v19, %v5265_v37  ;;  %v4543_v27 = vpop.eup %4542 }
 0x47d   :  { %4171 = vmatpush3.bf16.msra.mxu0 %v5225_v9  ;;  %v897_v26 = vpop.xlane.xlu0 %896  ;;  %4172 = vmatprep.mubr.msk.bf16.mxu0 %vm4775_vm1, %v4774_v13  ;;  %v932_v37 = vmul.f32 %v4543_v27, %v5261_v1 }
 0x47e   :  { %4556 = vrcp.f32 %v897_v26  ;;  %v946_v8 = vpack.c.bf16 %v920_v23, %v918_v11  ;;  %4182 = vmatprep.subr.bf16.mxu0 %v4774_v13 }
 0x47f   :  { %v4545_v29 = vpop.eup %4544 }
 0x480   :  { %4155 = vmatmul.mubr.msk.bf16.vlgmr.msra.gmra.mxu1 %vm768_vm9, %v946_v8  ;;  %v930_v31 = vmul.f32 %v4545_v29, %v5276_v47  ;;  %v4547_v22 = vpop.eup %4546 }
 0x481   :  { %4165 = vmatpush3.bf16.msra.mxu1 %v5305_v17  ;;  %v909_v24 = vpop.xlane.xlu0 %908  ;;  %4166 = vmatprep.mubr.msk.bf16.mxu1 %vm4775_vm1, %v4774_v13  ;;  %v928_v21 = vmul.f32 %v4547_v22, %v5270_v38 }
 0x482   :  { %v949_v9 = vpack.c.bf16 %v932_v37, %v930_v31  ;;  %4176 = vmatprep.subr.bf16.mxu1 %v4774_v13  ;;  %4558 = vrcp.f32 %v909_v24 }
 0x483   :  { %v4549_v44 = vpop.eup %4548 }
 0x484   :  { %4173 = vmatmul.mubr.msk.bf16.vlgmr.msra.gmra.mxu0 %vm768_vm9, %v949_v9  ;;  %v926_v5 = vmul.f32 %v4549_v44, %v5283_v57  ;;  %v4551_v47 = vpop.eup %4550 }
 0x485   :  { %v1263_v35 = vpop.permute.xlu0 %1262  ;;  %4184 = vmatprep.mubr.msk.bf16.mxu0 %vm4775_vm1, %v4774_v13  ;;  %v940_v32 = vmul.f32 %v4551_v47, %v5279_v56 }
 0x486   :  { %4183 = vmatpush3.bf16.msra.mxu0 %v1263_v35  ;;  %v948_v1 = vpack.c.bf16 %v928_v21, %v926_v5  ;;  %v4461_v35 = vld [vmem:[%s6022_s6 + $0x8] sm:$0xff]  }
 0x487   :  { %v4553_v17 = vpop.eup %4552  ;;  %4194 = vmatprep.subr.bf16.mxu0 %v4461_v35 }
 0x488   :  { %4167 = vmatmul.mubr.msk.bf16.vlgmr.msra.gmra.mxu1 %vm768_vm9, %v948_v1  ;;  %v938_v40 = vmul.f32 %v4553_v17, %v5293_v55  ;;  %v4555_v48 = vpop.eup %4554 }
 0x489   :  { %4177 = vmatpush3.bf16.msra.mxu1 %v5316_v36  ;;  %4178 = vmatprep.mubr.msk.bf16.mxu1 %vm4775_vm1, %v4774_v13  ;;  %v936_v39 = vmul.f32 %v4555_v48, %v5287_v52 }
 0x48a   :  { %v951_v38 = vpack.c.bf16 %v940_v32, %v938_v40  ;;  %4188 = vmatprep.subr.bf16.mxu1 %v4774_v13 }
 0x48b   :  { %v4557_v57 = vpop.eup %4556 }
 0x48c   :  { %4185 = vmatmul.mubr.msk.bf16.vlgmr.msra.gmra.mxu0 %vm768_vm9, %v951_v38  ;;  %v934_v41 = vmul.f32 %v4557_v57, %v5297_v59  ;;  %v4462_v57 = vld [vmem:[%s6022_s6] sm:$0xff]  }
 0x48d   :  { %4195 = vmatpush3.bf16.msra.mxu0 %v4461_v35 }
 0x48e   :  { %v950_v43 = vpack.c.bf16 %v936_v39, %v934_v41  ;;  %4196 = vmatprep.subr.bf16.mxu0 %v4462_v57 }
 0x48f   :  { %v4559_v36 = vpop.eup %4558 }
 0x490   :  { %4179 = vmatmul.mubr.msk.bf16.vlgmr.msra.gmra.mxu1 %vm768_vm9, %v950_v43  ;;  %v942_v49 = vmul.f32 %v4559_v36, %v5301_v3 }
 0x491   :  { %4190 = vmatprep.mubr.msk.bf16.mxu1 %vm4775_vm1, %v4774_v13  ;;  %4197 = vmatpush3.bf16.msra.mxu0 %v4462_v57 }
 0x4ae   :  { %v912_v56 = vpop.xlane.xlu1 %911 }
 0x4af   :  { %4560 = vrcp.f32 %v912_v56 }
 0x4b2   :  { %v1310_v55 = vpop.permute.xlu1 %1309 }
 0x4b3   :  { %4189 = vmatpush3.bf16.msra.mxu1 %v1310_v55 }
 0x4bc   :  { %v4561_v45 = vpop.eup %4560 }
 0x4bd   :  { %v944_v42 = vmul.f32 %v4561_v45, %v5310_v60 }
 0x4bf   :  { %v952_v59 = vpack.c.bf16 %v944_v42, %v942_v49 }
 0x4c1   :  { %4191 = vmatmul.mubr.msk.bf16.vlgmr.msra.gmra.mxu1 %vm768_vm9, %v952_v59 }
 0x530   :  { %v990_v52 = vpop.f32.mrf.mxu0 }
 0x532   :  { %v4150_v46 = vpop.f32.mrf.mxu0 }
 0x534   :  { %v993_v53 = vpop.f32.mrf.mxu0 }
 0x536   :  { %v4151_v63 = vpop.f32.mrf.mxu0 }
 0x53c   :  { %v1085_v6 = vpop.f32.mrf.mxu0 }
 0x53e   :  { %v4162_v58 = vpop.f32.mrf.mxu0 }
 0x540   :  { %v1038_v2 = vpop.f32.mrf.mxu1  ;;  %v1088_v20 = vpop.f32.mrf.mxu0 }
 0x541   :  { %v4398_v16 = vpack.i.bf16 %v1088_v20, %v1085_v6 }
 0x542   :  { %v4156_v19 = vpop.f32.mrf.mxu1  ;;  %v4163_v11 = vpop.f32.mrf.mxu0 }
 0x543   :  { %4399 = vrot.lane.b32.xlu1 %v4398_v16, %s6049_s0 }
 0x544   :  { %v1041_v3 = vpop.f32.mrf.mxu1  ;;  %v5362_v23 = vpop.f32.mrf.mxu0 }
 0x545   :  { %v4393_v60 = vpack.i.bf16 %v1041_v3, %v1038_v2 }
 0x546   :  { %v4157_v27 = vpop.f32.mrf.mxu1  ;;  %v4174_v26 = vpop.f32.mrf.mxu0 }
 0x547   :  { %4394 = vrot.lane.b32.xlu0 %v4393_v60, %s6051_s4 }
 0x548   :  { %v1132_v8 = vpop.f32.mrf.mxu1  ;;  %v1210_v29 = vpop.f32.mrf.mxu0 }
 0x54a   :  { %v4168_v31 = vpop.f32.mrf.mxu1  ;;  %v4175_v37 = vpop.f32.mrf.mxu0 }
 0x54c   :  { %v1135_v22 = vpop.f32.mrf.mxu1  ;;  %v1302_v24 = vpop.f32.mrf.mxu0 }
 0x54d   :  { %v4403_v9 = vpack.i.bf16 %v1135_v22, %v1132_v8 }
 0x54e   :  { %v4169_v44 = vpop.f32.mrf.mxu1  ;;  %v4186_v5 = vpop.f32.mrf.mxu0 }
 0x54f   :  { %4404 = vrot.lane.b32.xlu1 %v4403_v9, %s6047_s29 }
 0x550   :  { %v1255_v21 = vpop.f32.mrf.mxu1  ;;  %v1305_v47 = vpop.f32.mrf.mxu0 }
 0x551   :  { %v4413_v38 = vpack.i.bf16 %v1305_v47, %v1302_v24 }
 0x552   :  { %v4180_v1 = vpop.f32.mrf.mxu1  ;;  %v4187_v17 = vpop.f32.mrf.mxu0 }
 0x554   :  { %v1258_v40 = vpop.f32.mrf.mxu1 }
 0x555   :  { %v4408_v32 = vpack.i.bf16 %v1258_v40, %v1255_v21 }
 0x556   :  { %v4181_v48 = vpop.f32.mrf.mxu1 }
 0x557   :  { %4409 = vrot.lane.b32.xlu0 %v4408_v32, %s6051_s4  ;;  %v4741_v32 = vld [vmem:[%s6058_s23] sm:$0xff]  ;;  %s6065_s4 = smov 104  }
 0x55b   :  { %4414 = vrot.lane.b32.xlu0 %v4413_v38, %s6049_s0  ;;  %s6063_s0 = smov 120  }
 0x581   :  { %v1349_v41 = vpop.f32.mrf.mxu1 }
 0x583   :  { %v4192_v39 = vpop.f32.mrf.mxu1 }
 0x584   :  { %v4742_v39 = vld [vmem:[%s6058_s23 + $0x18] sm:$0xff] }
 0x585   :  { %v1352_v43 = vpop.f32.mrf.mxu1 }
 0x586   :  { %v4418_v56 = vpack.i.bf16 %v1352_v43, %v1349_v41 }
 0x587   :  { %v4193_v55 = vpop.f32.mrf.mxu1 }
 0x588   :  { %4419 = vrot.lane.b32.xlu1 %v4418_v56, %s6047_s29  ;;  %v4743_v56 = vld [vmem:[%s6058_s23 + $0x8] sm:$0xff] }
 0x5b5   :  { %v4400_v42 = vpop.permute.xlu1 %4399 }
 0x5b6   :  { %v4402_v63 = vunpack.i.h.bf16 %v4400_v42  ;;  %v4401_v6 = vunpack.i.l.bf16 %v4400_v42 }
 0x5b9   :  { %v4395_v36 = vpop.permute.xlu0 %4394 }
 0x5ba   :  { %v4397_v45 = vunpack.i.h.bf16 %v4395_v36  ;;  %v4396_v49 = vunpack.i.l.bf16 %v4395_v36 }
 0x5bc   :  { %v1164_v59 = vsel %vm346_vm2, %v993_v53, %v4397_v45  ;;  %v1163_v46 = vsel %vm346_vm2, %v990_v52, %v4396_v49 }
 0x5bd   :  { %v1165_v16 = vsel %vm768_vm9, %v1163_v46, %v4401_v6  ;;  %v1166_v19 = vsel %vm768_vm9, %v1164_v59, %v4402_v63  ;;  %v4463_v6 = vld [vmem:[%s6024_s8 + $0x8] sm:$0xff]  }
 0x5be   :  { %4202 = vmatprep.subr.bf16.mxu1 %v4463_v6 }
 0x5bf   :  { %4203 = vmatpush3.bf16.msra.mxu1 %v4463_v6 }
 0x5c1   :  { %v4405_v58 = vpop.permute.xlu1 %4404 }
 0x5c2   :  { %v4407_v2 = vunpack.i.h.bf16 %v4405_v58  ;;  %v4406_v20 = vunpack.i.l.bf16 %v4405_v58  ;;  %v4464_v58 = vld [vmem:[%s6024_s8] sm:$0xff]  }
 0x5c3   :  { %4204 = vmatprep.subr.bf16.mxu1 %v4464_v58 }
 0x5c4   :  { %v1168_v11 = vsel %vm1167_vm13, %v1165_v16, %v4406_v20  ;;  %v1169_v3 = vsel %vm1167_vm13, %v1166_v19, %v4407_v2  ;;  %4205 = vmatpush3.bf16.msra.mxu1 %v4464_v58 }
 0x5c5   :  { %v1386_v60 = vpack.c.bf16 %v1169_v3, %v1168_v11 }
 0x5c7   :  { %4198 = vmatprep.mubr.msk.bf16.mxu0 %vm112_vm0, %v1386_v60 }
 0x5c9   :  { %v4410_v53 = vpop.permute.xlu0 %4409 }
 0x5ca   :  { %v4412_v52 = vunpack.i.h.bf16 %v4410_v53  ;;  %v4411_v26 = vunpack.i.l.bf16 %v4410_v53 }
 0x5cc   :  { %v1381_v22 = vsel %vm346_vm2, %v1210_v29, %v4412_v52  ;;  %v1380_v24 = vsel %vm346_vm2, %v5362_v23, %v4411_v26  ;;  %v4740_v29 = vld [vmem:[%s6058_s23 + $0x10] sm:$0xff] }
 0x5cd   :  { %v4415_v27 = vpop.permute.xlu0 %4414 }
 0x5ce   :  { %v4417_v8 = vunpack.i.h.bf16 %v4415_v27  ;;  %v4416_v31 = vunpack.i.l.bf16 %v4415_v27 }
 0x5d0   :  { %v1382_v5 = vsel %vm768_vm9, %v1380_v24, %v4416_v31  ;;  %v1383_v21 = vsel %vm768_vm9, %v1381_v22, %v4417_v8 }
 0x5fa   :  { %v4420_v37 = vpop.permute.xlu1 %4419 }
 0x5fb   :  { %v4422_v9 = vunpack.i.h.bf16 %v4420_v37  ;;  %v4421_v44 = vunpack.i.l.bf16 %v4420_v37 }
 0x5fd   :  { %v1385_v47 = vsel %vm1167_vm13, %v1383_v21, %v4422_v9  ;;  %v1384_v35 = vsel %vm1167_vm13, %v1382_v5, %v4421_v44  ;;  %v3890_v9 = vld [vmem:[%s6023_s7] ss:$0 sm:$0xff] }
 0x5fe   :  { %v1387_v1 = vpack.c.bf16 %v1385_v47, %v1384_v35 }
 0x600   :  { %4199 = vmatmul.mubr.msk.bf16.vlgmr.msra.gmra.mxu0 %vm112_vm0, %v1387_v1 }
 0x6c0   :  { %v4200_v17 = vpop.f32.mrf.mxu0 }
 0x6c1   :  { %v5393_v23 = vadd.f32 %v4740_v29, %v4200_v17 }
 0x6c2   :  { %v1444_v40 = vpop.f32.mrf.mxu0 }
 0x6c3   :  { %v5398_v48 = vadd.f32 %v4741_v32, %v1444_v40  ;;  %v1466_v45 = vmul.f32 %v5393_v23, %v5393_v23 }
 0x6c4   :  { %v4201_v38 = vpop.f32.mrf.mxu0 }
 0x6c5   :  { %v1464_v57 = vmul.f32 %v5398_v48, %v5398_v48  ;;  %v5405_v43 = vadd.f32 %v4742_v39, %v4201_v38  ;;  %v1474_v42 = vsel %vm112_vm0, %v1466_v45, 0.0  ;;  %v4465_v38 = vld [vmem:[%s6025_s9 + $0x18] sm:$0xff]   ;;  %v4468_v39 = vld [vmem:[%s6025_s9] sm:$0xff]  }
 0x6c6   :  { %v1447_v41 = vpop.f32.mrf.mxu0  ;;  %4210 = vmatprep.subr.bf16.mxu0 %v4465_v38 }
 0x6c7   :  { %v5410_v55 = vadd.f32 %v4743_v56, %v1447_v41  ;;  %v1468_v36 = vsel %vm112_vm0, %v1464_v57, 0.0  ;;  %v1467_v46 = vmul.f32 %v5405_v43, %v5405_v43  ;;  %4211 = vmatpush3.bf16.msra.mxu0 %v4465_v38  ;;  %v4466_v57 = vld [vmem:[%s6025_s9 + $0x10] sm:$0xff]   ;;  %v4467_v41 = vld [vmem:[%s6025_s9 + $0x8] sm:$0xff]  }
 0x6c8   :  { %1469 = vadd.xlane.f32.xlu0 %v1468_v36  ;;  %4212 = vmatprep.subr.bf16.mxu0 %v4466_v57 }
 0x6c9   :  { %v1465_v49 = vmul.f32 %v5410_v55, %v5410_v55  ;;  %v1477_v63 = vsel %vm112_vm0, %v1467_v46, 0.0 }
 0x6cb   :  { %v1471_v59 = vsel %vm112_vm0, %v1465_v49, 0.0  ;;  %4213 = vmatpush3.bf16.msra.mxu0 %v4466_v57 }
 0x6cc   :  { %1475 = vadd.xlane.f32.xlu0 %v1474_v42  ;;  %1472 = vadd.xlane.f32.xlu1 %v1471_v59 }
 0x6cd   :  { %4214 = vmatprep.subr.bf16.mxu0 %v4467_v41 }
 0x6cf   :  { %4215 = vmatpush3.bf16.msra.mxu0 %v4467_v41 }
 0x6d0   :  { %1478 = vadd.xlane.f32.xlu0 %v1477_v63  ;;  %4216 = vmatprep.subr.bf16.mxu0 %v4468_v39 }
 0x6d3   :  { %4217 = vmatpush3.bf16.msra.mxu0 %v4468_v39 }
 0x6d4   :  { %4222 = vmatprep.subr.bf16.mxu0 %v4774_v13 }
 0x751   :  { %v1470_v2 = vpop.xlane.xlu0 %1469 }
 0x752   :  { %v1480_v20 = vmul.f32 0.03125, %v1470_v2 }
 0x754   :  { %v1484_v16 = vadd.f32 1e-06, %v1480_v20 }
 0x755   :  { %v1476_v19 = vpop.xlane.xlu0 %1475  ;;  %v1473_v11 = vpop.xlane.xlu1 %1472 }
 0x756   :  { %v1482_v3 = vmul.f32 0.03125, %v1476_v19  ;;  %v1481_v60 = vmul.f32 0.03125, %v1473_v11  ;;  %4562 = vrsqrt.f32 %v1484_v16 }
 0x758   :  { %v1486_v53 = vadd.f32 1e-06, %v1482_v3  ;;  %v1485_v27 = vadd.f32 1e-06, %v1481_v60 }
 0x759   :  { %v1479_v52 = vpop.xlane.xlu0 %1478 }
 0x75a   :  { %4564 = vrsqrt.f32 %v1486_v53  ;;  %v1483_v26 = vmul.f32 0.03125, %v1479_v52 }
 0x75b   :  { %4566 = vrsqrt.f32 %v1485_v27 }
 0x75c   :  { %v1487_v8 = vadd.f32 1e-06, %v1483_v26 }
 0x75e   :  { %4568 = vrsqrt.f32 %v1487_v8 }
 0x763   :  { %v4563_v31 = vpop.eup %4562 }
 0x764   :  { %v1492_v22 = vmul.f32 %v4563_v31, %v5398_v48 }
 0x766   :  { %v1502_v47 = vmul.f32 %v3890_v9, %v1492_v22 }
 0x767   :  { %v4565_v37 = vpop.eup %4564 }
 0x768   :  { %v4567_v24 = vpop.eup %4566  ;;  %v1494_v5 = vmul.f32 %v4565_v37, %v5393_v23 }
 0x769   :  { %v1493_v44 = vmul.f32 %v4567_v24, %v5410_v55 }
 0x76a   :  { %v1504_v40 = vmul.f32 %v3890_v9, %v1494_v5 }
 0x76b   :  { %v4569_v21 = vpop.eup %4568  ;;  %v1503_v35 = vmul.f32 %v3890_v9, %v1493_v44 }
 0x76c   :  { %v1495_v1 = vmul.f32 %v4569_v21, %v5405_v43 }
 0x76d   :  { %v1506_v17 = vpack.c.bf16 %v1503_v35, %v1502_v47 }
 0x76e   :  { %v1505_v29 = vmul.f32 %v3890_v9, %v1495_v1 }
 0x76f   :  { %4206 = vmatprep.mubr.msk.bf16.mxu1 %vm112_vm0, %v1506_v17 }
 0x770   :  { %v1507_v32 = vpack.c.bf16 %v1505_v29, %v1504_v40 }
 0x772   :  { %4207 = vmatmul.mubr.msk.bf16.vlgmr.msra.gmra.mxu1 %vm112_vm0, %v1507_v32 }
 0x773   :  { %1830 = vmatprep.mubr.bf16.mxu1 %v4770_v15 }
 0x832   :  { %v4208_v56 = vpop.f32.mrf.mxu1 }
 0x833   :  { %1615 = vrot.lane.b32.xlu1 %v4208_v56, %s4773_s24  ;;  %v3897_v46 = vmul.f32 -1.442695, %v4208_v56 }
 0x834   :  { %v1564_v36 = vpop.f32.mrf.mxu1 }
 0x835   :  { %1611 = vrot.lane.b32.xlu0 %v1564_v36, %s4773_s24  ;;  %v3895_v42 = vmul.f32 -1.442695, %v1564_v36 }
 0x836   :  { %v4209_v45 = vpop.f32.mrf.mxu1 }
 0x837   :  { %4570 = vpow2.f32 %v3895_v42  ;;  %v3898_v63 = vmul.f32 -1.442695, %v4209_v45 }
 0x838   :  { %v1567_v49 = vpop.f32.mrf.mxu1 }
 0x839   :  { %1613 = vrot.lane.b32.xlu1 %v1567_v49, %s4773_s24  ;;  %v3896_v59 = vmul.f32 -1.442695, %v1567_v49 }
 0x83b   :  { %4572 = vpow2.f32 %v3896_v59  ;;  %v4469_v59 = vld [vmem:[%s6021_s5 + $0x30] ss:$8 sps:$4 sm:$0xff]  }
 0x83c   :  { %4574 = vpow2.f32 %v3897_v46  ;;  %v4471_v46 = vld [vmem:[%s6021_s5 + $0x34] ss:$8 sps:$4 sm:$0xff]  }
 0x83d   :  { %1617 = vrot.lane.b32.xlu1 %v4209_v45, %s4773_s24  ;;  %4576 = vpow2.f32 %v3898_v63  ;;  %v4474_v63 = vld [vmem:[%s6021_s5 + $0x24] ss:$8 sps:$4 sm:$0xff]   ;;  %1810 = vmatprep.subr.bf16.mxu1 %v4471_v46 }
 0x83e   :  { %1811 = vmatpush1.bf16.msra.mxu1 %v4469_v59 }
 0x83f   :  { %1812 = vmatprep.subr.bf16.mxu1 %v4474_v63 }
 0x844   :  { %v4571_v6 = vpop.eup %4570 }
 0x845   :  { %v1591_v2 = vadd.f32 1.0, %v4571_v6  ;;  %v4472_v6 = vld [vmem:[%s6021_s5 + $0x20] ss:$8 sps:$4 sm:$0xff]   ;;  %s6064_s5 = smov 112  }
 0x846   :  { %1813 = vmatpush1.bf16.msra.mxu1 %v4472_v6 }
 0x847   :  { %4578 = vrcp.f32 %v1591_v2  ;;  %4228 = vmatprep.subr.bf16.mxu1 %v4774_v13 }
 0x848   :  { %v4573_v58 = vpop.eup %4572 }
 0x849   :  { %v4575_v20 = vpop.eup %4574  ;;  %v1592_v16 = vadd.f32 1.0, %v4573_v58 }
 0x84a   :  { %v4577_v19 = vpop.eup %4576  ;;  %v1593_v11 = vadd.f32 1.0, %v4575_v20 }
 0x84b   :  { %v1594_v3 = vadd.f32 1.0, %v4577_v19  ;;  %4580 = vrcp.f32 %v1592_v16 }
 0x84c   :  { %4582 = vrcp.f32 %v1593_v11 }
 0x84d   :  { %4584 = vrcp.f32 %v1594_v3 }
 0x854   :  { %v4579_v60 = vpop.eup %4578 }
 0x855   :  { %v1603_v8 = vmul.f32 %v4579_v60, %v1564_v36 }
 0x858   :  { %v4581_v53 = vpop.eup %4580 }
 0x859   :  { %v4583_v26 = vpop.eup %4582  ;;  %v1604_v31 = vmul.f32 %v4581_v53, %v1567_v49 }
 0x85a   :  { %v4585_v37 = vpop.eup %4584  ;;  %v1605_v44 = vmul.f32 %v4583_v26, %v4208_v56 }
 0x85b   :  { %v1606_v5 = vmul.f32 %v4585_v37, %v4209_v45 }
 0x8a5   :  { %v1616_v27 = vpop.permute.xlu1 %1615 }
 0x8a6   :  { %v1625_v35 = vmul.f32 %v1616_v27, %v1605_v44 }
 0x8a7   :  { %v1612_v52 = vpop.permute.xlu0 %1611 }
 0x8a8   :  { %v1623_v24 = vmul.f32 %v1612_v52, %v1603_v8 }
 0x8ab   :  { %v1614_v22 = vpop.permute.xlu1 %1613 }
 0x8ac   :  { %v1624_v9 = vmul.f32 %v1614_v22, %v1604_v31  ;;  %v3906_v22 = vld [vmem:[%s6061_s28 + $0x1] ss:$0 sm:$0xff] }
 0x8ae   :  { %v1627_v21 = vpack.c.bf16 %v1624_v9, %v1623_v24 }
 0x8af   :  { %v1618_v47 = vpop.permute.xlu1 %1617 }
 0x8b0   :  { %v1626_v1 = vmul.f32 %v1618_v47, %v1606_v5  ;;  %4218 = vmatprep.mubr.msk.bf16.mxu0 %vm1661_vm14, %v1627_v21 }
 0x8b2   :  { %v1628_v17 = vpack.c.bf16 %v1626_v1, %v1625_v35 }
 0x8b4   :  { %4219 = vmatmul.mubr.msk.bf16.vlgmr.msra.gmra.mxu0 %vm1661_vm14, %v1628_v17 }
 0x8b5   :  { %4224 = vmatprep.mubr.msk.bf16.mxu0 %vm4775_vm1, %v4774_v13 }
 0x974   :  { %v4220_v40 = vpop.f32.mrf.mxu0 }
 0x975   :  { %v5460_v32 = vadd.f32 %v4220_v40, %v5393_v23 }
 0x976   :  { %v1702_v29 = vpop.f32.mrf.mxu0 }
 0x977   :  { %v5463_v38 = vadd.f32 %v1702_v29, %v5398_v48  ;;  %v1725_v23 = vmul.f32 %v5460_v32, %v5460_v32 }
 0x978   :  { %v4221_v57 = vpop.f32.mrf.mxu0 }
 0x979   :  { %v1723_v41 = vmul.f32 %v5463_v38, %v5463_v38  ;;  %v5468_v56 = vadd.f32 %v4221_v57, %v5405_v43  ;;  %v1733_v49 = vsel %vm112_vm0, %v1725_v23, 0.0 }
 0x97a   :  { %v1705_v39 = vpop.f32.mrf.mxu0 }
 0x97b   :  { %v5471_v36 = vadd.f32 %v1705_v39, %v5410_v55  ;;  %v1727_v45 = vsel %vm112_vm0, %v1723_v41, 0.0  ;;  %v1726_v43 = vmul.f32 %v5468_v56, %v5468_v56 }
 0x97c   :  { %1728 = vadd.xlane.f32.xlu0 %v1727_v45 }
 0x97d   :  { %v1724_v48 = vmul.f32 %v5471_v36, %v5471_v36  ;;  %v1736_v55 = vsel %vm112_vm0, %v1726_v43, 0.0 }
 0x97f   :  { %v1730_v42 = vsel %vm112_vm0, %v1724_v48, 0.0 }
 0x980   :  { %1734 = vadd.xlane.f32.xlu0 %v1733_v49  ;;  %1731 = vadd.xlane.f32.xlu1 %v1730_v42 }
 0x984   :  { %1737 = vadd.xlane.f32.xlu0 %v1736_v55 }
 0xa05   :  { %v1729_v58 = vpop.xlane.xlu0 %1728 }
 0xa06   :  { %v1739_v2 = vmul.f32 0.03125, %v1729_v58 }
 0xa08   :  { %v1743_v20 = vadd.f32 1e-06, %v1739_v2 }
 0xa09   :  { %v1735_v16 = vpop.xlane.xlu0 %1734  ;;  %v1732_v19 = vpop.xlane.xlu1 %1731 }
 0xa0a   :  { %v1740_v11 = vmul.f32 0.03125, %v1732_v19  ;;  %4586 = vrsqrt.f32 %v1743_v20  ;;  %v1741_v3 = vmul.f32 0.03125, %v1735_v16 }
 0xa0c   :  { %v1744_v60 = vadd.f32 1e-06, %v1740_v11  ;;  %v1745_v52 = vadd.f32 1e-06, %v1741_v3 }
 0xa0d   :  { %v1738_v53 = vpop.xlane.xlu0 %1737 }
 0xa0e   :  { %v1742_v27 = vmul.f32 0.03125, %v1738_v53  ;;  %4588 = vrsqrt.f32 %v1744_v60 }
 0xa10   :  { %v1746_v26 = vadd.f32 1e-06, %v1742_v27 }
 0xa12   :  { %4590 = vrsqrt.f32 %v1746_v26 }
 0xa13   :  { %4592 = vrsqrt.f32 %v1745_v52 }
 0xa17   :  { %v4587_v8 = vpop.eup %4586 }
 0xa18   :  { %v1751_v31 = vmul.f32 %v4587_v8, %v5463_v38 }
 0xa1a   :  { %v1761_v44 = vmul.f32 %v3906_v22, %v1751_v31 }
 0xa1b   :  { %v4589_v37 = vpop.eup %4588 }
 0xa1c   :  { %v1752_v24 = vmul.f32 %v4589_v37, %v5471_v36  ;;  %v4746_v37 = vld [vmem:[%s6060_s22 + $0x10] sm:$0xff] }
 0xa1e   :  { %v1762_v5 = vmul.f32 %v3906_v22, %v1752_v24 }
 0xa1f   :  { %v4591_v9 = vpop.eup %4590 }
 0xa20   :  { %v4593_v21 = vpop.eup %4592  ;;  %v1765_v47 = vpack.c.bf16 %v1762_v5, %v1761_v44  ;;  %v1754_v35 = vmul.f32 %v4591_v9, %v5468_v56 }
 0xa21   :  { %v1753_v1 = vmul.f32 %v4593_v21, %v5460_v32 }
 0xa22   :  { %3915 = vmatmul.mubr.msk.bf16.vlgmr.msra.gmra.mxu1 %vm112_vm0, %v1765_v47  ;;  %v1764_v17 = vmul.f32 %v3906_v22, %v1754_v35 }
 0xa23   :  { %1840 = vmatprep.mubr.bf16.mxu1 %v4770_v15  ;;  %v1763_v40 = vmul.f32 %v3906_v22, %v1753_v1 }
 0xa25   :  { %v1766_v29 = vpack.c.bf16 %v1764_v17, %v1763_v40 }
 0xa2a   :  { %3916 = vmatmul.mubr.msk.bf16.gmra.mxu1 %vm112_vm0, %v1766_v29 }
 0xa2b   :  { %4230 = vmatprep.mubr.msk.bf16.mxu1 %vm4775_vm1, %v4774_v13 }
 0xae2   :  { %v1832_v57 = vpop.f32.mrf.mxu1 }
 0xae3   :  { %v1883_v41 = vmul.f32 %v1832_v57, %v4981_v51  ;;  %v1855_v42 = vmul.f32 %v1832_v57, %v4984_v54  ;;  %v1879_v63 = vmul.f32 %v1832_v57, %v5030_v12  ;;  %v4745_v12 = vld [vmem:[%s6060_s22 + $0x8] sm:$0xff] }
 0xae4   :  { %v1834_v39 = vpop.f32.mrf.mxu1 }
 0xae5   :  { %1891 = vrot.lane.b32.xlu0 %v1883_v41, %s4771_s27 }
 0xae6   :  { %v1836_v45 = vpop.f32.mrf.mxu1 }
 0xae7   :  { %v1884_v23 = vmul.f32 %v1836_v45, %v4979_v50  ;;  %v1856_v51 = vmul.f32 %v1836_v45, %v4993_v61  ;;  %v1880_v61 = vmul.f32 %v1836_v45, %v5034_v14  ;;  %v1852_v16 = vmul.f32 %v4745_v12, %v1836_v45 }
 0xae8   :  { %v1838_v48 = vpop.f32.mrf.mxu1 }
 0xae9   :  { %v5511_v49 = vpack.c.bf16 %v1838_v48, %v1834_v39  ;;  %1893 = vrot.lane.b32.xlu1 %v1884_v23, %s4771_s27 }
 0xaea   :  { %v1842_v15 = vpop.f32.mrf.mxu1 }
 0xaeb   :  { %v1885_v43 = vmul.f32 %v1842_v15, %v4998_v0  ;;  %v1857_v50 = vmul.f32 %v1842_v15, %v5019_v7  ;;  %v1881_v60 = vmul.f32 %v1842_v15, %v5044_v28  ;;  %v1853_v22 = vmul.f32 %v4746_v37, %v1842_v15  ;;  %v4747_v28 = vld [vmem:[%s6060_s22 + $0x18] sm:$0xff] }
 0xaec   :  { %v5516_v55 = vpop.f32.mrf.mxu1 }
 0xaed   :  { %1863 = vrot.lane.b32.xlu1 %v1855_v42, %s4771_s27  ;;  %1895 = vrot.lane.b32.xlu0 %v1885_v43, %s4771_s27 }
 0xaee   :  { %v1846_v59 = vpop.f32.mrf.mxu1 }
 0xaef   :  { %v1886_v46 = vmul.f32 %v1846_v59, %v5012_v4  ;;  %v1858_v54 = vmul.f32 %v1846_v59, %v5026_v10  ;;  %v4744_v4 = vld [vmem:[%s6060_s22] sm:$0xff]  ;;  %v1882_v27 = vmul.f32 %v1846_v59, %v5048_v33  ;;  %v1854_v9 = vmul.f32 %v4747_v28, %v1846_v59  ;;  %s6066_s22 = smov 8  }
 0xaf0   :  { %v1851_v10 = vmul.f32 %v4744_v4, %v1832_v57 }
 0xaf1   :  { %1865 = vrot.lane.b32.xlu1 %v1856_v51, %s4771_s27  ;;  %1867 = vrot.lane.b32.xlu0 %v1857_v50, %s4771_s27 }
 0xaf5   :  { %1897 = vrot.lane.b32.xlu1 %v1886_v46, %s4771_s27 }
 0xaf9   :  { %1869 = vrot.lane.b32.xlu1 %v1858_v54, %s4771_s27 }
 0xb57   :  { %v1892_v0 = vpop.permute.xlu0 %1891 }
 0xb58   :  { %v1903_v7 = vadd.f32 %v1892_v0, %v1879_v63 }
 0xb5b   :  { %v1894_v6 = vpop.permute.xlu1 %1893 }
 0xb5c   :  { %v1904_v58 = vadd.f32 %v1894_v6, %v1880_v61  ;;  %v5600_v61 = vpop.f32.mrf.mxu1 }
 0xb5e   :  { %v1909_v2 = vpack.c.bf16 %v1904_v58, %v1903_v7 }
 0xb5f   :  { %v1864_v20 = vpop.permute.xlu1 %1863  ;;  %v1896_v14 = vpop.permute.xlu0 %1895 }
 0xb60   :  { %1914 = vrot.lane.b32.xlu0 %v1909_v2, %s4773_s24  ;;  %1966 = vrot.lane.b32.xlu1 %v1909_v2, %s4776_s21  ;;  %v1875_v11 = vadd.f32 %v1864_v20, %v1851_v10  ;;  %v1905_v26 = vadd.f32 %v1896_v14, %v1881_v60 }
 0xb63   :  { %v1866_v19 = vpop.permute.xlu1 %1865  ;;  %v1868_v31 = vpop.permute.xlu0 %1867 }
 0xb64   :  { %v1876_v3 = vadd.f32 %v1866_v19, %v1852_v16  ;;  %2017 = vrot.lane.b32.xlu0 %v1909_v2, %s4777_s1  ;;  %v1877_v44 = vadd.f32 %v1868_v31, %v1853_v22 }
 0xb66   :  { %v1907_v53 = vpack.c.bf16 %v1876_v3, %v1875_v11 }
 0xb67   :  { %v1898_v52 = vpop.permute.xlu1 %1897 }
 0xb68   :  { %v1906_v8 = vadd.f32 %v1898_v52, %v1882_v27  ;;  %2068 = vrot.lane.b32.xlu0 %v1909_v2, %s4779_s3  ;;  %1964 = vrot.lane.b32.xlu1 %v1907_v53, %s6063_s0 }
 0xb6a   :  { %v1910_v24 = vpack.c.bf16 %v1906_v8, %v1905_v26 }
 0xb6b   :  { %v1870_v33 = vpop.permute.xlu1 %1869 }
 0xb6c   :  { %v1878_v5 = vadd.f32 %v1870_v33, %v1854_v9  ;;  %2118 = vrot.lane.b32.xlu0 %v1910_v24, %s4773_s24  ;;  %2015 = vrot.lane.b32.xlu1 %v1907_v53, %s6064_s5 }
 0xb6e   :  { %v1908_v21 = vpack.c.bf16 %v1878_v5, %v1877_v44 }
 0xb70   :  { %2170 = vrot.lane.b32.xlu0 %v1910_v24, %s4776_s21  ;;  %2066 = vrot.lane.b32.xlu1 %v1907_v53, %s6065_s4  ;;  %s6067_s21 = smov 16  }
 0xb74   :  { %2221 = vrot.lane.b32.xlu1 %v1910_v24, %s4777_s1  ;;  %2168 = vrot.lane.b32.xlu0 %v1908_v21, %s6063_s0  ;;  %s6068_s1 = smov 24  }
 0xb78   :  { %2272 = vrot.lane.b32.xlu1 %v1910_v24, %s4779_s3  ;;  %2219 = vrot.lane.b32.xlu0 %v1908_v21, %s6064_s5 }
 0xb7c   :  { %2270 = vrot.lane.b32.xlu1 %v1908_v21, %s6065_s4 }
 0xbd2   :  { %v1915_v47 = vpop.permute.xlu0 %1914  ;;  %v1967_v35 = vpop.permute.xlu1 %1966 }
 0xbd3   :  { %v1920_v1 = vsel %vm346_vm2, %v1915_v47, 0  ;;  %v1972_v17 = vsel %vm346_vm2, %v1967_v35, 0 }
 0xbd4   :  { %4223 = vmatpush3.bf16.xpose.msra.mxu0 %v1920_v1  ;;  %4229 = vmatpush3.bf16.xpose.msra.mxu1 %v1972_v17 }
 0xbd5   :  { %4234 = vmatprep.subr.bf16.mxu0 %v4774_v13  ;;  %4240 = vmatprep.subr.bf16.mxu1 %v4774_v13 }
 0xbd6   :  { %v2018_v40 = vpop.permute.xlu0 %2017 }
 0xbd7   :  { %v2023_v41 = vsel %vm346_vm2, %v2018_v40, 0 }
 0xbda   :  { %v2069_v29 = vpop.permute.xlu0 %2068  ;;  %v1965_v57 = vpop.permute.xlu1 %1964 }
 0xbdb   :  { %v2074_v39 = vsel %vm346_vm2, %v2069_v29, 0  ;;  %4225 = vmatmul.mubr.msk.bf16.vlgmr.msra.gmra.mxu0 %vm346_vm2, %v1907_v53  ;;  %4231 = vmatmul.mubr.msk.bf16.vlgmr.msra.gmra.mxu1 %vm346_vm2, %v1965_v57 }
 0xbdc   :  { %4235 = vmatpush3.bf16.xpose.msra.mxu0 %v2023_v41  ;;  %4241 = vmatpush3.bf16.xpose.msra.mxu1 %v2074_v39 }
 0xbdd   :  { %4236 = vmatprep.mubr.msk.bf16.mxu0 %vm4775_vm1, %v4774_v13  ;;  %4242 = vmatprep.mubr.msk.bf16.mxu1 %vm4775_vm1, %v4774_v13 }
 0xbde   :  { %v2119_v45 = vpop.permute.xlu0 %2118  ;;  %v2016_v23 = vpop.permute.xlu1 %2015  ;;  %4246 = vmatprep.subr.bf16.mxu0 %v4774_v13  ;;  %4252 = vmatprep.subr.bf16.mxu1 %v4774_v13 }
 0xbdf   :  { %v2124_v42 = vsel %vm346_vm2, %v2119_v45, 0 }
 0xbe2   :  { %v2171_v48 = vpop.permute.xlu0 %2170  ;;  %v2067_v15 = vpop.permute.xlu1 %2066 }
 0xbe3   :  { %v2176_v43 = vsel %vm346_vm2, %v2171_v48, 0  ;;  %4237 = vmatmul.mubr.msk.bf16.vlgmr.msra.gmra.mxu0 %vm346_vm2, %v2016_v23  ;;  %4243 = vmatmul.mubr.msk.bf16.vlgmr.msra.gmra.mxu1 %vm346_vm2, %v2067_v15 }
 0xbe4   :  { %4247 = vmatpush3.bf16.xpose.msra.mxu0 %v2124_v42  ;;  %4253 = vmatpush3.bf16.xpose.msra.mxu1 %v2176_v43 }
 0xbe5   :  { %4248 = vmatprep.mubr.msk.bf16.mxu0 %vm4775_vm1, %v4774_v13  ;;  %4254 = vmatprep.mubr.msk.bf16.mxu1 %vm4775_vm1, %v4774_v13 }
 0xbe6   :  { %v2222_v51 = vpop.permute.xlu1 %2221  ;;  %4258 = vmatprep.subr.bf16.mxu0 %v4774_v13  ;;  %4264 = vmatprep.subr.bf16.mxu1 %v4774_v13  ;;  %v2169_v50 = vpop.permute.xlu0 %2168 }
 0xbe7   :  { %v2227_v46 = vsel %vm346_vm2, %v2222_v51, 0 }
 0xbea   :  { %v2273_v59 = vpop.permute.xlu1 %2272  ;;  %v2220_v0 = vpop.permute.xlu0 %2219 }
 0xbeb   :  { %v2278_v54 = vsel %vm346_vm2, %v2273_v59, 0  ;;  %4249 = vmatmul.mubr.msk.bf16.vlgmr.msra.gmra.mxu0 %vm346_vm2, %v1908_v21  ;;  %4255 = vmatmul.mubr.msk.bf16.vlgmr.msra.gmra.mxu1 %vm346_vm2, %v2169_v50 }
 0xbec   :  { %4259 = vmatpush3.bf16.xpose.msra.mxu0 %v2227_v46  ;;  %4265 = vmatpush3.bf16.xpose.msra.mxu1 %v2278_v54 }
 0xbed   :  { %4260 = vmatprep.mubr.msk.bf16.mxu0 %vm4775_vm1, %v4774_v13  ;;  %4266 = vmatprep.mubr.msk.bf16.mxu1 %vm4775_vm1, %v4774_v13 }
 0xbee   :  { %4270 = vmatprep.subr.bf16.mxu0 %v4774_v13  ;;  %4276 = vmatprep.subr.bf16.mxu1 %v4774_v13  ;;  %v2271_v63 = vpop.permute.xlu1 %2270 }
 0xbf3   :  { %4261 = vmatmul.mubr.msk.bf16.vlgmr.msra.gmra.mxu0 %vm346_vm2, %v2220_v0  ;;  %4267 = vmatmul.mubr.msk.bf16.vlgmr.msra.gmra.mxu1 %vm346_vm2, %v2271_v63 }
 0xbf4   :  { %4271 = vmatpush3.bf16.msra.mxu0 %v5511_v49  ;;  %4272 = vmatprep.mubr.msk.bf16.mxu0 %vm4775_vm1, %v4774_v13 }
 0xbf5   :  { %4282 = vmatprep.subr.bf16.mxu0 %v4774_v13  ;;  %4278 = vmatprep.mubr.msk.bf16.mxu1 %vm4775_vm1, %v4774_v13 }
 0xc9b   :  { %v1956_v6 = vpop.f32.mrf.mxu0  ;;  %v2008_v7 = vpop.f32.mrf.mxu1 }
 0xc9c   :  { %v5603_v58 = vadd.f32 %v1956_v6, %v5119_v30  ;;  %v5606_v4 = vadd.f32 %v2008_v7, %v5119_v30 }
 0xc9d   :  { %v4226_v2 = vpop.f32.mrf.mxu0  ;;  %v4232_v20 = vpop.f32.mrf.mxu1 }
 0xc9e   :  { %v2337_v10 = vsel %vm768_vm9, %v5603_v58, -inf  ;;  %v2343_v53 = vsel %vm768_vm9, %v5606_v4, -inf }
 0xc9f   :  { %v1959_v12 = vpop.f32.mrf.mxu0  ;;  %2338 = vmax.xlane.f32.xlu0 %v2337_v10  ;;  %v2011_v16 = vpop.f32.mrf.mxu1 }
 0xca0   :  { %v5611_v14 = vadd.f32 %v1959_v12, %v5128_v34  ;;  %v5614_v3 = vadd.f32 %v2011_v16, %v5128_v34 }
 0xca1   :  { %v4227_v19 = vpop.f32.mrf.mxu0  ;;  %v4233_v11 = vpop.f32.mrf.mxu1 }
 0xca2   :  { %v2340_v60 = vsel %vm768_vm9, %v5611_v14, -inf  ;;  %v2346_v37 = vsel %vm768_vm9, %v5614_v3, -inf }
 0xca3   :  { %v2059_v27 = vpop.f32.mrf.mxu0  ;;  %2341 = vmax.xlane.f32.xlu1 %v2340_v60  ;;  %2344 = vmax.xlane.f32.xlu0 %v2343_v53  ;;  %v2110_v52 = vpop.f32.mrf.mxu1  ;;  %v5690_v53 = vpack.c.bf16 %v5600_v61, %v5516_v55 }
 0xca4   :  { %v5621_v31 = vadd.f32 %v2059_v27, %v5119_v30  ;;  %v5629_v44 = vadd.f32 %v2110_v52, %v5119_v30 }
 0xca5   :  { %v4238_v26 = vpop.f32.mrf.mxu0  ;;  %v4244_v8 = vpop.f32.mrf.mxu1 }
 0xca6   :  { %v2349_v47 = vsel %vm768_vm9, %v5621_v31, -inf  ;;  %v2355_v30 = vsel %vm768_vm9, %v5629_v44, -inf }
 0xca7   :  { %v2062_v22 = vpop.f32.mrf.mxu0  ;;  %2347 = vmax.xlane.f32.xlu0 %v2346_v37  ;;  %v2113_v24 = vpop.f32.mrf.mxu1 }
 0xca8   :  { %v5626_v28 = vadd.f32 %v2062_v22, %v5128_v34  ;;  %v5632_v5 = vadd.f32 %v2113_v24, %v5128_v34 }
 0xca9   :  { %v4239_v9 = vpop.f32.mrf.mxu0  ;;  %v4245_v33 = vpop.f32.mrf.mxu1 }
 0xcaa   :  { %v2352_v21 = vsel %vm768_vm9, %v5626_v28, -inf  ;;  %v2358_v34 = vsel %vm768_vm9, %v5632_v5, -inf }
 0xcab   :  { %2353 = vmax.xlane.f32.xlu1 %v2352_v21  ;;  %v2160_v35 = vpop.f32.mrf.mxu0  ;;  %2350 = vmax.xlane.f32.xlu0 %v2349_v47  ;;  %v2212_v1 = vpop.f32.mrf.mxu1 }
 0xcac   :  { %v5639_v29 = vadd.f32 %v2160_v35, %v5173_v18  ;;  %v5649_v48 = vadd.f32 %v2212_v1, %v5173_v18 }
 0xcad   :  { %v4250_v17 = vpop.f32.mrf.mxu0  ;;  %v4256_v40 = vpop.f32.mrf.mxu1 }
 0xcae   :  { %v2361_v42 = vsel %vm768_vm9, %v5639_v29, -inf  ;;  %v2367_v0 = vsel %vm768_vm9, %v5649_v48, -inf }
 0xcaf   :  { %v2163_v57 = vpop.f32.mrf.mxu0  ;;  %2356 = vmax.xlane.f32.xlu0 %v2355_v30  ;;  %2359 = vmax.xlane.f32.xlu1 %v2358_v34  ;;  %v2215_v41 = vpop.f32.mrf.mxu1 }
 0xcb0   :  { %v5646_v39 = vadd.f32 %v2163_v57, %v5153_v62  ;;  %v5652_v15 = vadd.f32 %v2215_v41, %v5153_v62 }
 0xcb1   :  { %v4251_v45 = vpop.f32.mrf.mxu0  ;;  %v4257_v23 = vpop.f32.mrf.mxu1 }
 0xcb2   :  { %v2364_v43 = vsel %vm768_vm9, %v5646_v39, -inf  ;;  %v2370_v63 = vsel %vm768_vm9, %v5652_v15, -inf }
 0xcb3   :  { %v2263_v51 = vpop.f32.mrf.mxu0  ;;  %2362 = vmax.xlane.f32.xlu0 %v2361_v42  ;;  %2365 = vmax.xlane.f32.xlu1 %v2364_v43  ;;  %v2314_v50 = vpop.f32.mrf.mxu1 }
 0xcb4   :  { %v5659_v54 = vadd.f32 %v2263_v51, %v5173_v18  ;;  %v5666_v10 = vadd.f32 %v2314_v50, %v5173_v18 }
 0xcb5   :  { %v4262_v59 = vpop.f32.mrf.mxu0  ;;  %v4268_v46 = vpop.f32.mrf.mxu1 }
 0xcb6   :  { %v2373_v12 = vsel %vm768_vm9, %v5659_v54, -inf  ;;  %v2379_v16 = vsel %vm768_vm9, %v5666_v10, -inf }
 0xcb7   :  { %v2266_v6 = vpop.f32.mrf.mxu0  ;;  %2368 = vmax.xlane.f32.xlu0 %v2367_v0  ;;  %2371 = vmax.xlane.f32.xlu1 %v2370_v63  ;;  %v2317_v7 = vpop.f32.mrf.mxu1 }
 0xcb8   :  { %v5679_v18 = vadd.f32 %v2266_v6, %v5153_v62  ;;  %v5682_v19 = vadd.f32 %v2317_v7, %v5153_v62 }
 0xcb9   :  { %v4263_v2 = vpop.f32.mrf.mxu0  ;;  %v4269_v20 = vpop.f32.mrf.mxu1 }
 0xcba   :  { %v2376_v11 = vsel %vm768_vm9, %v5679_v18, -inf  ;;  %v2382_v60 = vsel %vm768_vm9, %v5682_v19, -inf }
 0xcbb   :  { %2374 = vmax.xlane.f32.xlu0 %v2373_v12 }
 0xcbf   :  { %2380 = vmax.xlane.f32.xlu0 %v2379_v16 }
 0xcc8   :  { %2613 = vrot.lane.b32.xlu1 %v5511_v49, %s6064_s5 }
 0xccc   :  { %2660 = vrot.lane.b32.xlu1 %v5511_v49, %s6065_s4 }
 0xcd5   :  { %2566 = vrot.lane.b32.xlu0 %v5511_v49, %s6063_s0 }
 0xcf0   :  { %2377 = vmax.xlane.f32.xlu1 %v2376_v11 }
 0xcf4   :  { %2383 = vmax.xlane.f32.xlu1 %v2382_v60 }
 0xd05   :  { %2782 = vrot.lane.b32.xlu1 %v5690_v53, %s6063_s0 }
 0xd28   :  { %v2339_v49 = vpop.xlane.xlu0 %2338 }
 0xd29   :  { %v2385_v27 = vsub.f32 %v5603_v58, %v2339_v49 }
 0xd2b   :  { %v2401_v62 = vmul.f32 1.442695, %v2385_v27 }
 0xd2c   :  { %v2342_v52 = vpop.xlane.xlu1 %2341  ;;  %v2345_v26 = vpop.xlane.xlu0 %2344 }
 0xd2d   :  { %4594 = vpow2.f32 %v2401_v62  ;;  %v2386_v8 = vsub.f32 %v5611_v14, %v2342_v52  ;;  %v2387_v37 = vsub.f32 %v5606_v4, %v2345_v26 }
 0xd2f   :  { %v2403_v22 = vmul.f32 1.442695, %v2386_v8  ;;  %v2405_v24 = vmul.f32 1.442695, %v2387_v37 }
 0xd30   :  { %v2348_v9 = vpop.xlane.xlu0 %2347 }
 0xd31   :  { %4596 = vpow2.f32 %v2403_v22  ;;  %v2388_v55 = vsub.f32 %v5614_v3, %v2348_v9 }
 0xd32   :  { %4598 = vpow2.f32 %v2405_v24 }
 0xd33   :  { %v2407_v61 = vmul.f32 1.442695, %v2388_v55 }
 0xd34   :  { %v2354_v33 = vpop.xlane.xlu1 %2353  ;;  %v2351_v21 = vpop.xlane.xlu0 %2350 }
 0xd35   :  { %4600 = vpow2.f32 %v2407_v61  ;;  %v2390_v58 = vsub.f32 %v5626_v28, %v2354_v33  ;;  %v2389_v47 = vsub.f32 %v5621_v31, %v2351_v21 }
 0xd37   :  { %v2411_v35 = vmul.f32 1.442695, %v2390_v58  ;;  %v2409_v1 = vmul.f32 1.442695, %v2389_v47 }
 0xd38   :  { %v2357_v14 = vpop.xlane.xlu0 %2356  ;;  %v2360_v17 = vpop.xlane.xlu1 %2359 }
 0xd39   :  { %4602 = vpow2.f32 %v2411_v35  ;;  %v2391_v4 = vsub.f32 %v5629_v44, %v2357_v14  ;;  %v2392_v40 = vsub.f32 %v5632_v5, %v2360_v17 }
 0xd3a   :  { %v5702_v30 = vpop.eup %4594  ;;  %4604 = vpow2.f32 %v2409_v1 }
 0xd3b   :  { %v2413_v3 = vmul.f32 1.442695, %v2391_v4  ;;  %v2415_v34 = vmul.f32 1.442695, %v2392_v40  ;;  %v2433_v57 = vsel %vm768_vm9, %v5702_v30, 0.0 }
 0xd3c   :  { %v2363_v28 = vpop.xlane.xlu0 %2362  ;;  %v2366_v41 = vpop.xlane.xlu1 %2365  ;;  %2434 = vadd.xlane.f32.xlu0 %v2433_v57 }
 0xd3d   :  { %4606 = vpow2.f32 %v2413_v3  ;;  %v2393_v31 = vsub.f32 %v5639_v29, %v2363_v28  ;;  %v2394_v45 = vsub.f32 %v5646_v39, %v2366_v41 }
 0xd3e   :  { %v5708_v23 = vpop.eup %4596  ;;  %4608 = vpow2.f32 %v2415_v34 }
 0xd3f   :  { %v5710_v44 = vpop.eup %4598  ;;  %v2417_v5 = vmul.f32 1.442695, %v2393_v31  ;;  %v2419_v42 = vmul.f32 1.442695, %v2394_v45  ;;  %v2436_v43 = vsel %vm768_vm9, %v5708_v23, 0.0 }
 0xd40   :  { %v2369_v51 = vpop.xlane.xlu0 %2368  ;;  %v2372_v50 = vpop.xlane.xlu1 %2371  ;;  %v2439_v59 = vsel %vm768_vm9, %v5710_v44, 0.0  ;;  %2437 = vadd.xlane.f32.xlu1 %v2436_v43 }
 0xd41   :  { %4610 = vpow2.f32 %v2417_v5  ;;  %v2395_v29 = vsub.f32 %v5649_v48, %v2369_v51  ;;  %v2396_v39 = vsub.f32 %v5652_v15, %v2372_v50  ;;  %2440 = vadd.xlane.f32.xlu0 %v2439_v59 }
 0xd42   :  { %v5718_v46 = vpop.eup %4600  ;;  %4612 = vpow2.f32 %v2419_v42 }
 0xd43   :  { %v2421_v0 = vmul.f32 1.442695, %v2395_v29  ;;  %v2423_v63 = vmul.f32 1.442695, %v2396_v39  ;;  %v2442_v6 = vsel %vm768_vm9, %v5718_v46, 0.0 }
 0xd44   :  { %v2375_v7 = vpop.xlane.xlu0 %2374  ;;  %2443 = vadd.xlane.f32.xlu1 %v2442_v6  ;;  %v2614_v35 = vpop.permute.xlu1 %2613 }
 0xd45   :  { %4614 = vpow2.f32 %v2421_v0  ;;  %v2397_v2 = vsub.f32 %v5659_v54, %v2375_v7 }
 0xd46   :  { %v5723_v20 = vpop.eup %4602  ;;  %4616 = vpow2.f32 %v2423_v63 }
 0xd47   :  { %v5725_v48 = vpop.eup %4604  ;;  %v2425_v15 = vmul.f32 1.442695, %v2397_v2  ;;  %v2448_v12 = vsel %vm768_vm9, %v5723_v20, 0.0 }
 0xd48   :  { %v2445_v16 = vsel %vm768_vm9, %v5725_v48, 0.0  ;;  %v2381_v11 = vpop.xlane.xlu0 %2380  ;;  %2449 = vadd.xlane.f32.xlu1 %v2448_v12  ;;  %v2661_v1 = vpop.permute.xlu1 %2660 }
 0xd49   :  { %4618 = vpow2.f32 %v2425_v15  ;;  %2446 = vadd.xlane.f32.xlu0 %v2445_v16  ;;  %v2399_v60 = vsub.f32 %v5666_v10, %v2381_v11 }
 0xd4a   :  { %v5732_v49 = vpop.eup %4606 }
 0xd4b   :  { %v5734_v54 = vpop.eup %4608  ;;  %v2429_v27 = vmul.f32 1.442695, %v2399_v60  ;;  %v2451_v62 = vsel %vm768_vm9, %v5732_v49, 0.0 }
 0xd4c   :  { %v2567_v52 = vpop.permute.xlu0 %2566  ;;  %v2454_v26 = vsel %vm768_vm9, %v5734_v54, 0.0 }
 0xd4d   :  { %4620 = vpow2.f32 %v2429_v27  ;;  %2452 = vadd.xlane.f32.xlu0 %v2451_v62  ;;  %2455 = vadd.xlane.f32.xlu1 %v2454_v26 }
 0xd4e   :  { %v5740_v8 = vpop.eup %4610  ;;  %4277 = vmatpush3.bf16.msra.mxu1 %v2567_v52 }
 0xd4f   :  { %v5742_v37 = vpop.eup %4612  ;;  %v2457_v10 = vsel %vm768_vm9, %v5740_v8, 0.0  ;;  %4288 = vmatprep.subr.bf16.mxu1 %v4774_v13 }
 0xd50   :  { %v2460_v22 = vsel %vm768_vm9, %v5742_v37, 0.0 }
 0xd51   :  { %2458 = vadd.xlane.f32.xlu0 %v2457_v10  ;;  %2461 = vadd.xlane.f32.xlu1 %v2460_v22 }
 0xd52   :  { %v5749_v24 = vpop.eup %4614 }
 0xd53   :  { %v5751_v9 = vpop.eup %4616  ;;  %v2463_v55 = vsel %vm768_vm9, %v5749_v24, 0.0 }
 0xd54   :  { %v2466_v61 = vsel %vm768_vm9, %v5751_v9, 0.0 }
 0xd55   :  { %2464 = vadd.xlane.f32.xlu0 %v2463_v55  ;;  %2467 = vadd.xlane.f32.xlu1 %v2466_v61 }
 0xd56   :  { %v5757_v33 = vpop.eup %4618 }
 0xd57   :  { %v2469_v21 = vsel %vm768_vm9, %v5757_v33, 0.0 }
 0xd59   :  { %2470 = vadd.xlane.f32.xlu0 %v2469_v21 }
 0xd5a   :  { %v5761_v58 = vpop.eup %4620 }
 0xd5b   :  { %v2475_v47 = vsel %vm768_vm9, %v5761_v58, 0.0 }
 0xd5d   :  { %2476 = vadd.xlane.f32.xlu0 %v2475_v47 }
 0xd73   :  { %2829 = vrot.lane.b32.xlu0 %v5690_v53, %s6064_s5 }
 0xd79   :  { %v2378_v14 = vpop.xlane.xlu1 %2377 }
 0xd7a   :  { %v2398_v17 = vsub.f32 %v5679_v18, %v2378_v14 }
 0xd7c   :  { %v2427_v4 = vmul.f32 1.442695, %v2398_v17 }
 0xd7d   :  { %v2384_v40 = vpop.xlane.xlu1 %2383 }
 0xd7e   :  { %4622 = vpow2.f32 %v2427_v4  ;;  %v2400_v3 = vsub.f32 %v5682_v19, %v2384_v40 }
 0xd80   :  { %v2431_v34 = vmul.f32 1.442695, %v2400_v3 }
 0xd81   :  { %v5779_v18 = vpop.permute.xlu1 %2782 }
 0xd82   :  { %4624 = vpow2.f32 %v2431_v34 }
 0xd8b   :  { %v5769_v57 = vpop.eup %4622 }
 0xd8c   :  { %v2472_v28 = vsel %vm768_vm9, %v5769_v57, 0.0 }
 0xd8d   :  { %2473 = vadd.xlane.f32.xlu1 %v2472_v28 }
 0xd8f   :  { %v5773_v41 = vpop.eup %4624 }
 0xd90   :  { %v2478_v31 = vsel %vm768_vm9, %v5773_v41, 0.0 }
 0xd91   :  { %2479 = vadd.xlane.f32.xlu1 %v2478_v31 }
 0xda2   :  { %2876 = vrot.lane.b32.xlu1 %v5690_v53, %s6065_s4  ;;  %s3697_s4 = ssub.f32 1.0, %s6034_s18 }
 0xdc5   :  { %v2435_v19 = vpop.xlane.xlu0 %2434 }
 0xdc6   :  { %4626 = vrcp.f32 %v2435_v19 }
 0xdc9   :  { %v2438_v45 = vpop.xlane.xlu1 %2437 }
 0xdca   :  { %v2441_v5 = vpop.xlane.xlu0 %2440  ;;  %4628 = vrcp.f32 %v2438_v45 }
 0xdcb   :  { %4630 = vrcp.f32 %v2441_v5 }
 0xdcd   :  { %v2444_v42 = vpop.xlane.xlu1 %2443 }
 0xdce   :  { %4632 = vrcp.f32 %v2444_v42 }
 0xdd1   :  { %v2450_v43 = vpop.xlane.xlu1 %2449 }
 0xdd2   :  { %v2447_v51 = vpop.xlane.xlu0 %2446  ;;  %4634 = vrcp.f32 %v2450_v43 }
 0xdd3   :  { %4636 = vrcp.f32 %v2447_v51  ;;  %v4627_v50 = vpop.eup %4626 }
 0xdd4   :  { %v2482_v0 = vmul.f32 %v4627_v50, %v5702_v30 }
 0xdd6   :  { %v2453_v59 = vpop.xlane.xlu0 %2452  ;;  %v2456_v29 = vpop.xlane.xlu1 %2455 }
 0xdd7   :  { %v4629_v39 = vpop.eup %4628  ;;  %4638 = vrcp.f32 %v2453_v59 }
 0xdd8   :  { %4640 = vrcp.f32 %v2456_v29  ;;  %v2484_v63 = vmul.f32 %v4629_v39, %v5708_v23  ;;  %v4631_v6 = vpop.eup %4630 }
 0xdd9   :  { %v2486_v16 = vmul.f32 %v4631_v6, %v5710_v44 }
 0xdda   :  { %v2459_v7 = vpop.xlane.xlu0 %2458  ;;  %v2462_v2 = vpop.xlane.xlu1 %2461  ;;  %v2513_v15 = vpack.c.bf16 %v2484_v63, %v2482_v0 }
 0xddb   :  { %v4633_v12 = vpop.eup %4632  ;;  %4642 = vrcp.f32 %v2459_v7 }
 0xddc   :  { %4644 = vrcp.f32 %v2462_v2  ;;  %4273 = vmatmul.mubr.msk.bf16.vlgmr.msra.gmra.mxu0 %vm768_vm9, %v2513_v15  ;;  %v2488_v11 = vmul.f32 %v4633_v12, %v5718_v46 }
 0xddd   :  { %4283 = vmatpush3.bf16.msra.mxu0 %v2614_v35  ;;  %4284 = vmatprep.mubr.msk.bf16.mxu0 %vm4775_vm1, %v4774_v13 }
 0xdde   :  { %v2465_v30 = vpop.xlane.xlu0 %2464  ;;  %v2468_v60 = vpop.xlane.xlu1 %2467  ;;  %v2514_v23 = vpack.c.bf16 %v2488_v11, %v2486_v16  ;;  %4294 = vmatprep.subr.bf16.mxu0 %v4774_v13 }
 0xddf   :  { %v4635_v27 = vpop.eup %4634  ;;  %4646 = vrcp.f32 %v2465_v30 }
 0xde0   :  { %v4637_v62 = vpop.eup %4636  ;;  %4648 = vrcp.f32 %v2468_v60  ;;  %4279 = vmatmul.mubr.msk.bf16.vlgmr.msra.gmra.mxu1 %vm768_vm9, %v2514_v23  ;;  %v2492_v52 = vmul.f32 %v4635_v27, %v5723_v20 }
 0xde1   :  { %4289 = vmatpush3.bf16.msra.mxu1 %v2661_v1  ;;  %v2490_v44 = vmul.f32 %v4637_v62, %v5725_v48  ;;  %4290 = vmatprep.mubr.msk.bf16.mxu1 %vm4775_vm1, %v4774_v13 }
 0xde2   :  { %v2471_v46 = vpop.xlane.xlu0 %2470  ;;  %4300 = vmatprep.subr.bf16.mxu1 %v4774_v13 }
 0xde3   :  { %v2515_v26 = vpack.c.bf16 %v2492_v52, %v2490_v44  ;;  %4650 = vrcp.f32 %v2471_v46 }
 0xde4   :  { %v4639_v10 = vpop.eup %4638 }
 0xde5   :  { %v4641_v22 = vpop.eup %4640  ;;  %4285 = vmatmul.mubr.msk.bf16.vlgmr.msra.gmra.mxu0 %vm768_vm9, %v2515_v26  ;;  %v2494_v55 = vmul.f32 %v4639_v10, %v5732_v49  ;;  %v4475_v10 = vld [vmem:[%s6022_s6 + $0x18] sm:$0xff]  }
 0xde6   :  { %4295 = vmatpush3.bf16.msra.mxu0 %v5690_v53  ;;  %v2496_v20 = vmul.f32 %v4641_v22, %v5734_v54  ;;  %4296 = vmatprep.mubr.msk.bf16.mxu0 %vm4775_vm1, %v4774_v13  ;;  %v2477_v61 = vpop.xlane.xlu0 %2476 }
 0xde7   :  { %4306 = vmatprep.subr.bf16.mxu0 %v4774_v13 }
 0xde8   :  { %v4643_v48 = vpop.eup %4642  ;;  %v2516_v21 = vpack.c.bf16 %v2496_v20, %v2494_v55  ;;  %v4476_v55 = vld [vmem:[%s6022_s6 + $0x10] sm:$0xff]  }
 0xde9   :  { %v4645_v47 = vpop.eup %4644  ;;  %v2498_v35 = vmul.f32 %v4643_v48, %v5740_v8 }
 0xdea   :  { %4291 = vmatmul.mubr.msk.bf16.vlgmr.msra.gmra.mxu1 %vm768_vm9, %v2516_v21  ;;  %v2500_v1 = vmul.f32 %v4645_v47, %v5742_v37  ;;  %v2830_v17 = vpop.permute.xlu0 %2829 }
 0xdeb   :  { %4301 = vmatpush3.bf16.msra.mxu1 %v5779_v18  ;;  %4302 = vmatprep.mubr.msk.bf16.mxu1 %vm4775_vm1, %v4774_v13 }
 0xdec   :  { %v4647_v53 = vpop.eup %4646  ;;  %v2517_v49 = vpack.c.bf16 %v2500_v1, %v2498_v35  ;;  %4312 = vmatprep.subr.bf16.mxu1 %v4774_v13 }
 0xded   :  { %v4649_v54 = vpop.eup %4648  ;;  %v2502_v14 = vmul.f32 %v4647_v53, %v5749_v24 }
 0xdee   :  { %4297 = vmatmul.mubr.msk.bf16.vlgmr.msra.gmra.mxu0 %vm768_vm9, %v2517_v49  ;;  %v2504_v8 = vmul.f32 %v4649_v54, %v5751_v9 }
 0xdef   :  { %4307 = vmatpush3.bf16.msra.mxu0 %v2830_v17  ;;  %4308 = vmatprep.mubr.msk.bf16.mxu0 %vm4775_vm1, %v4774_v13 }
 0xdf0   :  { %v2518_v37 = vpack.c.bf16 %v2504_v8, %v2502_v14  ;;  %v4651_v3 = vpop.eup %4650  ;;  %4318 = vmatprep.subr.bf16.mxu0 %v4475_v10 }
 0xdf1   :  { %v2506_v34 = vmul.f32 %v4651_v3, %v5757_v33 }
 0xdf2   :  { %4303 = vmatmul.mubr.msk.bf16.vlgmr.msra.gmra.mxu1 %vm768_vm9, %v2518_v37 }
 0xdf3   :  { %4314 = vmatprep.mubr.msk.bf16.mxu1 %vm4775_vm1, %v4774_v13  ;;  %vm3843_vm1 = vcmask 254976  }
 0xe16   :  { %v2474_v4 = vpop.xlane.xlu1 %2473 }
 0xe17   :  { %4652 = vrcp.f32 %v2474_v4 }
 0xe18   :  { %4654 = vrcp.f32 %v2477_v61 }
 0xe1a   :  { %v2480_v24 = vpop.xlane.xlu1 %2479 }
 0xe1b   :  { %4656 = vrcp.f32 %v2480_v24 }
 0xe1e   :  { %v2877_v40 = vpop.permute.xlu1 %2876 }
 0xe1f   :  { %4313 = vmatpush3.bf16.msra.mxu1 %v2877_v40 }
 0xe24   :  { %v4653_v9 = vpop.eup %4652 }
 0xe25   :  { %v2508_v28 = vmul.f32 %v4653_v9, %v5769_v57  ;;  %v4655_v31 = vpop.eup %4654 }
 0xe26   :  { %v2510_v45 = vmul.f32 %v4655_v31, %v5761_v58 }
 0xe27   :  { %v2519_v18 = vpack.c.bf16 %v2508_v28, %v2506_v34 }
 0xe28   :  { %v4657_v19 = vpop.eup %4656 }
 0xe29   :  { %4309 = vmatmul.mubr.msk.bf16.vlgmr.msra.gmra.mxu0 %vm768_vm9, %v2519_v18  ;;  %v2512_v5 = vmul.f32 %v4657_v19, %v5773_v41 }
 0xe2a   :  { %4319 = vmatpush3.bf16.msra.mxu0 %v4475_v10 }
 0xe2b   :  { %v2520_v42 = vpack.c.bf16 %v2512_v5, %v2510_v45  ;;  %4320 = vmatprep.subr.bf16.mxu0 %v4476_v55 }
 0xe2d   :  { %4315 = vmatmul.mubr.msk.bf16.vlgmr.msra.gmra.mxu1 %vm768_vm9, %v2520_v42 }
 0xe2e   :  { %4321 = vmatpush3.bf16.msra.mxu0 %v4476_v55 }
 0xe9c   :  { %v2558_v43 = vpop.f32.mrf.mxu0 }
 0xe9e   :  { %v4274_v51 = vpop.f32.mrf.mxu0 }
 0xea0   :  { %v2561_v50 = vpop.f32.mrf.mxu0  ;;  %v2606_v59 = vpop.f32.mrf.mxu1 }
 0xea2   :  { %v4275_v29 = vpop.f32.mrf.mxu0  ;;  %v4280_v33 = vpop.f32.mrf.mxu1 }
 0xea4   :  { %v2609_v39 = vpop.f32.mrf.mxu1 }
 0xea5   :  { %v4423_v57 = vpack.i.bf16 %v2609_v39, %v2606_v59  ;;  %v2653_v0 = vpop.f32.mrf.mxu0 }
 0xea6   :  { %v4281_v63 = vpop.f32.mrf.mxu1 }
 0xea7   :  { %v4286_v6 = vpop.f32.mrf.mxu0  ;;  %4424 = vrot.lane.b32.xlu0 %v4423_v57, %s6066_s22 }
 0xea9   :  { %v2656_v7 = vpop.f32.mrf.mxu0 }
 0xeaa   :  { %v4428_v58 = vpack.i.bf16 %v2656_v7, %v2653_v0  ;;  %v2700_v2 = vpop.f32.mrf.mxu1 }
 0xeab   :  { %v4287_v41 = vpop.f32.mrf.mxu0 }
 0xeac   :  { %v4292_v15 = vpop.f32.mrf.mxu1  ;;  %4429 = vrot.lane.b32.xlu1 %v4428_v58, %s6067_s21 }
 0xeae   :  { %v2703_v12 = vpop.f32.mrf.mxu1  ;;  %v2774_v16 = vpop.f32.mrf.mxu0 }
 0xeaf   :  { %v4433_v11 = vpack.i.bf16 %v2703_v12, %v2700_v2 }
 0xeb0   :  { %v4293_v30 = vpop.f32.mrf.mxu1  ;;  %v4298_v60 = vpop.f32.mrf.mxu0 }
 0xeb1   :  { %4434 = vrot.lane.b32.xlu1 %v4433_v11, %s6068_s1 }
 0xeb2   :  { %v2777_v23 = vpop.f32.mrf.mxu0  ;;  %v2822_v27 = vpop.f32.mrf.mxu1 }
 0xeb4   :  { %v4299_v62 = vpop.f32.mrf.mxu0  ;;  %v4304_v52 = vpop.f32.mrf.mxu1 }
 0xeb6   :  { %v2825_v44 = vpop.f32.mrf.mxu1 }
 0xeb7   :  { %v4438_v46 = vpack.i.bf16 %v2825_v44, %v2822_v27 }
 0xeb8   :  { %v4305_v26 = vpop.f32.mrf.mxu1 }
 0xeb9   :  { %4439 = vrot.lane.b32.xlu0 %v4438_v46, %s6066_s22  ;;  %v4477_v46 = vld [vmem:[%s6024_s8 + $0x18] sm:$0xff]   ;;  %v4478_v26 = vld [vmem:[%s6024_s8 + $0x10] sm:$0xff]  }
 0xeba   :  { %4326 = vmatprep.subr.bf16.mxu1 %v4477_v46 }
 0xebb   :  { %4327 = vmatpush3.bf16.msra.mxu1 %v4477_v46 }
 0xebc   :  { %4328 = vmatprep.subr.bf16.mxu1 %v4478_v26 }
 0xebf   :  { %4329 = vmatpush3.bf16.msra.mxu1 %v4478_v26 }
 0xee9   :  { %v2869_v22 = vpop.f32.mrf.mxu0 }
 0xeeb   :  { %v4310_v20 = vpop.f32.mrf.mxu0 }
 0xeed   :  { %v2872_v48 = vpop.f32.mrf.mxu0  ;;  %v2916_v61 = vpop.f32.mrf.mxu1 }
 0xeee   :  { %v4443_v21 = vpack.i.bf16 %v2872_v48, %v2869_v22 }
 0xeef   :  { %v4311_v47 = vpop.f32.mrf.mxu0  ;;  %v4316_v35 = vpop.f32.mrf.mxu1 }
 0xef0   :  { %4444 = vrot.lane.b32.xlu0 %v4443_v21, %s6067_s21 }
 0xef1   :  { %v2919_v1 = vpop.f32.mrf.mxu1 }
 0xef2   :  { %v4448_v53 = vpack.i.bf16 %v2919_v1, %v2916_v61 }
 0xef3   :  { %v4317_v49 = vpop.f32.mrf.mxu1 }
 0xef4   :  { %4449 = vrot.lane.b32.xlu1 %v4448_v53, %s6068_s1 }
 0xf19   :  { %v4425_v54 = vpop.permute.xlu0 %4424 }
 0xf1a   :  { %v4427_v17 = vunpack.i.h.bf16 %v4425_v54  ;;  %v4426_v8 = vunpack.i.l.bf16 %v4425_v54 }
 0xf1c   :  { %v2732_v40 = vsel %vm346_vm2, %v2561_v50, %v4427_v17  ;;  %v2731_v3 = vsel %vm346_vm2, %v2558_v43, %v4426_v8 }
 0xf1e   :  { %v4430_v14 = vpop.permute.xlu1 %4429 }
 0xf1f   :  { %v4432_v37 = vunpack.i.h.bf16 %v4430_v14  ;;  %v4431_v4 = vunpack.i.l.bf16 %v4430_v14 }
 0xf21   :  { %v2734_v28 = vsel %vm768_vm9, %v2732_v40, %v4432_v37  ;;  %v2733_v31 = vsel %vm768_vm9, %v2731_v3, %v4431_v4  ;;  %v3942_v37 = vld [vmem:[%s6023_s7 + $0x1] ss:$0 sm:$0xff] }
 0xf23   :  { %v4435_v24 = vpop.permute.xlu1 %4434 }
 0xf24   :  { %v4437_v9 = vunpack.i.h.bf16 %v4435_v24  ;;  %v4436_v34 = vunpack.i.l.bf16 %v4435_v24 }
 0xf26   :  { %v2735_v18 = vsel %vm1167_vm13, %v2733_v31, %v4436_v34  ;;  %v2736_v19 = vsel %vm1167_vm13, %v2734_v28, %v4437_v9 }
 0xf27   :  { %v2953_v45 = vpack.c.bf16 %v2736_v19, %v2735_v18 }
 0xf29   :  { %4322 = vmatprep.mubr.msk.bf16.mxu0 %vm112_vm0, %v2953_v45  ;;  %v4479_v45 = vld [vmem:[%s6025_s9 + $0x38] sm:$0xff]  }
 0xf2a   :  { %4334 = vmatprep.subr.bf16.mxu0 %v4479_v45 }
 0xf2b   :  { %v4440_v5 = vpop.permute.xlu0 %4439 }
 0xf2c   :  { %v4442_v51 = vunpack.i.h.bf16 %v4440_v5  ;;  %v4441_v59 = vunpack.i.l.bf16 %v4440_v5  ;;  %v4480_v5 = vld [vmem:[%s6025_s9 + $0x30] sm:$0xff]  }
 0xf2e   :  { %v2948_v33 = vsel %vm346_vm2, %v2777_v23, %v4442_v51  ;;  %v2947_v39 = vsel %vm346_vm2, %v2774_v16, %v4441_v59  ;;  %v4482_v51 = vld [vmem:[%s6025_s9 + $0x20] sm:$0xff]  }
 0xf62   :  { %v4445_v42 = vpop.permute.xlu0 %4444 }
 0xf63   :  { %v4447_v50 = vunpack.i.h.bf16 %v4445_v42  ;;  %v4446_v29 = vunpack.i.l.bf16 %v4445_v42  ;;  %v4481_v42 = vld [vmem:[%s6025_s9 + $0x28] sm:$0xff]  }
 0xf65   :  { %v2950_v63 = vsel %vm768_vm9, %v2948_v33, %v4447_v50  ;;  %v2949_v6 = vsel %vm768_vm9, %v2947_v39, %v4446_v29 }
 0xf66   :  { %v4450_v43 = vpop.permute.xlu1 %4449 }
 0xf67   :  { %v4452_v57 = vunpack.i.h.bf16 %v4450_v43  ;;  %v4451_v0 = vunpack.i.l.bf16 %v4450_v43 }
 0xf69   :  { %v2952_v7 = vsel %vm1167_vm13, %v2950_v63, %v4452_v57  ;;  %v2951_v58 = vsel %vm1167_vm13, %v2949_v6, %v4451_v0 }
 0xf6a   :  { %v2954_v2 = vpack.c.bf16 %v2952_v7, %v2951_v58 }
 0xf6c   :  { %4323 = vmatmul.mubr.msk.bf16.vlgmr.msra.gmra.mxu0 %vm112_vm0, %v2954_v2 }
 0xf6d   :  { %4335 = vmatpush3.bf16.msra.mxu0 %v4479_v45 }
 0xf6e   :  { %4336 = vmatprep.subr.bf16.mxu0 %v4480_v5 }
 0xf71   :  { %4337 = vmatpush3.bf16.msra.mxu0 %v4480_v5 }
 0xf72   :  { %4338 = vmatprep.subr.bf16.mxu0 %v4481_v42 }
 0xf75   :  { %4339 = vmatpush3.bf16.msra.mxu0 %v4481_v42 }
 0xf76   :  { %4340 = vmatprep.subr.bf16.mxu0 %v4482_v51 }
 0xf79   :  { %4341 = vmatpush3.bf16.msra.mxu0 %v4482_v51 }
0x102c   :  { %v4324_v41 = vpop.f32.mrf.mxu0 }
0x102d   :  { %v5850_v12 = vadd.f32 %v4324_v41, %v5460_v32 }
0x102e   :  { %v3012_v15 = vpop.f32.mrf.mxu0 }
0x102f   :  { %v5853_v16 = vadd.f32 %v3012_v15, %v5463_v38  ;;  %v3035_v32 = vmul.f32 %v5850_v12, %v5850_v12 }
0x1030   :  { %v4325_v11 = vpop.f32.mrf.mxu0 }
0x1031   :  { %v3033_v30 = vmul.f32 %v5853_v16, %v5853_v16  ;;  %v5858_v23 = vadd.f32 %v4325_v11, %v5468_v56  ;;  %v3043_v52 = vsel %vm112_vm0, %v3035_v32, 0.0 }
0x1032   :  { %v3015_v60 = vpop.f32.mrf.mxu0 }
0x1033   :  { %v5861_v27 = vadd.f32 %v3015_v60, %v5471_v36  ;;  %v3037_v62 = vsel %vm112_vm0, %v3033_v30, 0.0  ;;  %v3036_v56 = vmul.f32 %v5858_v23, %v5858_v23 }
0x1034   :  { %3038 = vadd.xlane.f32.xlu0 %v3037_v62 }
0x1035   :  { %v3034_v38 = vmul.f32 %v5861_v27, %v5861_v27  ;;  %v3046_v36 = vsel %vm112_vm0, %v3036_v56, 0.0 }
0x1037   :  { %v3040_v44 = vsel %vm112_vm0, %v3034_v38, 0.0 }
0x1038   :  { %3044 = vadd.xlane.f32.xlu0 %v3043_v52  ;;  %3041 = vadd.xlane.f32.xlu1 %v3040_v44 }
0x103c   :  { %3047 = vadd.xlane.f32.xlu0 %v3046_v36 }
0x10bd   :  { %v3039_v10 = vpop.xlane.xlu0 %3038 }
0x10be   :  { %v3049_v22 = vmul.f32 0.03125, %v3039_v10 }
0x10c0   :  { %v3053_v55 = vadd.f32 1e-06, %v3049_v22 }
0x10c1   :  { %v3045_v20 = vpop.xlane.xlu0 %3044  ;;  %v3042_v48 = vpop.xlane.xlu1 %3041 }
0x10c2   :  { %v3051_v61 = vmul.f32 0.03125, %v3045_v20  ;;  %v3050_v21 = vmul.f32 0.03125, %v3042_v48  ;;  %4658 = vrsqrt.f32 %v3053_v55 }
0x10c4   :  { %v3055_v47 = vadd.f32 1e-06, %v3051_v61  ;;  %v3054_v35 = vadd.f32 1e-06, %v3050_v21 }
0x10c5   :  { %v3048_v1 = vpop.xlane.xlu0 %3047 }
0x10c6   :  { %4660 = vrsqrt.f32 %v3055_v47  ;;  %v3052_v53 = vmul.f32 0.03125, %v3048_v1 }
0x10c7   :  { %4662 = vrsqrt.f32 %v3054_v35 }
0x10c8   :  { %v3056_v49 = vadd.f32 1e-06, %v3052_v53 }
0x10ca   :  { %4664 = vrsqrt.f32 %v3056_v49 }
0x10cf   :  { %v4659_v54 = vpop.eup %4658 }
0x10d0   :  { %v3061_v17 = vmul.f32 %v4659_v54, %v5853_v16 }
0x10d2   :  { %v3071_v3 = vmul.f32 %v3942_v37, %v3061_v17 }
0x10d3   :  { %v4661_v14 = vpop.eup %4660 }
0x10d4   :  { %v4663_v8 = vpop.eup %4662  ;;  %v3063_v24 = vmul.f32 %v4661_v14, %v5850_v12 }
0x10d5   :  { %v3062_v4 = vmul.f32 %v4663_v8, %v5861_v27 }
0x10d6   :  { %v3073_v31 = vmul.f32 %v3942_v37, %v3063_v24 }
0x10d7   :  { %v4665_v40 = vpop.eup %4664  ;;  %v3072_v9 = vmul.f32 %v3942_v37, %v3062_v4 }
0x10d8   :  { %v3064_v34 = vmul.f32 %v4665_v40, %v5858_v23 }
0x10d9   :  { %v3075_v28 = vpack.c.bf16 %v3072_v9, %v3071_v3 }
0x10da   :  { %v3074_v18 = vmul.f32 %v3942_v37, %v3064_v34 }
0x10db   :  { %4330 = vmatprep.mubr.msk.bf16.mxu1 %vm112_vm0, %v3075_v28 }
0x10dc   :  { %v3076_v19 = vpack.c.bf16 %v3074_v18, %v3073_v31 }
0x10de   :  { %4331 = vmatmul.mubr.msk.bf16.vlgmr.msra.gmra.mxu1 %vm112_vm0, %v3076_v19 }
0x119e   :  { %v4332_v59 = vpop.f32.mrf.mxu1 }
0x119f   :  { %3185 = vrot.lane.b32.xlu1 %v4332_v59, %s4773_s24  ;;  %v3953_v57 = vmul.f32 -1.442695, %v4332_v59 }
0x11a0   :  { %v3134_v50 = vpop.f32.mrf.mxu1 }
0x11a1   :  { %3181 = vrot.lane.b32.xlu0 %v3134_v50, %s4773_s24  ;;  %v3951_v33 = vmul.f32 -1.442695, %v3134_v50 }
0x11a2   :  { %v4333_v29 = vpop.f32.mrf.mxu1 }
0x11a3   :  { %4666 = vpow2.f32 %v3951_v33  ;;  %v3954_v0 = vmul.f32 -1.442695, %v4333_v29 }
0x11a4   :  { %v3137_v43 = vpop.f32.mrf.mxu1 }
0x11a5   :  { %3183 = vrot.lane.b32.xlu1 %v3137_v43, %s4773_s24  ;;  %v3952_v39 = vmul.f32 -1.442695, %v3137_v43 }
0x11a7   :  { %4668 = vpow2.f32 %v3952_v39 }
0x11a8   :  { %4670 = vpow2.f32 %v3953_v57 }
0x11a9   :  { %3187 = vrot.lane.b32.xlu1 %v4333_v29, %s4773_s24  ;;  %4672 = vpow2.f32 %v3954_v0  ;;  %v3969_v0 = vld [vmem:[%s6026_s10] ss:$0 sm:$0xff] }
0x11b0   :  { %v4667_v63 = vpop.eup %4666 }
0x11b1   :  { %v3161_v7 = vadd.f32 1.0, %v4667_v63 }
0x11b3   :  { %4674 = vrcp.f32 %v3161_v7 }
0x11b4   :  { %v4669_v6 = vpop.eup %4668 }
0x11b5   :  { %v4671_v58 = vpop.eup %4670  ;;  %v3162_v2 = vadd.f32 1.0, %v4669_v6 }
0x11b6   :  { %v4673_v41 = vpop.eup %4672  ;;  %v3163_v15 = vadd.f32 1.0, %v4671_v58 }
0x11b7   :  { %v3164_v11 = vadd.f32 1.0, %v4673_v41  ;;  %4676 = vrcp.f32 %v3162_v2 }
0x11b8   :  { %4678 = vrcp.f32 %v3163_v15 }
0x11b9   :  { %4680 = vrcp.f32 %v3164_v11 }
0x11c0   :  { %v4675_v30 = vpop.eup %4674 }
0x11c1   :  { %v3173_v52 = vmul.f32 %v4675_v30, %v3134_v50 }
0x11c4   :  { %v4677_v60 = vpop.eup %4676 }
0x11c5   :  { %v4679_v38 = vpop.eup %4678  ;;  %v3174_v44 = vmul.f32 %v4677_v60, %v3137_v43 }
0x11c6   :  { %v4681_v56 = vpop.eup %4680  ;;  %v3175_v10 = vmul.f32 %v4679_v38, %v4332_v59 }
0x11c7   :  { %v3176_v55 = vmul.f32 %v4681_v56, %v4333_v29 }
0x1211   :  { %v3186_v62 = vpop.permute.xlu1 %3185 }
0x1212   :  { %v3195_v48 = vmul.f32 %v3186_v62, %v3175_v10  ;;  %v4486_v62 = vld [vmem:[%s6028_s12] sm:$0xff]  }
0x1213   :  { %v3182_v32 = vpop.permute.xlu0 %3181  ;;  %v3974_v10 = vld [vmem:[%s6029_s13] ss:$0 sm:$0xff] }
0x1214   :  { %v3193_v46 = vmul.f32 %v3182_v32, %v3173_v52  ;;  %v4487_v32 = vld [vmem:[%s6030_s14] sm:$0xff]  }
0x1215   :  { %4362 = vmatprep.subr.bf16.mxu0 %v4487_v32 }
0x1217   :  { %v3184_v36 = vpop.permute.xlu1 %3183 }
0x1218   :  { %v3194_v26 = vmul.f32 %v3184_v36, %v3174_v44 }
0x121a   :  { %v3197_v22 = vpack.c.bf16 %v3194_v26, %v3193_v46 }
0x121b   :  { %v3188_v20 = vpop.permute.xlu1 %3187 }
0x121c   :  { %v3196_v61 = vmul.f32 %v3188_v20, %v3176_v55  ;;  %4342 = vmatprep.mubr.msk.bf16.mxu0 %vm1661_vm14, %v3197_v22 }
0x121e   :  { %v3198_v21 = vpack.c.bf16 %v3196_v61, %v3195_v48 }
0x1220   :  { %4343 = vmatmul.mubr.msk.bf16.vlgmr.msra.gmra.mxu0 %vm1661_vm14, %v3198_v21 }
0x1221   :  { %4363 = vmatpush3.bf16.msra.mxu0 %v4487_v32 }
0x12e0   :  { %v4344_v47 = vpop.f32.mrf.mxu0 }
0x12e1   :  { %v3289_v1 = vadd.f32 %v4344_v47, %v5850_v12 }
0x12e2   :  { %v3272_v35 = vpop.f32.mrf.mxu0 }
0x12e3   :  { %v3287_v53 = vadd.f32 %v3272_v35, %v5853_v16  ;;  %v3294_v17 = vmul.f32 %v3289_v1, %v3289_v1  ;;  %v4483_v16 = vld [vmem:[%s6027_s11 + $0x8] sm:$0xff]  }
0x12e4   :  { %v4345_v49 = vpop.f32.mrf.mxu0  ;;  %4346 = vmatprep.subr.bf16.mxu1 %v4483_v16  ;;  %v4488_v35 = vld [vmem:[%s6032_s16 + $0x8] sm:$0xff]  }
0x12e5   :  { %v3292_v54 = vmul.f32 %v3287_v53, %v3287_v53  ;;  %v3290_v8 = vadd.f32 %v4345_v49, %v5858_v23  ;;  %v3302_v3 = vsel %vm112_vm0, %v3294_v17, 0.0  ;;  %v4484_v23 = vld [vmem:[%s6027_s11] sm:$0xff]   ;;  %4347 = vmatpush3.bf16.msra.mxu1 %v4483_v16 }
0x12e6   :  { %v3275_v14 = vpop.f32.mrf.mxu0  ;;  %4348 = vmatprep.subr.bf16.mxu1 %v4484_v23  ;;  %v3979_v49 = vld [vmem:[%s6031_s15] ss:$0 sm:$0xff] }
0x12e7   :  { %v3288_v37 = vadd.f32 %v3275_v14, %v5861_v27  ;;  %v3296_v4 = vsel %vm112_vm0, %v3292_v54, 0.0  ;;  %v3295_v40 = vmul.f32 %v3290_v8, %v3290_v8  ;;  %v4485_v27 = vld [vmem:[%s6028_s12 + $0x8] sm:$0xff]  }
0x12e8   :  { %3297 = vadd.xlane.f32.xlu0 %v3296_v4 }
0x12e9   :  { %v3293_v24 = vmul.f32 %v3288_v37, %v3288_v37  ;;  %v3305_v12 = vsel %vm112_vm0, %v3295_v40, 0.0  ;;  %4349 = vmatpush3.bf16.msra.mxu1 %v4484_v23 }
0x12ea   :  { %4354 = vmatprep.subr.bf16.mxu1 %v4485_v27 }
0x12eb   :  { %v3299_v9 = vsel %vm112_vm0, %v3293_v24, 0.0 }
0x12ec   :  { %3303 = vadd.xlane.f32.xlu0 %v3302_v3  ;;  %3300 = vadd.xlane.f32.xlu1 %v3299_v9 }
0x12f0   :  { %3306 = vadd.xlane.f32.xlu0 %v3305_v12 }
0x1371   :  { %v3298_v34 = vpop.xlane.xlu0 %3297 }
0x1372   :  { %v3308_v28 = vmul.f32 0.03125, %v3298_v34 }
0x1374   :  { %v3312_v31 = vadd.f32 1e-06, %v3308_v28 }
0x1375   :  { %v3304_v18 = vpop.xlane.xlu0 %3303  ;;  %v3301_v19 = vpop.xlane.xlu1 %3300 }
0x1376   :  { %v3310_v45 = vmul.f32 0.03125, %v3304_v18  ;;  %v3309_v5 = vmul.f32 0.03125, %v3301_v19  ;;  %4682 = vrsqrt.f32 %v3312_v31 }
0x1378   :  { %v3314_v42 = vadd.f32 1e-06, %v3310_v45  ;;  %v3313_v51 = vadd.f32 1e-06, %v3309_v5 }
0x1379   :  { %v3307_v59 = vpop.xlane.xlu0 %3306 }
0x137a   :  { %4684 = vrsqrt.f32 %v3314_v42  ;;  %v3311_v50 = vmul.f32 0.03125, %v3307_v59 }
0x137b   :  { %4686 = vrsqrt.f32 %v3313_v51 }
0x137c   :  { %v3315_v29 = vadd.f32 1e-06, %v3311_v50 }
0x137e   :  { %4688 = vrsqrt.f32 %v3315_v29 }
0x1383   :  { %v4683_v43 = vpop.eup %4682 }
0x1384   :  { %v3320_v39 = vmul.f32 %v4683_v43, %v3287_v53 }
0x1386   :  { %v3330_v58 = vmul.f32 %v3969_v0, %v3320_v39 }
0x1387   :  { %v4685_v33 = vpop.eup %4684 }
0x1388   :  { %v4687_v57 = vpop.eup %4686  ;;  %v3322_v6 = vmul.f32 %v4685_v33, %v3289_v1  ;;  %v4489_v1 = vld [vmem:[%s6032_s16] sm:$0xff]  }
0x1389   :  { %v3321_v63 = vmul.f32 %v4687_v57, %v3288_v37 }
0x138a   :  { %v3332_v11 = vmul.f32 %v3969_v0, %v3322_v6 }
0x138b   :  { %v4689_v7 = vpop.eup %4688  ;;  %v3331_v2 = vmul.f32 %v3969_v0, %v3321_v63 }
0x138c   :  { %v3323_v41 = vmul.f32 %v4689_v7, %v3290_v8 }
0x138d   :  { %v3334_v15 = vpack.c.bf16 %v3331_v2, %v3330_v58 }
0x138e   :  { %v3333_v30 = vmul.f32 %v3969_v0, %v3323_v41 }
0x138f   :  { %4350 = vmatprep.mubr.msk.bf16.mxu1 %vm112_vm0, %v3334_v15 }
0x1390   :  { %v3335_v60 = vpack.c.bf16 %v3333_v30, %v3332_v11 }
0x1392   :  { %4351 = vmatmul.mubr.msk.bf16.vlgmr.msra.gmra.mxu1 %vm112_vm0, %v3335_v60 }
0x1393   :  { %4355 = vmatpush3.bf16.msra.mxu1 %v4485_v27  ;;  %4358 = vmatprep.mubr.msk.bf16.mxu1 %vm112_vm0, %v3334_v15 }
0x1394   :  { %4356 = vmatprep.subr.bf16.mxu1 %v4486_v62 }
0x1397   :  { %4357 = vmatpush3.bf16.msra.mxu1 %v4486_v62 }
0x1398   :  { %4368 = vmatprep.subr.bf16.mxu1 %v4488_v35 }
0x139a   :  { %4359 = vmatmul.mubr.msk.bf16.vlgmr.msra.gmra.mxu1 %vm112_vm0, %v3335_v60 }
0x139b   :  { %4369 = vmatpush3.bf16.msra.mxu1 %v4488_v35 }
0x139c   :  { %4370 = vmatprep.subr.bf16.mxu1 %v4489_v1 }
0x139f   :  { %4371 = vmatpush3.bf16.msra.mxu1 %v4489_v1 }
0x1452   :  { %v5936_v38 = vpop.f32.mrf.mxu1 }
0x1453   :  { %3628 = vmax.xlane.f32.xlu0 %v5936_v38 }
0x1454   :  { %v5939_v52 = vpop.f32.mrf.mxu1 }
0x1456   :  { %v5941_v44 = vpop.f32.mrf.mxu1 }
0x1457   :  { %3624 = vmax.xlane.f32.xlu0 %v5939_v52 }
0x1458   :  { %v5944_v56 = vpop.f32.mrf.mxu1 }
0x1459   :  { %3626 = vmax.xlane.f32.xlu1 %v5944_v56 }
0x145a   :  { %v4360_v36 = vpop.f32.mrf.mxu1 }
0x145b   :  { %v3473_v61 = vadd.f32 %v4360_v36, %v3974_v10 }
0x145c   :  { %v3464_v46 = vpop.f32.mrf.mxu1 }
0x145d   :  { %v3465_v20 = vadd.f32 %v3974_v10, %v3464_v46 }
0x145e   :  { %v4361_v26 = vpop.f32.mrf.mxu1 }
0x145f   :  { %v3476_v22 = vadd.f32 %v4361_v26, %v3974_v10 }
0x1460   :  { %v3467_v55 = vpop.f32.mrf.mxu1 }
0x1461   :  { %v3468_v48 = vadd.f32 %v3974_v10, %v3467_v55  ;;  %v3480_v47 = vpack.c.bf16 %v3476_v22, %v3473_v61 }
0x1463   :  { %v3479_v21 = vpack.c.bf16 %v3468_v48, %v3465_v20 }
0x1465   :  { %4364 = vmatprep.mubr.msk.bf16.mxu0 %vm768_vm9, %v3479_v21 }
0x1466   :  { %4365 = vmatmul.mubr.msk.bf16.vlgmr.msra.gmra.mxu0 %vm768_vm9, %v3480_v47 }
0x14dc   :  { %v3629_v0 = vpop.xlane.xlu0 %3628 }
0x14dd   :  { %v3634_v58 = vsub.f32 %v5936_v38, %v3629_v0 }
0x14df   :  { %v3640_v15 = vmul.f32 1.442695, %v3634_v58 }
0x14e0   :  { %v3625_v63 = vpop.xlane.xlu0 %3624 }
0x14e1   :  { %v3632_v6 = vsub.f32 %v5939_v52, %v3625_v63 }
0x14e2   :  { %v3627_v7 = vpop.xlane.xlu1 %3626 }
0x14e3   :  { %v3636_v2 = vmul.f32 1.442695, %v3632_v6  ;;  %v3633_v41 = vsub.f32 %v5944_v56, %v3627_v7 }
0x14e5   :  { %4690 = vpow2.f32 %v3636_v2  ;;  %v3638_v11 = vmul.f32 1.442695, %v3633_v41 }
0x14e6   :  { %4692 = vpow2.f32 %v3640_v15 }
0x14e7   :  { %4694 = vpow2.f32 %v3638_v11 }
0x14f2   :  { %v4691_v52 = vpop.eup %4690 }
0x14f3   :  { %v4693_v38 = vpop.eup %4692 }
0x14f4   :  { %v5974_v36 = vpop.eup %4694 }
0x1526   :  { %v4366_v53 = vpop.f32.mrf.mxu0 }
0x1527   :  { %v3545_v14 = vadd.f32 %v4366_v53, %v3979_v49 }
0x1528   :  { %v3536_v54 = vpop.f32.mrf.mxu0 }
0x1529   :  { %v3537_v8 = vadd.f32 %v3979_v49, %v3536_v54  ;;  %v3831_v24 = vsel %vm112_vm0, %v3545_v14, 0.0 }
0x152a   :  { %v4367_v17 = vpop.f32.mrf.mxu0 }
0x152b   :  { %v3548_v37 = vadd.f32 %v4367_v17, %v3979_v49  ;;  %v3820_v12 = vsel %vm112_vm0, %v3537_v8, 0.0 }
0x152c   :  { %v3539_v4 = vpop.f32.mrf.mxu0 }
0x152d   :  { %v3832_v40 = vsel %vm112_vm0, %v3548_v37, 0.0  ;;  %v3540_v3 = vadd.f32 %v3979_v49, %v3539_v4  ;;  %v3552_v27 = vpack.c.bf16 %v3548_v37, %v3545_v14 }
0x152e   :  { %v3833_v9 = vadd.f32 %v3832_v40, %v3831_v24 }
0x152f   :  { %v3551_v16 = vpack.c.bf16 %v3540_v3, %v3537_v8  ;;  %v3821_v23 = vsel %vm112_vm0, %v3540_v3, 0.0 }
0x1530   :  { %v3834_v34 = vrot.slane %v3833_v9, 4  ;;  %v3822_v28 = vadd.f32 %v3821_v23, %v3820_v12 }
0x1531   :  { %4372 = vmatprep.mubr.msk.bf16.mxu1 %vm112_vm0, %v3551_v16 }
0x1532   :  { %v3835_v31 = vadd.f32 %v3834_v34, %v3833_v9  ;;  %v3823_v18 = vrot.slane %v3822_v28, 4  ;;  %4373 = vmatmul.mubr.msk.bf16.vlgmr.msra.gmra.mxu1 %vm112_vm0, %v3552_v27 }
0x1534   :  { %v3836_v19 = vrot.slane %v3835_v31, 2  ;;  %v3824_v45 = vadd.f32 %v3823_v18, %v3822_v28  ;;  %v3698_v18 = vstv %s3697_s4 }
0x1536   :  { %v3837_v5 = vadd.f32 %v3836_v19, %v3835_v31  ;;  %v3825_v42 = vrot.slane %v3824_v45, 2 }
0x1538   :  { %v3838_v51 = vrot.slane %v3837_v5, 1  ;;  %v3826_v59 = vadd.f32 %v3825_v42, %v3824_v45 }
0x153a   :  { %v3839_v50 = vadd.f32 %v3838_v51, %v3837_v5  ;;  %v3827_v29 = vrot.slane %v3826_v59, 1  ;;  %v3703_v5 = vstv %s6034_s18 }
0x153c   :  { %v3828_v43 = vadd.f32 %v3827_v29, %v3826_v59  ;;  %v3840_v33 = vmul.f32 0.0625, %v3839_v50 }
0x153e   :  { %v3830_v39 = vmul.f32 0.0625, %v3828_v43 }
0x1540   :  { %v3842_v57 = vsel %vm3841_vm15, %v3830_v39, %v3840_v33 }
0x1541   :  { %3844 = vst.msk [vmem:[%s6036_s20] sm:$0x3] %vm3843_vm1, %v3842_v57 }
0x15f2   :  { %v4374_v30 = vpop.f32.mrf.mxu1 }
0x15f3   :  { %3664 = vmax.xlane.f32.xlu1 %v4374_v30 }
0x15f4   :  { %v3609_v60 = vpop.f32.mrf.mxu1 }
0x15f5   :  { %3660 = vmax.xlane.f32.xlu0 %v3609_v60 }
0x15f6   :  { %v4375_v62 = vpop.f32.mrf.mxu1 }
0x15f8   :  { %v3612_v32 = vpop.f32.mrf.mxu1 }
0x15f9   :  { %3630 = vmax.xlane.f32.xlu0 %v5941_v44  ;;  %3662 = vmax.xlane.f32.xlu1 %v3612_v32 }
0x15fd   :  { %3644 = vadd.xlane.f32.xlu0 %v4691_v52  ;;  %3666 = vmax.xlane.f32.xlu1 %v4375_v62 }
0x1601   :  { %3648 = vadd.xlane.f32.xlu0 %v4693_v38  ;;  %3646 = vadd.xlane.f32.xlu1 %v5974_v36 }
0x167c   :  { %v3665_v56 = vpop.xlane.xlu1 %3664 }
0x167d   :  { %v3670_v46 = vsub.f32 %v4374_v30, %v3665_v56 }
0x167e   :  { %v3661_v26 = vpop.xlane.xlu0 %3660 }
0x167f   :  { %v3676_v10 = vmul.f32 1.442695, %v3670_v46  ;;  %v3668_v22 = vsub.f32 %v3609_v60, %v3661_v26 }
0x1681   :  { %4696 = vpow2.f32 %v3676_v10  ;;  %v3672_v55 = vmul.f32 1.442695, %v3668_v22 }
0x1682   :  { %v3631_v20 = vpop.xlane.xlu0 %3630  ;;  %v3663_v48 = vpop.xlane.xlu1 %3662 }
0x1683   :  { %4698 = vpow2.f32 %v3672_v55  ;;  %v3635_v61 = vsub.f32 %v5941_v44, %v3631_v20  ;;  %v3669_v21 = vsub.f32 %v3612_v32, %v3663_v48  ;;  %v3736_v32 = vld [vmem:[%s6033_s17] sm:$0xff] }
0x1684   :  { %vm3768_vm5 = vcmp.ne.s32.totalorder %v3736_v32, 4294967196 }
0x1685   :  { %v3642_v47 = vmul.f32 1.442695, %v3635_v61  ;;  %v3674_v35 = vmul.f32 1.442695, %v3669_v21 }
0x1686   :  { %v3667_v1 = vpop.xlane.xlu1 %3666  ;;  %v3645_v44 = vpop.xlane.xlu0 %3644 }
0x1687   :  { %4700 = vpow2.f32 %v3642_v47  ;;  %v3671_v53 = vsub.f32 %v4375_v62, %v3667_v1 }
0x1688   :  { %4702 = vpow2.f32 %v3674_v35 }
0x1689   :  { %v3678_v49 = vmul.f32 1.442695, %v3671_v53 }
0x168a   :  { %v3647_v4 = vpop.xlane.xlu1 %3646  ;;  %v3649_v24 = vpop.xlane.xlu0 %3648 }
0x168b   :  { %4704 = vpow2.f32 %v3678_v49 }
0x168c   :  { %4706 = vrcp.f32 %v3645_v44 }
0x168e   :  { %v4697_v54 = vpop.eup %4696 }
0x168f   :  { %3684 = vadd.xlane.f32.xlu1 %v4697_v54 }
0x1690   :  { %v4699_v14 = vpop.eup %4698 }
0x1691   :  { %3680 = vadd.xlane.f32.xlu0 %v4699_v14 }
0x1694   :  { %v4701_v17 = vpop.eup %4700 }
0x1695   :  { %v4703_v8 = vpop.eup %4702  ;;  %3650 = vadd.xlane.f32.xlu0 %v4701_v17 }
0x1696   :  { %3682 = vadd.xlane.f32.xlu1 %v4703_v8 }
0x1698   :  { %v4705_v37 = vpop.eup %4704 }
0x1699   :  { %v4707_v23 = vpop.eup %4706 }
0x169a   :  { %3686 = vadd.xlane.f32.xlu1 %v4705_v37  ;;  %v3653_v28 = vmul.f32 %v4707_v23, %v4691_v52  ;;  %v3737_v52 = vld [vmem:[%s6033_s17 + $0x8] sm:$0xff]  ;;  %v3987_v23 = vsel %vm3768_vm5, 1.0, %v4774_v13 }
0x169b   :  { %vm3769_vm6 = vcmp.ne.s32.totalorder %v3737_v52, 4294967196 }
0x169c   :  { %v3699_v42 = vmul.f32 %v3698_v18, %v3653_v28 }
0x1718   :  { %v3685_v40 = vpop.xlane.xlu1 %3684 }
0x1719   :  { %4708 = vrcp.f32 %v3685_v40 }
0x171a   :  { %4710 = vrcp.f32 %v3649_v24  ;;  %v3681_v3 = vpop.xlane.xlu0 %3680 }
0x171b   :  { %4712 = vrcp.f32 %v3681_v3 }
0x171e   :  { %v3651_v9 = vpop.xlane.xlu0 %3650 }
0x171f   :  { %v3683_v12 = vpop.xlane.xlu1 %3682  ;;  %4714 = vrcp.f32 %v3651_v9 }
0x1720   :  { %4716 = vrcp.f32 %v3683_v12 }
0x1721   :  { %4718 = vrcp.f32 %v3647_v4 }
0x1723   :  { %v3687_v16 = vpop.xlane.xlu1 %3686 }
0x1724   :  { %4720 = vrcp.f32 %v3687_v16 }
0x1726   :  { %v4709_v27 = vpop.eup %4708 }
0x1727   :  { %v4711_v34 = vpop.eup %4710  ;;  %v3693_v45 = vmul.f32 %v4709_v27, %v4697_v54  ;;  %v3988_v27 = vsel %vm3769_vm6, 1.0, %v4774_v13 }
0x1728   :  { %v4713_v31 = vpop.eup %4712  ;;  %v3657_v59 = vmul.f32 %v4711_v34, %v4693_v38  ;;  %v3738_v38 = vld [vmem:[%s6033_s17 + $0x10] sm:$0xff]  ;;  %v3802_v34 = vsel %vm3788_vm7, %v3987_v23, 0.0  ;;  %v3803_v28 = vsel %vm3788_vm7, %v3988_v27, 0.0 }
0x1729   :  { %v3689_v19 = vmul.f32 %v4713_v31, %v4699_v14  ;;  %v3706_v43 = vmul.f32 %v3703_v5, %v3693_v45  ;;  %vm3770_vm8 = vcmp.ne.s32.totalorder %v3738_v38, 4294967196 }
0x172a   :  { %v3701_v39 = vmul.f32 %v3698_v18, %v3657_v59  ;;  %v3989_v31 = vsel %vm3770_vm8, 1.0, %v4774_v13 }
0x172b   :  { %v3704_v51 = vmul.f32 %v3703_v5, %v3689_v19 }
0x172c   :  { %v4715_v50 = vpop.eup %4714  ;;  %v3710_v6 = vadd.f32 %v3706_v43, %v3701_v39 }
0x172d   :  { %v3708_v29 = vadd.f32 %v3704_v51, %v3699_v42  ;;  %v4717_v33 = vpop.eup %4716  ;;  %v3659_v0 = vmul.f32 %v4715_v50, %v4701_v17 }
0x172e   :  { %v4719_v57 = vpop.eup %4718  ;;  %v3691_v58 = vmul.f32 %v4717_v33, %v4703_v8 }
0x172f   :  { %3712 = vadd.xlane.f32.xlu0 %v3708_v29  ;;  %v3702_v2 = vmul.f32 %v3698_v18, %v3659_v0  ;;  %v3655_v15 = vmul.f32 %v4719_v57, %v5974_v36  ;;  %v3739_v36 = vld [vmem:[%s6033_s17 + $0x18] sm:$0xff]  ;;  %s4786_s17 = smov [#allocation3]  }
0x1730   :  { %v3705_v30 = vmul.f32 %v3703_v5, %v3691_v58  ;;  %vm3771_vm9 = vcmp.ne.s32.totalorder %v3739_v36, 4294967196  ;;  %s3851_s11 = sshll.u32 %s4786_s17, 4  ;;  %s3852_s11 = int_to_ptr.vmem [resolvable:$true] %s3851_s11 }
0x1731   :  { %v4721_v63 = vpop.eup %4720  ;;  %v3700_v60 = vmul.f32 %v3698_v18, %v3655_v15  ;;  %v3804_v18 = vadd.f32 %v3803_v28, %v3802_v34  ;;  %v3990_v19 = vsel %vm3771_vm9, 1.0, %v4774_v13  ;;  %s4748_s6 = scalar_lea.vmem %s3852_s11, 16  ;;  %s4752_s23 = scalar_lea.vmem %s3852_s11, 32 }
0x1732   :  { %v3695_v7 = vmul.f32 %v4721_v63, %v4705_v37  ;;  %p4749_p0 = scmp.ne.s32.totalorder %s3852_s11, %s4748_s6  ;;  %p4753_p1 = scmp.lt.s32.totalorder %s3852_s11, %s3852_s11 }
0x1733   :  { %3716 = vadd.xlane.f32.xlu0 %v3710_v6  ;;  %v3709_v62 = vadd.f32 %v3705_v30, %v3700_v60  ;;  %p4754_p2 = scmp.lt.s32.totalorder %s4752_s23, %s4748_s6 }
0x1734   :  { %v3707_v41 = vmul.f32 %v3703_v5, %v3695_v7  ;;  %v3807_v5 = vsel %vm3788_vm7, %v3990_v19, 0.0 }
0x1735   :  { %p4755_p3 = por %p4754_p2, %p4753_p1 }
0x1736   :  { %v3711_v11 = vadd.f32 %v3707_v41, %v3702_v2 }
0x1737   :  { %p4756_p4 = pnand %p4755_p3, %p4749_p0 }
0x1738   :  { %3718 = vadd.xlane.f32.xlu1 %v3711_v11 }
0x173c   :  { %3714 = vadd.xlane.f32.xlu1 %v3709_v62 }
0x1749   :  { %3741 = vperm.xlu0 %4453, %v3736_v32  }
0x174d   :  { %3744 = vperm.xlu1 %4454, %v3737_v52  }
0x1751   :  { %3747 = vperm.xlu1 %4454, %v3738_v38  }
0x1755   :  { %3750 = vperm.xlu1 %4454, %v3739_v36  }
0x17b8   :  { %v3713_v56 = vpop.xlane.xlu0 %3712 }
0x17b9   :  { %4722 = vrcp.f32 %v3713_v56 }
0x17bc   :  { %v3717_v46 = vpop.xlane.xlu0 %3716 }
0x17bd   :  { %4724 = vrcp.f32 %v3717_v46 }
0x17c1   :  { %v3719_v26 = vpop.xlane.xlu1 %3718 }
0x17c2   :  { %4726 = vrcp.f32 %v3719_v26 }
0x17c4   :  { %v3742_v1 = vpop.permute.xlu0 %3741 }
0x17c5   :  { %v3715_v10 = vpop.xlane.xlu1 %3714  ;;  %vm3752_vm0 = vcmp.eq.s32.totalorder %v5113_v25, %v3742_v1 }
0x17c6   :  { %v4723_v22 = vpop.eup %4722  ;;  %4728 = vrcp.f32 %v3715_v10 }
0x17c7   :  { %v3721_v55 = vmul.f32 %v4723_v22, %v3708_v29 }
0x17c9   :  { %4730 = vlog2.f32 %v3721_v55  ;;  %v3745_v21 = vpop.permute.xlu1 %3744 }
0x17ca   :  { %v4725_v20 = vpop.eup %4724  ;;  %vm3753_vm4 = vcmp.eq.s32.totalorder %v5113_v25, %v3745_v21 }
0x17cb   :  { %v3725_v48 = vmul.f32 %v4725_v20, %v3710_v6 }
0x17cd   :  { %4732 = vlog2.f32 %v3725_v48  ;;  %v3748_v54 = vpop.permute.xlu1 %3747 }
0x17ce   :  { %vm3754_vm2 = vcmp.eq.s32.totalorder %v5113_v25, %v3748_v54 }
0x17cf   :  { %v4727_v61 = vpop.eup %4726 }
0x17d0   :  { %v3727_v47 = vmul.f32 %v4727_v61, %v3711_v11 }
0x17d1   :  { %v3751_v44 = vpop.permute.xlu1 %3750 }
0x17d2   :  { %4734 = vlog2.f32 %v3727_v47  ;;  %vm3755_vm3 = vcmp.eq.s32.totalorder %v5113_v25, %v3751_v44  ;;  %v3805_v25 = vsel %vm3788_vm7, %v3989_v31, 0.0 }
0x17d3   :  { %v4729_v35 = vpop.eup %4728  ;;  %v3806_v45 = vadd.f32 %v3805_v25, %v3804_v18 }
0x17d4   :  { %v3723_v53 = vmul.f32 %v4729_v35, %v3709_v62 }
0x17d5   :  { %v3808_v42 = vadd.f32 %v3807_v5, %v3806_v45 }
0x17d6   :  { %v4731_v49 = vpop.eup %4730  ;;  %4736 = vlog2.f32 %v3723_v53 }
0x17d7   :  { %v3729_v14 = vmul.f32 0.6931472, %v4731_v49  ;;  %v3809_v51 = vrot.slane %v3808_v42, 4 }
0x17d9   :  { %v3756_v17 = vsel %vm3752_vm0, %v3729_v14, 0.0  ;;  %v3810_v59 = vadd.f32 %v3809_v51, %v3808_v42 }
0x17da   :  { %v4733_v8 = vpop.eup %4732  ;;  %3760 = vadd.xlane.f32.xlu1 %v3756_v17 }
0x17db   :  { %v3733_v37 = vmul.f32 0.6931472, %v4733_v8  ;;  %v3811_v29 = vrot.slane %v3810_v59, 2 }
0x17dd   :  { %v3758_v4 = vsel %vm3754_vm2, %v3733_v37, 0.0  ;;  %v3812_v33 = vadd.f32 %v3811_v29, %v3810_v59 }
0x17de   :  { %3764 = vadd.xlane.f32.xlu1 %v3758_v4 }
0x17df   :  { %v4735_v24 = vpop.eup %4734  ;;  %v3813_v39 = vrot.slane %v3812_v33, 1 }
0x17e0   :  { %v3735_v40 = vmul.f32 0.6931472, %v4735_v24 }
0x17e1   :  { %v3814_v6 = vadd.f32 %v3813_v39, %v3812_v33 }
0x17e2   :  { %v3759_v3 = vsel %vm3755_vm3, %v3735_v40, 0.0 }
0x17e3   :  { %v4737_v9 = vpop.eup %4736  ;;  %3766 = vadd.xlane.f32.xlu1 %v3759_v3  ;;  %v3815_v11 = vmax.f32 %v3814_v6, 1.0 }
0x17e4   :  { %v3731_v12 = vmul.f32 0.6931472, %v4737_v9 }
0x17e5   :  { %4738 = vrcp.f32 %v3815_v11 }
0x17e6   :  { %v3757_v16 = vsel %vm3753_vm4, %v3731_v12, 0.0 }
0x17e7   :  { %3762 = vadd.xlane.f32.xlu0 %v3757_v16 }
0x17f2   :  { %v4739_v20 = vpop.eup %4738 }
0x1863   :  { %v3761_v50 = vpop.xlane.xlu1 %3760 }
0x1864   :  { %v3780_v57 = vsub.f32 0.0, %v3761_v50 }
0x1866   :  { %v3784_v58 = vmul.f32 %v3987_v23, %v3780_v57 }
0x1867   :  { %v3765_v43 = vpop.xlane.xlu1 %3764 }
0x1868   :  { %v3782_v63 = vsub.f32 0.0, %v3765_v43  ;;  %v3789_v30 = vsel %vm3788_vm7, %v3784_v58, 0.0 }
0x186a   :  { %v3786_v13 = vmul.f32 %v3989_v31, %v3782_v63 }
0x186c   :  { %v3767_v0 = vpop.xlane.xlu1 %3766  ;;  %v3792_v52 = vsel %vm3788_vm7, %v3786_v13, 0.0 }
0x186d   :  { %v3783_v2 = vsub.f32 0.0, %v3767_v0 }
0x186f   :  { %v3787_v60 = vmul.f32 %v3990_v19, %v3783_v2 }
0x1870   :  { %v3763_v7 = vpop.xlane.xlu0 %3762 }
0x1871   :  { %v3781_v41 = vsub.f32 0.0, %v3763_v7  ;;  %v3794_v36 = vsel %vm3788_vm7, %v3787_v60, 0.0 }
0x1873   :  { %v3785_v15 = vmul.f32 %v3988_v27, %v3781_v41 }
0x1875   :  { %v3790_v62 = vsel %vm3788_vm7, %v3785_v15, 0.0 }
0x1876   :  { %v3791_v32 = vadd.f32 %v3790_v62, %v3789_v30 }
0x1878   :  { %v3793_v38 = vadd.f32 %v3792_v52, %v3791_v32 }
0x187a   :  { %v3795_v56 = vadd.f32 %v3794_v36, %v3793_v38 }
0x187c   :  { %v3796_v46 = vrot.slane %v3795_v56, 4 }
0x187e   :  { %v3797_v26 = vadd.f32 %v3796_v46, %v3795_v56 }
0x1880   :  { %v3798_v10 = vrot.slane %v3797_v26, 2 }
0x1882   :  { %v3799_v22 = vadd.f32 %v3798_v10, %v3797_v26 }
0x1884   :  { %v3800_v55 = vrot.slane %v3799_v22, 1 }
0x1886   :  { %v3801_v48 = vadd.f32 %v3800_v55, %v3799_v22 }
0x1888   :  { %v3817_v61 = vmul.f32 %v4739_v20, %v3801_v48 }
0x188a   :  { %3819 = vst.msk [vmem:[#allocation3] sm:$0x1] %vm3818_vm10, %v3817_v61 }
0x188b   :  { %4759 = shalt.err (!%p4756_p4)
}
0x188c   :  { %3854 = dma.vmem_to_hbm [thread:$0]  %s3852_s11, 16, %s6035_s19, [#allocation4]  }
0x188d   :  { %4768 = dma.done.wait [#allocation4], 16  }
0x188e   :  { %4769 = vsyncadd [#allocation4], 4294967280 }
0x188f   :  { %3862 = vsyncpa [#allocation4], 1 }

</bundles_post_ra>
